<compile_context>
chip_gen: v5e
topology: v5e:2x2
jax: 0.10.0
libtpu: 0.0.40
codegen_flags: <defaults>
</compile_context>

<pallas_src>
import functools

import jax
import jax.numpy as jnp
from jax.experimental import pallas as pl
from jax.experimental.pallas import tpu as pltpu


def _round_up(x, m):
    return (x + m - 1) // m * m


def _vmem_capacity_bytes():
    """Generation-aware physical VMEM (128 MiB v5e/v6e, 64 MiB v7x)."""
    try:
        return int(pltpu.get_tpu_info().vmem_capacity_bytes)
    except Exception:  # pragma: no cover - conservative fallback
        return 64 << 20


def _compiler_params(per_step_bytes, vmem_cap):
    # Size the scoped-VMEM limit to the actual working set (double-buffer +
    # slack), clamped below the physical capacity of the current generation.
    hi = max(vmem_cap - (8 << 20), 32 << 20)
    limit = int(min(max(3 * per_step_bytes + (8 << 20), 32 << 20), hi))
    return pltpu.CompilerParams(dimension_semantics=("parallel",),
                                vmem_limit_bytes=limit)


def _pick_batch_block(N, per_sample_bytes, vmem_cap):
    """Largest divisor of N (<=32) whose per-step working set fits the budget.

    Picking a divisor keeps BN statistics exact (no masked / padded samples).
    On v7x one would additionally prefer an even grid length so both
    TensorCores get equal work; with large training batches (N>=64) that holds
    automatically since Bn is capped at 32.
    """
    budget = max(vmem_cap // 3, 16 << 20)
    bn_max = int(max(1, min(32, budget // max(per_sample_bytes, 1))))
    best = 1
    for d in range(1, min(N, bn_max) + 1):
        if N % d == 0:
            best = d
    return best


# --------------------------------------------------------------------------- kernels
def _conv1_kernel(xg_ref, w_ref, b_ref, *out_refs, stride, use_1x1conv, Ho, Wo):
    """conv1 (3x3, stride s) [+ fused 1x1 shortcut] + per-block BN1 partial sums.

    xg_ref : (Bn, s*s*Hq, Wq, Cin_p)  parity-plane packed, zero-padded input
    w_ref  : (9*Cin_p, Ceff)          conv1 taps (kh, kw, cin); if use_1x1conv
                                      the right Cp columns hold w3 on the
                                      centre-tap rows (fused projection)
    b_ref  : (1, Ceff)                conv1 [| conv3] bias (f32)
    y1_ref : (Bn, Ho, Wo, Cp)         raw conv1 output (pre-BN)
    sc_ref : (Bn, Ho, Wo, Cp)         shortcut branch   [only if use_1x1conv]
    st_ref : (1, 2, Cp)               [sum, sum of squares] for this block (f32)
    """
    if use_1x1conv:
        y1_ref, sc_ref, st_ref = out_refs
    else:
        y1_ref, st_ref = out_refs

    s = stride
    s2 = s * s
    Bn = xg_ref.shape[0]
    Cin_p = xg_ref.shape[-1]
    Cp = y1_ref.shape[-1]
    Hq = xg_ref.shape[1] // s2
    M = Bn * Ho * Wo

    # im2col: 9 unit-stride windows sliced straight from the ref -> one matmul.
    cols = []
    for kh in range(3):
        for kw in range(3):
            plane = (kh % s) * s + (kw % s)
            base = plane * Hq + kh // s
            ow = kw // s
            patch = xg_ref[:, base:base + Ho, ow:ow + Wo, :]
            cols.append(patch.reshape(M, Cin_p))
    cols = jnp.concatenate(cols, axis=-1)                          # (M, 9*Cin_p)
    acc = jnp.dot(cols, w_ref[...], preferred_element_type=jnp.float32)
    acc = acc + b_ref[...]                                         # (M, Ceff) f32

    y1 = acc[:, :Cp]
    # one-pass BN partial stats (reduced across grid blocks outside the kernel)
    st_ref[0] = jnp.concatenate(
        [jnp.sum(y1, axis=0, keepdims=True),
         jnp.sum(y1 * y1, axis=0, keepdims=True)], axis=0)
    y1_ref[...] = y1.reshape(Bn, Ho, Wo, Cp).astype(y1_ref.dtype)

    if use_1x1conv:
        sc_ref[...] = acc[:, Cp:2 * Cp].reshape(Bn, Ho, Wo, Cp).astype(sc_ref.dtype)


def _conv2_kernel(y1_ref, a1_ref, c1_ref, w2_ref, b2_ref,
                  y2_ref, st_ref, ypad_ref, *, Ho, Wo):
    """BN1 (folded scale/shift) + relu + conv2 (3x3, s=1, pad=1) + BN2 partial sums."""
    Bn = y1_ref.shape[0]
    Cp = y1_ref.shape[-1]
    M = Bn * Ho * Wo
    dt = ypad_ref.dtype

    # fused BN1 apply + relu (f32 math)
    a1 = a1_ref[...].reshape(1, 1, 1, Cp)
    c1 = c1_ref[...].reshape(1, 1, 1, Cp)
    z = y1_ref[...].astype(jnp.float32) * a1 + c1
    z = jnp.maximum(z, 0.0)

    # zero only the 1-pixel halo of the scratch; write the interior exactly once
    zrow = jnp.zeros((Bn, 1, Wo + 2, Cp), dt)
    zcol = jnp.zeros((Bn, Ho + 2, 1, Cp), dt)
    ypad_ref[:, 0:1, :, :] = zrow
    ypad_ref[:, Ho + 1:Ho + 2, :, :] = zrow
    ypad_ref[:, :, 0:1, :] = zcol
    ypad_ref[:, :, Wo + 1:Wo + 2, :] = zcol
    ypad_ref[:, 1:Ho + 1, 1:Wo + 1, :] = z.astype(dt)

    cols = []
    for kh in range(3):
        for kw in range(3):
            patch = ypad_ref[:, kh:kh + Ho, kw:kw + Wo, :]
            cols.append(patch.reshape(M, Cp))
    cols = jnp.concatenate(cols, axis=-1)                          # (M, 9*Cp)
    acc = jnp.dot(cols, w2_ref[...], preferred_element_type=jnp.float32)
    acc = acc + b2_ref[...]

    st_ref[0] = jnp.concatenate(
        [jnp.sum(acc, axis=0, keepdims=True),
         jnp.sum(acc * acc, axis=0, keepdims=True)], axis=0)
    y2_ref[...] = acc.reshape(Bn, Ho, Wo, Cp).astype(y2_ref.dtype)


def _bn2_add_relu_kernel(y2_ref, a2_ref, c2_ref, sc_ref, o_ref, *, identity, Ho, Wo):
    """BN2 (folded scale/shift) + residual add + relu.

    identity=True : sc_ref is the halo-padded input block; read its centre
                    window directly (no separate shortcut tensor in HBM).
    """
    Cp = y2_ref.shape[-1]
    a2 = a2_ref[...].reshape(1, 1, 1, Cp)
    c2 = c2_ref[...].reshape(1, 1, 1, Cp)
    z = y2_ref[...].astype(jnp.float32) * a2 + c2
    if identity:
        sc = sc_ref[:, 1:Ho + 1, 1:Wo + 1, :].astype(jnp.float32)
    else:
        sc = sc_ref[...].astype(jnp.float32)
    o_ref[...] = jnp.maximum(z + sc, 0.0).astype(o_ref.dtype)


# --------------------------------------------------------------------------- wrapper
def _make_tap_planes(xpad, stride, Hq, Wq):
    """Pack the padded NHWC input into stride*stride unit-stride parity planes
    stacked along H: out[:, (a*s+b)*Hq + i, j, :] = xpad[:, a + s*i, b + s*j, :]."""
    s = stride
    planes = []
    for a in range(s):
        for b in range(s):
            p = xpad[:, a::s, b::s, :]
            ph = max(0, Hq - p.shape[1])
            pw = max(0, Wq - p.shape[2])
            if ph or pw:
                p = jnp.pad(p, ((0, 0), (0, ph), (0, pw), (0, 0)))
            planes.append(p[:, :Hq, :Wq, :])
    xg = jnp.stack(planes, axis=1)                     # (N, s*s, Hq, Wq, C)
    n, s2, _, _, c = xg.shape
    return xg.reshape(n, s2 * Hq, Wq, c)


def _fold_bn(stat_sum, gamma, beta, m_total, eps):
    """sum/sumsq -> (scale, shift) so bn(x) == x*scale + shift."""
    mean = stat_sum[0] / m_total
    var = jnp.maximum(stat_sum[1] / m_total - mean * mean, 0.0)
    a = gamma * jax.lax.rsqrt(var + eps)
    c = beta - mean * a
    return (a.reshape(1, -1).astype(jnp.float32),
            c.reshape(1, -1).astype(jnp.float32))


def make_params(key, input_channels, num_channels, use_1x1conv):
    """Deterministic synthetic parameters, PyTorch-shaped (OIHW convs, (C,) biases)."""
    ks = jax.random.split(key, 6)
    p = {
        "w1": 0.1 * jax.random.normal(ks[0], (num_channels, input_channels, 3, 3), jnp.float32),
        "b1": 0.1 * jax.random.normal(ks[1], (num_channels,), jnp.float32),
        "w2": 0.1 * jax.random.normal(ks[2], (num_channels, num_channels, 3, 3), jnp.float32),
        "b2": 0.1 * jax.random.normal(ks[3], (num_channels,), jnp.float32),
        "g1": jnp.ones((num_channels,), jnp.float32),
        "beta1": jnp.zeros((num_channels,), jnp.float32),
        "g2": jnp.ones((num_channels,), jnp.float32),
        "beta2": jnp.zeros((num_channels,), jnp.float32),
    }
    if use_1x1conv:
        p["w3"] = 0.1 * jax.random.normal(ks[4], (num_channels, input_channels, 1, 1), jnp.float32)
        p["b3"] = 0.1 * jax.random.normal(ks[5], (num_channels,), jnp.float32)
    return p


def residual_forward(x_nchw, params, *, stride=1, use_1x1conv=False, eps=1e-5,
                     compute_dtype=jnp.bfloat16):
    """Pallas implementation of the Residual block. NCHW in / NCHW (f32) out."""
    N, Cin, H, W = x_nchw.shape
    C = params["w1"].shape[0]
    if stride != 1 and not use_1x1conv:
        raise ValueError("stride != 1 requires use_1x1conv=True (PyTorch's residual "
                         "add would fail otherwise)")
    if not use_1x1conv and Cin != C:
        raise ValueError("identity shortcut needs input_channels == num_channels")

    s = stride
    Ho = (H + 2 - 3) // s + 1
    Wo = (W + 2 - 3) // s + 1
    # halo rows/cols per parity plane: (2 // s) == 2 for s=1, 1 for s=2.
    Hq = Ho + (2 // s)
    Wq = Wo + (2 // s)
    s2 = s * s
    Cin_p = _round_up(Cin, 128)
    Cp = _round_up(C, 128)
    Ceff = (2 * Cp) if use_1x1conv else Cp            # fused [y1 | sc] width
    M1 = Ho * Wo
    m_total = N * M1
    esz = jnp.dtype(compute_dtype).itemsize
    n_out_a = 2 if use_1x1conv else 1

    # ---- pick the per-step sample batch Bn from a generation-aware VMEM budget
    vmem_cap = _vmem_capacity_bytes()
    per_sample = max(
        (s2 * Hq * Wq * Cin_p + 9 * M1 * Cin_p + n_out_a * M1 * Cp) * esz
        + M1 * Ceff * 4,
        (2 * M1 * Cp + (Ho + 2) * (Wo + 2) * Cp + 9 * M1 * Cp) * esz
        + M1 * Cp * 4)
    Bn = _pick_batch_block(N, per_sample, vmem_cap)
    G = N // Bn
    M = Bn * M1

    # ---- layout prep (fused by XLA into the one op feeding pass A):
    #      NCHW -> NHWC, 1-pixel halo pad, channel pad to 128 lanes, parity split.
    x = jnp.transpose(x_nchw, (0, 2, 3, 1)).astype(compute_dtype)
    xpad = jnp.pad(x, ((0, 0), (1, 1), (1, 1), (0, Cin_p - Cin)))
    xg = _make_tap_planes(xpad, s, Hq, Wq)             # (N, s2*Hq, Wq, Cin_p)

    def pad_c(v, c_to):
        return jnp.pad(v, (0, c_to - v.shape[0]))

    # conv1 weight (+ fused 1x1 shortcut on the centre-tap rows of the right half)
    w1k = jnp.transpose(params["w1"], (2, 3, 1, 0))    # (3,3,Cin,C)
    w1k = jnp.pad(w1k, ((0, 0), (0, 0), (0, Cin_p - Cin), (0, Cp - C)))
    if use_1x1conv:
        w3p = jnp.pad(params["w3"][:, :, 0, 0].T, ((0, Cin_p - Cin), (0, Cp - C)))
        w3k = jnp.zeros((3, 3, Cin_p, Cp), w1k.dtype).at[1, 1].set(w3p)
        wA = jnp.concatenate([w1k, w3k], axis=-1)                  # (3,3,Cin_p,2Cp)
        bA = jnp.concatenate([pad_c(params["b1"], Cp), pad_c(params["b3"], Cp)])
    else:
        wA = w1k
        bA = pad_c(params["b1"], Cp)
    wA = wA.reshape(9 * Cin_p, Ceff).astype(compute_dtype)
    bA = bA.reshape(1, Ceff).astype(jnp.float32)

    w2k = jnp.transpose(params["w2"], (2, 3, 1, 0))
    w2k = jnp.pad(w2k, ((0, 0), (0, 0), (0, Cp - C), (0, Cp - C)))
    w2k = w2k.reshape(9 * Cp, Cp).astype(compute_dtype)
    b2p = pad_c(params["b2"], Cp).reshape(1, Cp).astype(jnp.float32)

    g1p = pad_c(params["g1"], Cp).astype(jnp.float32)        # pad gamma with 0 so
    be1p = pad_c(params["beta1"], Cp).astype(jnp.float32)    # padded channels stay 0
    g2p = pad_c(params["g2"], Cp).astype(jnp.float32)
    be2p = pad_c(params["beta2"], Cp).astype(jnp.float32)

    img_spec = pl.BlockSpec((Bn, Ho, Wo, Cp), lambda n: (n, 0, 0, 0))
    st_spec = pl.BlockSpec((1, 2, Cp), lambda n: (n, 0, 0))
    vec_spec = pl.BlockSpec((1, Cp), lambda n: (0, 0))
    vecA_spec = pl.BlockSpec((1, Ceff), lambda n: (0, 0))
    xg_spec = pl.BlockSpec((Bn, s2 * Hq, Wq, Cin_p), lambda n: (n, 0, 0, 0))

    # ============ pass A: conv1 [+ fused shortcut] + per-block BN1 partial sums ====
    step_a = ((Bn * s2 * Hq * Wq * Cin_p + 9 * Cin_p * Ceff
               + n_out_a * M * Cp + 9 * M * Cin_p) * esz
              + (M * Ceff + 2 * Cp) * 4)
    flops_a = 2 * m_total * 9 * Cin_p * Ceff
    hbm_a = ((N * s2 * Hq * Wq * Cin_p + 9 * Cin_p * Ceff
              + n_out_a * N * M1 * Cp) * esz + G * 2 * Cp * 4)

    out_specs_a = ((img_spec, img_spec, st_spec) if use_1x1conv
                   else (img_spec, st_spec))
    out_shape_a = ([jax.ShapeDtypeStruct((N, Ho, Wo, Cp), compute_dtype)] * n_out_a
                   + [jax.ShapeDtypeStruct((G, 2, Cp), jnp.float32)])

    res_a = pl.pallas_call(
        functools.partial(_conv1_kernel, stride=s, use_1x1conv=use_1x1conv, Ho=Ho, Wo=Wo),
        grid=(G,),
        in_specs=[xg_spec, pl.BlockSpec((9 * Cin_p, Ceff), lambda n: (0, 0)), vecA_spec],
        out_specs=out_specs_a,
        out_shape=tuple(out_shape_a),
        compiler_params=_compiler_params(step_a, vmem_cap),
        cost_estimate=pl.CostEstimate(flops=flops_a, transcendentals=0,
                                      bytes_accessed=hbm_a),
    )(xg, wA, bA)
    if use_1x1conv:
        y1, sc, st1 = res_a
    else:
        y1, st1 = res_a
        sc = None

    # tiny cross-block reduction + BN1 folding (plain JAX, megacore-safe)
    a1, c1 = _fold_bn(jnp.sum(st1, axis=0), g1p, be1p, m_total, eps)

    # ====== pass B: BN1 apply + relu + conv2 + per-block BN2 partial sums =========
    step_b = ((2 * M * Cp + 9 * Cp * Cp + Bn * (Ho + 2) * (Wo + 2) * Cp
               + 9 * M * Cp) * esz + (M * Cp + 5 * Cp) * 4)
    flops_b = 2 * m_total * 9 * Cp * Cp
    hbm_b = (2 * N * M1 * Cp + 9 * Cp * Cp) * esz + G * 2 * Cp * 4

    y2, st2 = pl.pallas_call(
        functools.partial(_conv2_kernel, Ho=Ho, Wo=Wo),
        grid=(G,),
        in_specs=[img_spec, vec_spec, vec_spec,
                  pl.BlockSpec((9 * Cp, Cp), lambda n: (0, 0)), vec_spec],
        out_specs=(img_spec, st_spec),
        out_shape=(jax.ShapeDtypeStruct((N, Ho, Wo, Cp), compute_dtype),
                   jax.ShapeDtypeStruct((G, 2, Cp), jnp.float32)),
        scratch_shapes=[pltpu.VMEM((Bn, Ho + 2, Wo + 2, Cp), compute_dtype)],
        compiler_params=_compiler_params(step_b, vmem_cap),
        cost_estimate=pl.CostEstimate(flops=flops_b, transcendentals=0,
                                      bytes_accessed=hbm_b),
    )(y1, a1, c1, w2k, b2p)

    a2, c2 = _fold_bn(jnp.sum(st2, axis=0), g2p, be2p, m_total, eps)

    # ============ pass C: BN2 apply + residual add + relu ==========================
    identity = not use_1x1conv
    if identity:
        sc_arg, sc_spec = xg, xg_spec      # read the input's centre window directly
        sc_elems = s2 * Hq * Wq * Cin_p
    else:
        sc_arg, sc_spec = sc, img_spec
        sc_elems = M1 * Cp
    step_c = (Bn * (2 * M1 * Cp + sc_elems)) * esz + (M * Cp + 2 * Cp) * 4
    flops_c = 4 * m_total * Cp
    hbm_c = N * (2 * M1 * Cp + sc_elems) * esz

    out = pl.pallas_call(
        functools.partial(_bn2_add_relu_kernel, identity=identity, Ho=Ho, Wo=Wo),
        grid=(G,),
        in_specs=[img_spec, vec_spec, vec_spec, sc_spec],
        out_specs=img_spec,
        out_shape=jax.ShapeDtypeStruct((N, Ho, Wo, Cp), compute_dtype),
        compiler_params=_compiler_params(step_c, vmem_cap),
        cost_estimate=pl.CostEstimate(flops=flops_c, transcendentals=0,
                                      bytes_accessed=hbm_c),
    )(y2, a2, c2, sc_arg)

    # channel slice + upcast + NHWC->NCHW: one fused XLA epilogue.
    out = out[..., :C].astype(jnp.float32)
    return jnp.transpose(out, (0, 3, 1, 2))


# --------------------------------------------------------------------------- reference
def residual_reference(x, params, *, stride=1, use_1x1conv=False, eps=1e-5):
    """Pure-JAX reference matching PyTorch training-mode forward (NCHW, f32)."""
    def conv(x, w, b, s, pad):
        y = jax.lax.conv_general_dilated(
            x, w, (s, s), [(pad, pad), (pad, pad)],
            dimension_numbers=("NCHW", "OIHW", "NCHW"))
        return y + b[None, :, None, None]

    def bn(x, g, be):
        mean = x.mean(axis=(0, 2, 3), keepdims=True)
        var = ((x - mean) ** 2).mean(axis=(0, 2, 3), keepdims=True)
        return (x - mean) / jnp.sqrt(var + eps) * g[None, :, None, None] + be[None, :, None, None]

    y = jax.nn.relu(bn(conv(x, params["w1"], params["b1"], stride, 1), params["g1"], params["beta1"]))
    y = bn(conv(y, params["w2"], params["b2"], 1, 1), params["g2"], params["beta2"])
    sc = conv(x, params["w3"], params["b3"], stride, 0) if use_1x1conv else x
    return jax.nn.relu(y + sc)


if __name__ == "__main__":
    key = jax.random.PRNGKey(0)
    N, Cin, H, W = 2, 4, 16, 16
    x = jax.random.normal(key, (N, Cin, H, W), jnp.float32)

    configs = [
        # identity shortcut (like blocks inside b2), full f32 compute
        dict(num_channels=4, use_1x1conv=False, stride=1,
             compute_dtype=jnp.float32, tol=2e-2),
        # 1x1 projection shortcut (fused into conv1), bf16 MXU / f32 accumulation
        dict(num_channels=8, use_1x1conv=True, stride=1,
             compute_dtype=jnp.bfloat16, tol=6e-2),
        # stride-2 downsampling block (first block of b3/b4/b5), bf16 MXU operands
        dict(num_channels=8, use_1x1conv=True, stride=2,
             compute_dtype=jnp.bfloat16, tol=6e-2),
    ]
    for i, cfg in enumerate(configs):
        params = make_params(jax.random.PRNGKey(1 + i), Cin,
                             cfg["num_channels"], cfg["use_1x1conv"])
        y_ker = residual_forward(x, params, stride=cfg["stride"],
                                 use_1x1conv=cfg["use_1x1conv"],
                                 compute_dtype=cfg["compute_dtype"])
        y_ker = jax.block_until_ready(y_ker)
        y_ref = residual_reference(x, params, stride=cfg["stride"],
                                   use_1x1conv=cfg["use_1x1conv"])
        assert y_ker.shape == y_ref.shape, (y_ker.shape, y_ref.shape)
        if not jnp.allclose(y_ker, y_ref, rtol=cfg["tol"], atol=cfg["tol"]):
            raise AssertionError(
                f"mismatch in config {cfg}: "
                f"max abs err {float(jnp.max(jnp.abs(y_ker - y_ref)))}")

    print("KERNEL_OK")
</pallas_src>

<mosaic_0001>
module attributes {stable_mosaic.version = 11 : i64} {
  func.func @_conv1_kernel(%arg0: i32, %arg1: memref<2x18x18x128xf32, #tpu.memory_space<vmem>>, %arg2: memref<1152x128xf32, #tpu.memory_space<vmem>>, %arg3: memref<1x128xf32, #tpu.memory_space<vmem>>, %arg4: memref<2x16x16x128xf32, #tpu.memory_space<vmem>>, %arg5: memref<1x2x128xf32, #tpu.memory_space<vmem>>) attributes {dimension_semantics = [#tpu.dimension_semantics<parallel>], iteration_bounds = array<i64: 1>, scalar_prefetch = 0 : i64, scratch_operands = 0 : i64, tpu.core_type = #tpu.core_type<tc>, window_params = [{transform_indices = @transform_0, window_bounds = array<i64: 2, 18, 18, 128>}, {pipeline_mode = #tpu.pipeline_mode<synchronous>, transform_indices = @transform_1, window_bounds = array<i64: 1152, 128>}, {pipeline_mode = #tpu.pipeline_mode<synchronous>, transform_indices = @transform_2, window_bounds = array<i64: 1, 128>}, {transform_indices = @transform_3, window_bounds = array<i64: 2, 16, 16, 128>}, {transform_indices = @transform_4, window_bounds = array<i64: 1, 2, 128>}]} {
    %c0 = arith.constant 0 : index
    %c0_0 = arith.constant 0 : index
    %c0_1 = arith.constant 0 : index
    %c0_2 = arith.constant 0 : index
    %0 = vector.load %arg1[%c0, %c0_0, %c0_1, %c0_2] : memref<2x18x18x128xf32, #tpu.memory_space<vmem>>, vector<2x16x16x128xf32>
    %1 = vector.shape_cast %0 : vector<2x16x16x128xf32> to vector<512x128xf32>
    %c0_3 = arith.constant 0 : index
    %c0_4 = arith.constant 0 : index
    %c1 = arith.constant 1 : index
    %c0_5 = arith.constant 0 : index
    %2 = vector.load %arg1[%c0_3, %c0_4, %c1, %c0_5] : memref<2x18x18x128xf32, #tpu.memory_space<vmem>>, vector<2x16x16x128xf32>
    %3 = vector.shape_cast %2 : vector<2x16x16x128xf32> to vector<512x128xf32>
    %c0_6 = arith.constant 0 : index
    %c0_7 = arith.constant 0 : index
    %c2 = arith.constant 2 : index
    %c0_8 = arith.constant 0 : index
    %4 = vector.load %arg1[%c0_6, %c0_7, %c2, %c0_8] : memref<2x18x18x128xf32, #tpu.memory_space<vmem>>, vector<2x16x16x128xf32>
    %5 = vector.shape_cast %4 : vector<2x16x16x128xf32> to vector<512x128xf32>
    %c0_9 = arith.constant 0 : index
    %c1_10 = arith.constant 1 : index
    %c0_11 = arith.constant 0 : index
    %c0_12 = arith.constant 0 : index
    %6 = vector.load %arg1[%c0_9, %c1_10, %c0_11, %c0_12] : memref<2x18x18x128xf32, #tpu.memory_space<vmem>>, vector<2x16x16x128xf32>
    %7 = vector.shape_cast %6 : vector<2x16x16x128xf32> to vector<512x128xf32>
    %c0_13 = arith.constant 0 : index
    %c1_14 = arith.constant 1 : index
    %c1_15 = arith.constant 1 : index
    %c0_16 = arith.constant 0 : index
    %8 = vector.load %arg1[%c0_13, %c1_14, %c1_15, %c0_16] : memref<2x18x18x128xf32, #tpu.memory_space<vmem>>, vector<2x16x16x128xf32>
    %9 = vector.shape_cast %8 : vector<2x16x16x128xf32> to vector<512x128xf32>
    %c0_17 = arith.constant 0 : index
    %c1_18 = arith.constant 1 : index
    %c2_19 = arith.constant 2 : index
    %c0_20 = arith.constant 0 : index
    %10 = vector.load %arg1[%c0_17, %c1_18, %c2_19, %c0_20] : memref<2x18x18x128xf32, #tpu.memory_space<vmem>>, vector<2x16x16x128xf32>
    %11 = vector.shape_cast %10 : vector<2x16x16x128xf32> to vector<512x128xf32>
    %c0_21 = arith.constant 0 : index
    %c2_22 = arith.constant 2 : index
    %c0_23 = arith.constant 0 : index
    %c0_24 = arith.constant 0 : index
    %12 = vector.load %arg1[%c0_21, %c2_22, %c0_23, %c0_24] : memref<2x18x18x128xf32, #tpu.memory_space<vmem>>, vector<2x16x16x128xf32>
    %13 = vector.shape_cast %12 : vector<2x16x16x128xf32> to vector<512x128xf32>
    %c0_25 = arith.constant 0 : index
    %c2_26 = arith.constant 2 : index
    %c1_27 = arith.constant 1 : index
    %c0_28 = arith.constant 0 : index
    %14 = vector.load %arg1[%c0_25, %c2_26, %c1_27, %c0_28] : memref<2x18x18x128xf32, #tpu.memory_space<vmem>>, vector<2x16x16x128xf32>
    %15 = vector.shape_cast %14 : vector<2x16x16x128xf32> to vector<512x128xf32>
    %c0_29 = arith.constant 0 : index
    %c2_30 = arith.constant 2 : index
    %c2_31 = arith.constant 2 : index
    %c0_32 = arith.constant 0 : index
    %16 = vector.load %arg1[%c0_29, %c2_30, %c2_31, %c0_32] : memref<2x18x18x128xf32, #tpu.memory_space<vmem>>, vector<2x16x16x128xf32>
    %17 = vector.shape_cast %16 : vector<2x16x16x128xf32> to vector<512x128xf32>
    %18 = tpu.concatenate %1, %3, %5, %7, %9, %11, %13, %15, %17 in 1 : vector<512x128xf32>, vector<512x128xf32>, vector<512x128xf32>, vector<512x128xf32>, vector<512x128xf32>, vector<512x128xf32>, vector<512x128xf32>, vector<512x128xf32>, vector<512x128xf32> -> vector<512x1152xf32>
    %c0_33 = arith.constant 0 : index
    %c0_34 = arith.constant 0 : index
    %19 = vector.load %arg2[%c0_33, %c0_34] : memref<1152x128xf32, #tpu.memory_space<vmem>>, vector<1152x128xf32>
    %cst = arith.constant dense<0.000000e+00> : vector<512x128xf32>
    %20 = tpu.matmul %18, %19, %cst {dimension_numbers = #tpu.dot_dimension_numbers<[1], [0], [0], [1], [0, 0, 1, 1], [], []>} : vector<512x1152xf32>, vector<1152x128xf32>, vector<512x128xf32> -> vector<512x128xf32>
    %c0_35 = arith.constant 0 : index
    %c0_36 = arith.constant 0 : index
    %21 = vector.load %arg3[%c0_35, %c0_36] : memref<1x128xf32, #tpu.memory_space<vmem>>, vector<1x128xf32>
    %22 = vector.broadcast %21 : vector<1x128xf32> to vector<512x128xf32>
    %23 = arith.addf %20, %22 : vector<512x128xf32>
    %cst_37 = arith.constant dense<0.000000e+00> : vector<128xf32>
    %24 = vector.multi_reduction <add>, %23, %cst_37 [0] : vector<512x128xf32> to vector<128xf32>
    %25 = vector.shape_cast %24 : vector<128xf32> to vector<1x128xf32>
    %26 = arith.mulf %23, %23 : vector<512x128xf32>
    %cst_38 = arith.constant dense<0.000000e+00> : vector<128xf32>
    %27 = vector.multi_reduction <add>, %26, %cst_38 [0] : vector<512x128xf32> to vector<128xf32>
    %28 = vector.shape_cast %27 : vector<128xf32> to vector<1x128xf32>
    %29 = tpu.concatenate %25, %28 in 0 : vector<1x128xf32>, vector<1x128xf32> -> vector<2x128xf32>
    %c0_39 = arith.constant 0 : index
    %c0_40 = arith.constant 0 : index
    %c0_41 = arith.constant 0 : index
    %30 = vector.load %arg5[%c0_39, %c0_40, %c0_41] : memref<1x2x128xf32, #tpu.memory_space<vmem>>, vector<1x2x128xf32>
    %31 = vector.shape_cast %30 : vector<1x2x128xf32> to vector<2x128xf32>
    %32 = vector.shape_cast %29 : vector<2x128xf32> to vector<1x2x128xf32>
    tpu.vector_store %arg5[%c0_39, %c0_40, %c0_41], %32 {strides = array<i32>} : memref<1x2x128xf32, #tpu.memory_space<vmem>>, vector<1x2x128xf32>,
    %33 = vector.shape_cast %23 : vector<512x128xf32> to vector<2x16x16x128xf32>
    %c0_42 = arith.constant 0 : index
    %c0_43 = arith.constant 0 : index
    %c0_44 = arith.constant 0 : index
    %c0_45 = arith.constant 0 : index
    %34 = vector.load %arg4[%c0_42, %c0_43, %c0_44, %c0_45] : memref<2x16x16x128xf32, #tpu.memory_space<vmem>>, vector<2x16x16x128xf32>
    tpu.vector_store %arg4[%c0_42, %c0_43, %c0_44, %c0_45], %33 {strides = array<i32>} : memref<2x16x16x128xf32, #tpu.memory_space<vmem>>, vector<2x16x16x128xf32>,
    return
  }
  func.func @transform_0(%arg0: i32) -> (i32, i32, i32, i32) {
    %c0_i32 = arith.constant 0 : i32
    %c0_i32_0 = arith.constant 0 : i32
    %c0_i32_1 = arith.constant 0 : i32
    %c0_i32_2 = arith.constant 0 : i32
    return %arg0, %c0_i32, %c0_i32_0, %c0_i32_1 : i32, i32, i32, i32
  }
  func.func @transform_1(%arg0: i32) -> (i32, i32) {
    %c0_i32 = arith.constant 0 : i32
    %c0_i32_0 = arith.constant 0 : i32
    %c0_i32_1 = arith.constant 0 : i32
    return %c0_i32, %c0_i32_0 : i32, i32
  }
  func.func @transform_2(%arg0: i32) -> (i32, i32) {
    %c0_i32 = arith.constant 0 : i32
    %c0_i32_0 = arith.constant 0 : i32
    %c0_i32_1 = arith.constant 0 : i32
    return %c0_i32, %c0_i32_0 : i32, i32
  }
  func.func @transform_3(%arg0: i32) -> (i32, i32, i32, i32) {
    %c0_i32 = arith.constant 0 : i32
    %c0_i32_0 = arith.constant 0 : i32
    %c0_i32_1 = arith.constant 0 : i32
    %c0_i32_2 = arith.constant 0 : i32
    return %arg0, %c0_i32, %c0_i32_0, %c0_i32_1 : i32, i32, i32, i32
  }
  func.func @transform_4(%arg0: i32) -> (i32, i32, i32) {
    %c0_i32 = arith.constant 0 : i32
    %c0_i32_0 = arith.constant 0 : i32
    %c0_i32_1 = arith.constant 0 : i32
    return %arg0, %c0_i32, %c0_i32_0 : i32, i32, i32
  }
}

</mosaic_0001>

<bundles_post_ra>
// kernel: tpu_custom_call.1
= control target key start
LH: loop header
LB: loop body
LE: loop exit
PB: predicated region body
PF: predicated region fallthrough
CT: control target
= control target key end

     0   :  { %10 = vsyncpa [#allocation3], 0  ;;  %s5725_s0 = inlined_call_operand.vmem [shape: f32[2,18,18,128], index: 0, kind: input, shape index: {}]   ;;  %s5726_s1 = inlined_call_operand.vmem [shape: f32[1152,128], index: 1, kind: input, shape index: {}]   ;;  %s5727_s2 = inlined_call_operand.vmem [shape: f32[1,128], index: 2, kind: input, shape index: {}]   ;;  %s5728_s3 = inlined_call_operand.hbm [shape: f32[2,16,16,128], index: 3, kind: output, shape index: {0}]   ;;  %s5729_s4 = inlined_call_operand.hbm [shape: f32[1,2,128], index: 4, kind: output, shape index: {1}]  }
   0x1   :  { %v611_v0 = vld [vmem:[%s5726_s1 + $0x78] sm:$0xff]  ;;  %v610_v1 = vld [vmem:[%s5726_s1 + $0x70] sm:$0xff]  ;;  %v609_v2 = vld [vmem:[%s5726_s1 + $0x68] sm:$0xff] }
   0x2   :  { %3312 = vmatpush.msra.mxu1 %v611_v0  ;;  %3313 = vmatpush.msra.mxu2 %v611_v0  ;;  %v608_v3 = vld [vmem:[%s5726_s1 + $0x60] sm:$0xff]  ;;  %v607_v4 = vld [vmem:[%s5726_s1 + $0x58] sm:$0xff]  ;;  %v606_v5 = vld [vmem:[%s5726_s1 + $0x50] sm:$0xff] }
   0x3   :  { %3314 = vmatpush.msra.mxu3 %v611_v0  ;;  %744 = vmatpush.msra.mxu0 %v611_v0 }
   0x4   :  { %3315 = vmatpush.msra.mxu1 %v610_v1  ;;  %3316 = vmatpush.msra.mxu2 %v610_v1 }
   0x5   :  { %3317 = vmatpush.msra.mxu3 %v610_v1  ;;  %745 = vmatpush.msra.mxu0 %v610_v1 }
   0x6   :  { %3318 = vmatpush.msra.mxu1 %v609_v2  ;;  %3319 = vmatpush.msra.mxu2 %v609_v2 }
   0x7   :  { %3320 = vmatpush.msra.mxu3 %v609_v2  ;;  %746 = vmatpush.msra.mxu0 %v609_v2 }
   0x8   :  { %3321 = vmatpush.msra.mxu1 %v608_v3  ;;  %3322 = vmatpush.msra.mxu2 %v608_v3 }
   0x9   :  { %3323 = vmatpush.msra.mxu3 %v608_v3  ;;  %747 = vmatpush.msra.mxu0 %v608_v3 }
   0xa   :  { %3324 = vmatpush.msra.mxu1 %v607_v4  ;;  %3325 = vmatpush.msra.mxu2 %v607_v4 }
   0xb   :  { %11 = vsyncpa [#allocation5], 0  ;;  %3326 = vmatpush.msra.mxu3 %v607_v4  ;;  %v605_v6 = vld [vmem:[%s5726_s1 + $0x48] sm:$0xff]  ;;  %748 = vmatpush.msra.mxu0 %v607_v4  ;;  %v604_v7 = vld [vmem:[%s5726_s1 + $0x40] sm:$0xff]  ;;  %s2900_s24 = sshll.u32 %s5728_s3, 4  ;;  %s3420_s25 = smov 128   ;;  %s2901_s24 = int_to_ptr.hbm [resolvable:$true] %s2900_s24 }
   0xc   :  { %3327 = vmatpush.msra.mxu1 %v606_v5  ;;  %3328 = vmatpush.msra.mxu2 %v606_v5  ;;  %v603_v8 = vld [vmem:[%s5726_s1 + $0x38] sm:$0xff]  ;;  %v602_v9 = vld [vmem:[%s5726_s1 + $0x30] sm:$0xff]  ;;  %v601_v10 = vld [vmem:[%s5726_s1 + $0x28] sm:$0xff]  ;;  %s3421_s26 = smov 8   ;;  %s3422_s3 = smov [#allocation4]   ;;  %vm2827_vm0 = vcmask 1040384  }
   0xd   :  { %3329 = vmatpush.msra.mxu3 %v606_v5  ;;  %749 = vmatpush.msra.mxu0 %v606_v5  ;;  %v600_v11 = vld [vmem:[%s5726_s1 + $0x20] sm:$0xff]  ;;  %v599_v12 = vld [vmem:[%s5726_s1 + $0x18] sm:$0xff]  ;;  %v598_v13 = vld [vmem:[%s5726_s1 + $0x10] sm:$0xff]  ;;  %s2912_s27 = sshll.u32 %s3422_s3, 4  ;;  %s2914_s30 = sshll.u32 %s5729_s4, 4  ;;  %s2913_s27 = int_to_ptr.vmem [resolvable:$true] %s2912_s27  ;;  %s2915_s30 = int_to_ptr.hbm [resolvable:$true] %s2914_s30 }
   0xe   :  { %3330 = vmatpush.msra.mxu1 %v605_v6  ;;  %3331 = vmatpush.msra.mxu2 %v605_v6  ;;  %v597_v14 = vld [vmem:[%s5726_s1 + $0x8] sm:$0xff]  ;;  %v596_v15 = vld [vmem:[%s5726_s1] sm:$0xff]  ;;  %v50_v17 = vld [vmem:[%s5725_s0 + $0x1b0] sm:$0xff] }
   0xf   :  { %3332 = vmatpush.msra.mxu3 %v605_v6  ;;  %750 = vmatpush.msra.mxu0 %v605_v6  ;;  %v34_v16 = vld [vmem:[%s5725_s0 + $0xc0] sm:$0xff]  ;;  %v643_v18 = vld [vmem:[%s5726_s1 + $0x178] sm:$0xff]  ;;  %v66_v19 = vld [vmem:[%s5725_s0 + $0x270] sm:$0xff] }
  0x10   :  { %3333 = vmatpush.msra.mxu1 %v604_v7  ;;  %3334 = vmatpush.msra.mxu2 %v604_v7  ;;  %v627_v20 = vld [vmem:[%s5726_s1 + $0xf8] sm:$0xff]  ;;  %v642_v22 = vld [vmem:[%s5726_s1 + $0x170] sm:$0xff]  ;;  %v18_v24 = vld [vmem:[%s5725_s0] sm:$0xff] }
  0x11   :  { %3335 = vmatpush.msra.mxu3 %v604_v7  ;;  %751 = vmatpush.msra.mxu0 %v604_v7  ;;  %v659_v21 = vld [vmem:[%s5726_s1 + $0x1f8] sm:$0xff]  ;;  %v626_v23 = vld [vmem:[%s5726_s1 + $0xf0] sm:$0xff]  ;;  %v641_v27 = vld [vmem:[%s5726_s1 + $0x168] sm:$0xff] }
  0x12   :  { %3336 = vmatpush.msra.mxu1 %v603_v8  ;;  %3337 = vmatpush.msra.mxu2 %v603_v8  ;;  %v658_v25 = vld [vmem:[%s5726_s1 + $0x1f0] sm:$0xff]  ;;  %v675_v26 = vld [vmem:[%s5726_s1 + $0x278] sm:$0xff]  ;;  %v657_v28 = vld [vmem:[%s5726_s1 + $0x1e8] sm:$0xff] }
  0x13   :  { %3338 = vmatpush.msra.mxu3 %v603_v8  ;;  %752 = vmatpush.msra.mxu0 %v603_v8  ;;  %v625_v29 = vld [vmem:[%s5726_s1 + $0xe8] sm:$0xff]  ;;  %v51_v31 = vld [vmem:[%s5725_s0 + $0x1b8] sm:$0xff]  ;;  %v674_v32 = vld [vmem:[%s5726_s1 + $0x270] sm:$0xff] }
  0x14   :  { %3339 = vmatpush.msra.mxu1 %v602_v9  ;;  %3340 = vmatpush.msra.mxu2 %v602_v9  ;;  %v35_v30 = vld [vmem:[%s5725_s0 + $0xc8] sm:$0xff]  ;;  %v640_v33 = vld [vmem:[%s5726_s1 + $0x160] sm:$0xff]  ;;  %v67_v34 = vld [vmem:[%s5725_s0 + $0x278] sm:$0xff] }
  0x15   :  { %3341 = vmatpush.msra.mxu3 %v602_v9  ;;  %753 = vmatpush.msra.mxu0 %v602_v9  ;;  %v624_v35 = vld [vmem:[%s5726_s1 + $0xe0] sm:$0xff]  ;;  %v673_v37 = vld [vmem:[%s5726_s1 + $0x268] sm:$0xff]  ;;  %v639_v38 = vld [vmem:[%s5726_s1 + $0x158] sm:$0xff] }
  0x16   :  { %3342 = vmatpush.msra.mxu1 %v601_v10  ;;  %3343 = vmatpush.msra.mxu2 %v601_v10  ;;  %v656_v36 = vld [vmem:[%s5726_s1 + $0x1e0] sm:$0xff]  ;;  %v623_v39 = vld [vmem:[%s5726_s1 + $0xd8] sm:$0xff]  ;;  %v19_v40 = vld [vmem:[%s5725_s0 + $0x8] sm:$0xff] }
  0x17   :  { %3344 = vmatpush.msra.mxu3 %v601_v10  ;;  %754 = vmatpush.msra.mxu0 %v601_v10  ;;  %v655_v41 = vld [vmem:[%s5726_s1 + $0x1d8] sm:$0xff]  ;;  %v672_v42 = vld [vmem:[%s5726_s1 + $0x260] sm:$0xff]  ;;  %v638_v43 = vld [vmem:[%s5726_s1 + $0x150] sm:$0xff] }
  0x18   :  { %3345 = vmatpush.msra.mxu1 %v600_v11  ;;  %3346 = vmatpush.msra.mxu2 %v600_v11  ;;  %v654_v44 = vld [vmem:[%s5726_s1 + $0x1d0] sm:$0xff]  ;;  %v36_v46 = vld [vmem:[%s5725_s0 + $0xd8] sm:$0xff]  ;;  %v52_v47 = vld [vmem:[%s5725_s0 + $0x1c8] sm:$0xff] }
  0x19   :  { %3347 = vmatpush.msra.mxu3 %v600_v11  ;;  %755 = vmatpush.msra.mxu0 %v600_v11  ;;  %v622_v45 = vld [vmem:[%s5726_s1 + $0xd0] sm:$0xff]  ;;  %v671_v48 = vld [vmem:[%s5726_s1 + $0x258] sm:$0xff]  ;;  %v68_v49 = vld [vmem:[%s5725_s0 + $0x288] sm:$0xff] }
  0x1a   :  { %3348 = vmatpush.msra.mxu1 %v599_v12  ;;  %3349 = vmatpush.msra.mxu2 %v599_v12  ;;  %v637_v50 = vld [vmem:[%s5726_s1 + $0x148] sm:$0xff]  ;;  %v3604_v51 = vld [vmem:[%s5725_s0 + $0x18] sm:$0xff]  ;;  %v670_v53 = vld [vmem:[%s5726_s1 + $0x250] sm:$0xff] }
  0x1b   :  { %3350 = vmatpush.msra.mxu3 %v599_v12  ;;  %756 = vmatpush.msra.mxu0 %v599_v12  ;;  %v653_v52 = vld [vmem:[%s5726_s1 + $0x1c8] sm:$0xff]  ;;  %v37_v55 = vld [vmem:[%s5725_s0 + $0xe0] sm:$0xff]  ;;  %v53_v56 = vld [vmem:[%s5725_s0 + $0x1d0] sm:$0xff] }
  0x1c   :  { %3351 = vmatpush.msra.mxu1 %v598_v13  ;;  %3352 = vmatpush.msra.mxu2 %v598_v13  ;;  %v621_v54 = vld [vmem:[%s5726_s1 + $0xc8] sm:$0xff]  ;;  %v69_v57 = vld [vmem:[%s5725_s0 + $0x290] sm:$0xff]  ;;  %v636_v58 = vld [vmem:[%s5726_s1 + $0x140] sm:$0xff] }
  0x1d   :  { %3353 = vmatpush.msra.mxu3 %v598_v13  ;;  %757 = vmatpush.msra.mxu0 %v598_v13  ;;  %v3631_v59 = vld [vmem:[%s5725_s0 + $0x20] sm:$0xff]  ;;  %v669_v61 = vld [vmem:[%s5726_s1 + $0x248] sm:$0xff]  ;;  %v38_v63 = vld [vmem:[%s5725_s0 + $0xf0] sm:$0xff] }
  0x1e   :  { %3354 = vmatpush.msra.mxu1 %v597_v14  ;;  %3355 = vmatpush.msra.mxu2 %v597_v14  ;;  %v652_v60 = vld [vmem:[%s5726_s1 + $0x1c0] sm:$0xff]  ;;  %v635_v2 = vld [vmem:[%s5726_s1 + $0x138] sm:$0xff]  ;;  %v3658_v3 = vld [vmem:[%s5725_s0 + $0x30] sm:$0xff] }
  0x1f   :  { %3356 = vmatpush.msra.mxu3 %v597_v14  ;;  %758 = vmatpush.msra.mxu0 %v597_v14  ;;  %v620_v62 = vld [vmem:[%s5726_s1 + $0xc0] sm:$0xff]  ;;  %v651_v4 = vld [vmem:[%s5726_s1 + $0x1b8] sm:$0xff]  ;;  %v55_v8 = vld [vmem:[%s5725_s0 + $0x1e8] sm:$0xff] }
  0x20   :  { %3357 = vmatpush.msra.mxu1 %v596_v15  ;;  %3358 = vmatpush.msra.mxu2 %v596_v15  ;;  %v54_v0 = vld [vmem:[%s5725_s0 + $0x1e0] sm:$0xff]  ;;  %v619_v6 = vld [vmem:[%s5726_s1 + $0xb8] sm:$0xff]  ;;  %v71_v9 = vld [vmem:[%s5725_s0 + $0x2a8] sm:$0xff] }
  0x21   :  { %808 = vmatmul.f32.vlgmr.msra.gmra.mxu1 %v34_v16  ;;  %856 = vmatmul.f32.vlgmr.msra.gmra.mxu2 %v50_v17  ;;  %v70_v1 = vld [vmem:[%s5725_s0 + $0x2a0] sm:$0xff]  ;;  %v39_v7 = vld [vmem:[%s5725_s0 + $0xf8] sm:$0xff]  ;;  %v634_v10 = vld [vmem:[%s5726_s1 + $0x130] sm:$0xff] }
  0x22   :  { %1162 = vmatpush.msrb.mxu2 %v643_v18  ;;  %3359 = vmatpush.msra.mxu3 %v596_v15  ;;  %v668_v5 = vld [vmem:[%s5726_s1 + $0x240] sm:$0xff]  ;;  %v3685_v11 = vld [vmem:[%s5725_s0 + $0x38] sm:$0xff]  ;;  %v650_v12 = vld [vmem:[%s5726_s1 + $0x1b0] sm:$0xff] }
  0x23   :  { %904 = vmatmul.f32.vlgmr.msra.gmra.mxu3 %v66_v19  ;;  %953 = vmatpush.msrb.mxu1 %v627_v20  ;;  %v667_v13 = vld [vmem:[%s5726_s1 + $0x238] sm:$0xff]  ;;  %v618_v14 = vld [vmem:[%s5726_s1 + $0xb0] sm:$0xff]  ;;  %v633_v18 = vld [vmem:[%s5726_s1 + $0x128] sm:$0xff] }
  0x24   :  { %1371 = vmatpush.msrb.mxu3 %v659_v21  ;;  %1163 = vmatpush.msrb.mxu2 %v642_v22  ;;  %v56_v16 = vld [vmem:[%s5725_s0 + $0x1f8] sm:$0xff]  ;;  %v3712_v19 = vld [vmem:[%s5725_s0 + $0x48] sm:$0xff]  ;;  %v666_v21 = vld [vmem:[%s5726_s1 + $0x230] sm:$0xff] }
  0x25   :  { %759 = vmatpush.msra.mxu0 %v596_v15  ;;  %954 = vmatpush.msrb.mxu1 %v626_v23  ;;  %v40_v15 = vld [vmem:[%s5725_s0 + $0x108] sm:$0xff]  ;;  %v72_v17 = vld [vmem:[%s5725_s0 + $0x2b8] sm:$0xff]  ;;  %v41_v23 = vld [vmem:[%s5725_s0 + $0x110] sm:$0xff] }
  0x26   :  { %760 = vmatmul.f32.vlgmr.msra.gmra.mxu0 %v18_v24  ;;  %1372 = vmatpush.msrb.mxu3 %v658_v25  ;;  %v649_v20 = vld [vmem:[%s5726_s1 + $0x1a8] sm:$0xff]  ;;  %v57_v24 = vld [vmem:[%s5725_s0 + $0x200] sm:$0xff] }
  0x27   :  { %1580 = vmatpush.msrb.mxu0 %v675_v26  ;;  %1164 = vmatpush.msrb.mxu2 %v641_v27  ;;  %v617_v22 = vld [vmem:[%s5726_s1 + $0xa8] sm:$0xff]  ;;  %v73_v25 = vld [vmem:[%s5725_s0 + $0x2c0] sm:$0xff]  ;;  %v3739_v27 = vld [vmem:[%s5725_s0 + $0x50] sm:$0xff] }
  0x28   :  { %1373 = vmatpush.msrb.mxu3 %v657_v28  ;;  %955 = vmatpush.msrb.mxu1 %v625_v29  ;;  %v632_v26 = vld [vmem:[%s5726_s1 + $0x120] sm:$0xff]  ;;  %v665_v29 = vld [vmem:[%s5726_s1 + $0x228] sm:$0xff] }
  0x29   :  { %811 = vmatmul.f32.gmra.mxu1 %v35_v30  ;;  %859 = vmatmul.f32.gmra.mxu2 %v51_v31  ;;  %v648_v28 = vld [vmem:[%s5726_s1 + $0x1a0] sm:$0xff] }
  0x2a   :  { %1581 = vmatpush.msrb.mxu0 %v674_v32  ;;  %1165 = vmatpush.msrb.mxu2 %v640_v33  ;;  %v616_v30 = vld [vmem:[%s5726_s1 + $0xa0] sm:$0xff]  ;;  %v58_v32 = vld [vmem:[%s5725_s0 + $0x210] sm:$0xff] }
  0x2b   :  { %907 = vmatmul.f32.gmra.mxu3 %v67_v34  ;;  %956 = vmatpush.msrb.mxu1 %v624_v35  ;;  %v42_v31 = vld [vmem:[%s5725_s0 + $0x120] sm:$0xff]  ;;  %v74_v33 = vld [vmem:[%s5725_s0 + $0x2d0] sm:$0xff]  ;;  %v631_v34 = vld [vmem:[%s5726_s1 + $0x118] sm:$0xff] }
  0x2c   :  { %1374 = vmatpush.msrb.mxu3 %v656_v36  ;;  %1582 = vmatpush.msrb.mxu0 %v673_v37  ;;  %v3766_v35 = vld [vmem:[%s5725_s0 + $0x60] sm:$0xff]  ;;  %v647_v36 = vld [vmem:[%s5726_s1 + $0x198] sm:$0xff] }
  0x2d   :  { %1166 = vmatpush.msrb.mxu2 %v639_v38  ;;  %957 = vmatpush.msrb.mxu1 %v623_v39  ;;  %v664_v37 = vld [vmem:[%s5726_s1 + $0x220] sm:$0xff]  ;;  %v615_v38 = vld [vmem:[%s5726_s1 + $0x98] sm:$0xff]  ;;  %v43_v39 = vld [vmem:[%s5725_s0 + $0x128] sm:$0xff] }
  0x2e   :  { %763 = vmatmul.f32.gmra.mxu0 %v19_v40  ;;  %1375 = vmatpush.msrb.mxu3 %v655_v41  ;;  %v59_v40 = vld [vmem:[%s5725_s0 + $0x218] sm:$0xff] }
  0x2f   :  { %1583 = vmatpush.msrb.mxu0 %v672_v42  ;;  %1167 = vmatpush.msrb.mxu2 %v638_v43  ;;  %v75_v41 = vld [vmem:[%s5725_s0 + $0x2d8] sm:$0xff]  ;;  %v630_v42 = vld [vmem:[%s5726_s1 + $0x110] sm:$0xff]  ;;  %v3793_v43 = vld [vmem:[%s5725_s0 + $0x68] sm:$0xff] }
  0x30   :  { %1376 = vmatpush.msrb.mxu3 %v654_v44  ;;  %958 = vmatpush.msrb.mxu1 %v622_v45  ;;  %v646_v44 = vld [vmem:[%s5726_s1 + $0x190] sm:$0xff]  ;;  %v663_v45 = vld [vmem:[%s5726_s1 + $0x218] sm:$0xff] }
  0x31   :  { %814 = vmatmul.f32.gmra.mxu1 %v36_v46  ;;  %862 = vmatmul.f32.gmra.mxu2 %v52_v47  ;;  %v614_v46 = vld [vmem:[%s5726_s1 + $0x90] sm:$0xff]  ;;  %v44_v47 = vld [vmem:[%s5725_s0 + $0x138] sm:$0xff] }
  0x32   :  { %1584 = vmatpush.msrb.mxu0 %v671_v48  ;;  %1168 = vmatpush.msrb.mxu2 %v637_v50  ;;  %v60_v48 = vld [vmem:[%s5725_s0 + $0x228] sm:$0xff] }
  0x33   :  { %910 = vmatmul.f32.gmra.mxu3 %v68_v49  ;;  %959 = vmatpush.msrb.mxu1 %v621_v54  ;;  %v76_v49 = vld [vmem:[%s5725_s0 + $0x2e8] sm:$0xff]  ;;  %v662_v54 = vld [vmem:[%s5726_s1 + $0x210] sm:$0xff] }
  0x34   :  { %1377 = vmatpush.msrb.mxu3 %v653_v52  ;;  %1585 = vmatpush.msrb.mxu0 %v670_v53  ;;  %v629_v50 = vld [vmem:[%s5726_s1 + $0x108] sm:$0xff]  ;;  %v3820_v52 = vld [vmem:[%s5725_s0 + $0x78] sm:$0xff] }
  0x35   :  { %1169 = vmatpush.msrb.mxu2 %v636_v58  ;;  %960 = vmatpush.msrb.mxu1 %v620_v62  ;;  %v645_v53 = vld [vmem:[%s5726_s1 + $0x188] sm:$0xff]  ;;  %v77_v58 = vld [vmem:[%s5725_s0 + $0x2f0] sm:$0xff]  ;;  %v644_v62 = vld [vmem:[%s5726_s1 + $0x180] sm:$0xff] }
  0x36   :  { %766 = vmatmul.f32.gmra.mxu0 %v3604_v51  ;;  %1378 = vmatpush.msrb.mxu3 %v652_v60  ;;  %v628_v60 = vld [vmem:[%s5726_s1 + $0x100] sm:$0xff] }
  0x37   :  { %1586 = vmatpush.msrb.mxu0 %v669_v61  ;;  %1170 = vmatpush.msrb.mxu2 %v635_v2  ;;  %v3847_v61 = vld [vmem:[%s5725_s0 + $0x80] sm:$0xff] }
  0x38   :  { %1379 = vmatpush.msrb.mxu3 %v651_v4  ;;  %961 = vmatpush.msrb.mxu1 %v619_v6  ;;  %v62_v2 = vld [vmem:[%s5725_s0 + $0x240] sm:$0xff]  ;;  %v3874_v6 = vld [vmem:[%s5725_s0 + $0x90] sm:$0xff] }
  0x39   :  { %817 = vmatmul.f32.gmra.mxu1 %v37_v55  ;;  %865 = vmatmul.f32.gmra.mxu2 %v53_v56  ;;  %v613_v55 = vld [vmem:[%s5726_s1 + $0x88] sm:$0xff]  ;;  %v45_v56 = vld [vmem:[%s5725_s0 + $0x140] sm:$0xff] }
  0x3a   :  { %1587 = vmatpush.msrb.mxu0 %v668_v5  ;;  %1171 = vmatpush.msrb.mxu2 %v634_v10  ;;  %v78_v4 = vld [vmem:[%s5725_s0 + $0x300] sm:$0xff]  ;;  %v707_v5 = vld [vmem:[%s5726_s1 + $0x378] sm:$0xff] }
  0x3b   :  { %913 = vmatmul.f32.gmra.mxu3 %v69_v57  ;;  %962 = vmatpush.msrb.mxu1 %v618_v14  ;;  %v61_v57 = vld [vmem:[%s5725_s0 + $0x230] sm:$0xff]  ;;  %v47_v10 = vld [vmem:[%s5725_s0 + $0x158] sm:$0xff] }
  0x3c   :  { %1380 = vmatpush.msrb.mxu3 %v650_v12  ;;  %1588 = vmatpush.msrb.mxu0 %v667_v13  ;;  %v63_v12 = vld [vmem:[%s5725_s0 + $0x248] sm:$0xff]  ;;  %v3898_v14 = vld [vmem:[%s5725_s0 + $0x98] sm:$0xff] }
  0x3d   :  { %1172 = vmatpush.msrb.mxu2 %v633_v18  ;;  %963 = vmatpush.msrb.mxu1 %v617_v22  ;;  %v79_v13 = vld [vmem:[%s5725_s0 + $0x308] sm:$0xff]  ;;  %v80_v18 = vld [vmem:[%s5725_s0 + $0x318] sm:$0xff]  ;;  %v65_v22 = vld [vmem:[%s5725_s0 + $0x260] sm:$0xff] }
  0x3e   :  { %769 = vmatmul.f32.gmra.mxu0 %v3631_v59  ;;  %1381 = vmatpush.msrb.mxu3 %v649_v20  ;;  %v3916_v20 = vld [vmem:[%s5725_s0 + $0xa8] sm:$0xff] }
  0x3f   :  { %1589 = vmatpush.msrb.mxu0 %v666_v21  ;;  %1173 = vmatpush.msrb.mxu2 %v632_v26  ;;  %v49_v21 = vld [vmem:[%s5725_s0 + $0x170] sm:$0xff]  ;;  %v82_v26 = vld [vmem:[%s5725_s0 + $0x1] sm:$0xff] }
  0x40   :  { %1382 = vmatpush.msrb.mxu3 %v648_v28  ;;  %964 = vmatpush.msrb.mxu1 %v616_v30  ;;  %v146_v28 = vld [vmem:[%s5725_s0 + $0x2] sm:$0xff] }
  0x41   :  { %820 = vmatmul.f32.gmra.mxu1 %v38_v63  ;;  %868 = vmatmul.f32.gmra.mxu2 %v54_v0  ;;  %v661_v63 = vld [vmem:[%s5726_s1 + $0x208] sm:$0xff]  ;;  %v612_v0 = vld [vmem:[%s5726_s1 + $0x80] sm:$0xff] }
  0x42   :  { %1590 = vmatpush.msrb.mxu0 %v665_v29  ;;  %1174 = vmatpush.msrb.mxu2 %v631_v34  ;;  %v706_v29 = vld [vmem:[%s5726_s1 + $0x370] sm:$0xff] }
  0x43   :  { %916 = vmatmul.f32.gmra.mxu3 %v70_v1  ;;  %965 = vmatpush.msrb.mxu1 %v615_v38  ;;  %v46_v1 = vld [vmem:[%s5725_s0 + $0x150] sm:$0xff] }
  0x44   :  { %1383 = vmatpush.msrb.mxu3 %v647_v36  ;;  %1591 = vmatpush.msrb.mxu0 %v664_v37  ;;  %v690_v34 = vld [vmem:[%s5726_s1 + $0x2f0] sm:$0xff] }
  0x45   :  { %1175 = vmatpush.msrb.mxu2 %v630_v42  ;;  %966 = vmatpush.msrb.mxu1 %v614_v46  ;;  %v83_v37 = vld [vmem:[%s5725_s0 + $0x9] sm:$0xff] }
  0x46   :  { %772 = vmatmul.f32.gmra.mxu0 %v3658_v3  ;;  %1384 = vmatpush.msrb.mxu3 %v646_v44  ;;  %v147_v38 = vld [vmem:[%s5725_s0 + $0xa] sm:$0xff] }
  0x47   :  { %1592 = vmatpush.msrb.mxu0 %v663_v45  ;;  %1176 = vmatpush.msrb.mxu2 %v629_v50 }
  0x48   :  { %1385 = vmatpush.msrb.mxu3 %v645_v53  ;;  %967 = vmatpush.msrb.mxu1 %v613_v55  ;;  %v149_v53 = vld [vmem:[%s5725_s0 + $0x22] sm:$0xff] }
  0x49   :  { %823 = vmatmul.f32.gmra.mxu1 %v39_v7  ;;  %871 = vmatmul.f32.gmra.mxu2 %v55_v8  ;;  %v660_v7 = vld [vmem:[%s5726_s1 + $0x200] sm:$0xff]  ;;  %v723_v8 = vld [vmem:[%s5726_s1 + $0x3f8] sm:$0xff] }
  0x4a   :  { %1593 = vmatpush.msrb.mxu0 %v662_v54  ;;  %1177 = vmatpush.msrb.mxu2 %v628_v60  ;;  %v2995_v54 = vld [vmem:[%s5725_s0 + $0x39] sm:$0xff] }
  0x4b   :  { %919 = vmatmul.f32.gmra.mxu3 %v71_v9  ;;  %968 = vmatpush.msrb.mxu1 %v612_v0  ;;  %v691_v9 = vld [vmem:[%s5726_s1 + $0x2f8] sm:$0xff] }
  0x4c   :  { %1386 = vmatpush.msrb.mxu3 %v644_v62  ;;  %1594 = vmatpush.msrb.mxu0 %v661_v63  ;;  %v2996_v62 = vld [vmem:[%s5725_s0 + $0x49] sm:$0xff] }
  0x4d   :  { %1998 = vmatpush.msra.mxu2 %v707_v5  ;;  %1789 = vmatpush.msra.mxu1 %v691_v9  ;;  %v721_v63 = vld [vmem:[%s5726_s1 + $0x3e8] sm:$0xff] }
  0x4e   :  { %775 = vmatmul.f32.gmra.mxu0 %v3685_v11  ;;  %2207 = vmatpush.msra.mxu3 %v723_v8  ;;  %v737_v8 = vld [vmem:[%s5726_s1 + $0x468] sm:$0xff] }
  0x4f   :  { %1595 = vmatpush.msrb.mxu0 %v660_v7  ;;  %1999 = vmatpush.msra.mxu2 %v706_v29  ;;  %v2997_v7 = vld [vmem:[%s5725_s0 + $0x51] sm:$0xff]  ;;  %v154_v29 = vld [vmem:[%s5725_s0 + $0x62] sm:$0xff] }
  0x50   :  { %1790 = vmatpush.msra.mxu1 %v690_v34  ;;  %v720_v34 = vld [vmem:[%s5726_s1 + $0x3e0] sm:$0xff] }
  0x51   :  { %826 = vmatmul.f32.gmra.mxu1 %v40_v15  ;;  %874 = vmatmul.f32.gmra.mxu2 %v56_v16  ;;  %v739_v15 = vld [vmem:[%s5726_s1 + $0x478] sm:$0xff]  ;;  %v48_v16 = vld [vmem:[%s5725_s0 + $0x168] sm:$0xff] }
  0x52   :  { %2416 = vmatpush.msra.mxu0 %v739_v15  ;;  %v2998_v15 = vld [vmem:[%s5725_s0 + $0x61] sm:$0xff] }
  0x53   :  { %922 = vmatmul.f32.gmra.mxu3 %v72_v17  ;;  %v64_v17 = vld [vmem:[%s5725_s0 + $0x258] sm:$0xff] }
  0x56   :  { %778 = vmatmul.f32.gmra.mxu0 %v3712_v19 }
  0x59   :  { %829 = vmatmul.f32.gmra.mxu1 %v41_v23  ;;  %877 = vmatmul.f32.gmra.mxu2 %v57_v24  ;;  %v81_v23 = vld [vmem:[%s5725_s0 + $0x320] sm:$0xff]  ;;  %v3931_v24 = vld [vmem:[%s5725_s0 + $0xb0] sm:$0xff] }
  0x5b   :  { %925 = vmatmul.f32.gmra.mxu3 %v73_v25 }
  0x5e   :  { %781 = vmatmul.f32.gmra.mxu0 %v3739_v27 }
  0x61   :  { %832 = vmatmul.f32.gmra.mxu1 %v42_v31  ;;  %880 = vmatmul.f32.gmra.mxu2 %v58_v32  ;;  %v2992_v31 = vld [vmem:[%s5725_s0 + $0x19] sm:$0xff]  ;;  %v722_v32 = vld [vmem:[%s5726_s1 + $0x3f0] sm:$0xff] }
  0x62   :  { %2208 = vmatpush.msra.mxu3 %v722_v32  ;;  %v3000_v32 = vld [vmem:[%s5725_s0 + $0x79] sm:$0xff] }
  0x63   :  { %928 = vmatmul.f32.gmra.mxu3 %v74_v33 }
  0x64   :  { %2209 = vmatpush.msra.mxu3 %v721_v63  ;;  %v3002_v63 = vld [vmem:[%s5725_s0 + $0x91] sm:$0xff] }
  0x66   :  { %784 = vmatmul.f32.gmra.mxu0 %v3766_v35  ;;  %2210 = vmatpush.msra.mxu3 %v720_v34  ;;  %v719_v34 = vld [vmem:[%s5726_s1 + $0x3d8] sm:$0xff] }
  0x68   :  { %2211 = vmatpush.msra.mxu3 %v719_v34 }
  0x69   :  { %835 = vmatmul.f32.gmra.mxu1 %v43_v39  ;;  %883 = vmatmul.f32.gmra.mxu2 %v59_v40  ;;  %v2993_v40 = vld [vmem:[%s5725_s0 + $0x21] sm:$0xff] }
  0x6b   :  { %931 = vmatmul.f32.gmra.mxu3 %v75_v41  ;;  %v738_v41 = vld [vmem:[%s5726_s1 + $0x470] sm:$0xff] }
  0x6c   :  { %2417 = vmatpush.msra.mxu0 %v738_v41  ;;  %v155_v41 = vld [vmem:[%s5725_s0 + $0x6a] sm:$0xff] }
  0x6e   :  { %787 = vmatmul.f32.gmra.mxu0 %v3793_v43 }
  0x6f   :  { %2418 = vmatpush.msra.mxu0 %v737_v8  ;;  %v157_v8 = vld [vmem:[%s5725_s0 + $0x82] sm:$0xff] }
  0x71   :  { %838 = vmatmul.f32.gmra.mxu1 %v44_v47  ;;  %886 = vmatmul.f32.gmra.mxu2 %v60_v48  ;;  %v2994_v47 = vld [vmem:[%s5725_s0 + $0x31] sm:$0xff] }
  0x73   :  { %934 = vmatmul.f32.gmra.mxu3 %v76_v49 }
  0x76   :  { %790 = vmatmul.f32.gmra.mxu0 %v3820_v52 }
  0x79   :  { %841 = vmatmul.f32.gmra.mxu1 %v45_v56  ;;  %889 = vmatmul.f32.gmra.mxu2 %v61_v57 }
  0x7b   :  { %937 = vmatmul.f32.gmra.mxu3 %v77_v58  ;;  %v150_v58 = vld [vmem:[%s5725_s0 + $0x32] sm:$0xff] }
  0x7e   :  { %793 = vmatmul.f32.gmra.mxu0 %v3847_v61 }
  0x81   :  { %844 = vmatmul.f32.gmra.mxu1 %v46_v1  ;;  %892 = vmatmul.f32.gmra.mxu2 %v62_v2  ;;  %v689_v1 = vld [vmem:[%s5726_s1 + $0x2e8] sm:$0xff] }
  0x82   :  { %1791 = vmatpush.msra.mxu1 %v689_v1 }
  0x83   :  { %940 = vmatmul.f32.gmra.mxu3 %v78_v4  ;;  %v151_v4 = vld [vmem:[%s5725_s0 + $0x3a] sm:$0xff] }
  0x86   :  { %796 = vmatmul.f32.gmra.mxu0 %v3874_v6 }
  0x89   :  { %847 = vmatmul.f32.gmra.mxu1 %v47_v10  ;;  %895 = vmatmul.f32.gmra.mxu2 %v63_v12 }
  0x8b   :  { %943 = vmatmul.f32.gmra.mxu3 %v79_v13 }
  0x8e   :  { %799 = vmatmul.f32.gmra.mxu0 %v3898_v14 }
  0x91   :  { %850 = vmatmul.f32.gmra.mxu1 %v48_v16  ;;  %898 = vmatmul.f32.gmra.mxu2 %v64_v17 }
  0x93   :  { %946 = vmatmul.f32.gmra.mxu3 %v80_v18 }
  0x96   :  { %802 = vmatmul.f32.gmra.mxu0 %v3916_v20 }
  0x99   :  { %853 = vmatmul.f32.gmra.mxu1 %v49_v21  ;;  %901 = vmatmul.f32.gmra.mxu2 %v65_v22  ;;  %v153_v21 = vld [vmem:[%s5725_s0 + $0x52] sm:$0xff]  ;;  %v2999_v22 = vld [vmem:[%s5725_s0 + $0x69] sm:$0xff] }
  0x9b   :  { %949 = vmatmul.f32.gmra.mxu3 %v81_v23 }
  0x9e   :  { %v3933_v25 = vpop.f32.mrf.mxu1  ;;  %805 = vmatmul.f32.gmra.mxu0 %v3931_v24 }
  0xa1   :  { %969 = vmatmul.f32.vlgmr.msrb.gmra.mxu1 %v82_v26  ;;  %1178 = vmatmul.f32.vlgmr.msrb.gmra.mxu2 %v146_v28 }
  0xa3   :  { %1387 = vmatmul.f32.vlgmr.msrb.gmra.mxu3 %v3604_v51  ;;  %v3946_v30 = vpop.f32.mrf.mxu0 }
  0xa4   :  { %v3954_v33 = vpop.f32.mrf.mxu2 }
  0xa6   :  { %v3959_v36 = vpop.f32.mrf.mxu1  ;;  %v3961_v51 = vpop.f32.mrf.mxu3  ;;  %1596 = vmatmul.f32.vlgmr.msrb.gmra.mxu0 %v2992_v31 }
  0xa7   :  { %5730 = vst [vmem:[#allocation8_spill] sm:$0xff] %v3961_v51 }
  0xa9   :  { %972 = vmatmul.f32.gmra.mxu1 %v83_v37  ;;  %1181 = vmatmul.f32.gmra.mxu2 %v147_v38  ;;  %v688_v38 = vld [vmem:[%s5726_s1 + $0x2e0] sm:$0xff] }
  0xaa   :  { %1792 = vmatpush.msra.mxu1 %v688_v38 }
  0xab   :  { %1390 = vmatmul.f32.gmra.mxu3 %v3631_v59  ;;  %v3970_v39 = vpop.f32.mrf.mxu0  ;;  %v148_v59 = vld [vmem:[%s5725_s0 + $0x1a] sm:$0xff] }
  0xac   :  { %v3978_v42 = vpop.f32.mrf.mxu2 }
  0xae   :  { %v3980_v44 = vpop.f32.mrf.mxu1  ;;  %v3982_v45 = vpop.f32.mrf.mxu3  ;;  %1599 = vmatmul.f32.gmra.mxu0 %v2993_v40 }
  0xaf   :  { %5731 = vst [vmem:[#allocation9_spill] sm:$0xff] %v3982_v45  ;;  %v3009_v45 = vld [vmem:[%s5725_s0 + $0xe1] sm:$0xff] }
  0xb1   :  { %975 = vmatmul.f32.gmra.mxu1 %v2992_v31  ;;  %1184 = vmatmul.f32.gmra.mxu2 %v148_v59 }
  0xb3   :  { %1393 = vmatmul.f32.gmra.mxu3 %v3658_v3  ;;  %v3988_v46 = vpop.f32.mrf.mxu0 }
  0xb4   :  { %v3993_v48 = vpop.f32.mrf.mxu2 }
  0xb6   :  { %v3995_v49 = vpop.f32.mrf.mxu1  ;;  %v3997_v50 = vpop.f32.mrf.mxu3  ;;  %1602 = vmatmul.f32.gmra.mxu0 %v2994_v47 }
  0xb7   :  { %5732 = vst [vmem:[#allocation10_spill] sm:$0xff] %v3997_v50 }
  0xb9   :  { %978 = vmatmul.f32.gmra.mxu1 %v2993_v40  ;;  %1187 = vmatmul.f32.gmra.mxu2 %v149_v53  ;;  %v736_v53 = vld [vmem:[%s5726_s1 + $0x460] sm:$0xff] }
  0xba   :  { %2419 = vmatpush.msra.mxu0 %v736_v53  ;;  %v159_v53 = vld [vmem:[%s5725_s0 + $0x9a] sm:$0xff] }
  0xbb   :  { %1396 = vmatmul.f32.gmra.mxu3 %v3685_v11  ;;  %v4003_v3 = vpop.f32.mrf.mxu0  ;;  %v705_v11 = vld [vmem:[%s5726_s1 + $0x368] sm:$0xff] }
  0xbc   :  { %v4008_v55 = vpop.f32.mrf.mxu2  ;;  %2000 = vmatpush.msra.mxu2 %v705_v11 }
  0xbe   :  { %v4010_v56 = vpop.f32.mrf.mxu1  ;;  %v4012_v57 = vpop.f32.mrf.mxu3  ;;  %1605 = vmatmul.f32.gmra.mxu0 %v2995_v54 }
  0xbf   :  { %5733 = vst [vmem:[#allocation11_spill] sm:$0xff] %v4012_v57 }
  0xc1   :  { %981 = vmatmul.f32.gmra.mxu1 %v2994_v47  ;;  %1190 = vmatmul.f32.gmra.mxu2 %v150_v58  ;;  %v3001_v47 = vld [vmem:[%s5725_s0 + $0x81] sm:$0xff] }
  0xc3   :  { %1399 = vmatmul.f32.gmra.mxu3 %v3712_v19  ;;  %v4021_v60 = vpop.f32.mrf.mxu0 }
  0xc4   :  { %v4029_v0 = vpop.f32.mrf.mxu2 }
  0xc6   :  { %v4034_v2 = vpop.f32.mrf.mxu1  ;;  %v4036_v19 = vpop.f32.mrf.mxu3  ;;  %1608 = vmatmul.f32.gmra.mxu0 %v2996_v62 }
  0xc7   :  { %5734 = vst [vmem:[#allocation12_spill] sm:$0xff] %v4036_v19  ;;  %v718_v19 = vld [vmem:[%s5726_s1 + $0x3d0] sm:$0xff] }
  0xc8   :  { %2212 = vmatpush.msra.mxu3 %v718_v19 }
  0xc9   :  { %984 = vmatmul.f32.gmra.mxu1 %v2995_v54  ;;  %1193 = vmatmul.f32.gmra.mxu2 %v151_v4 }
  0xcb   :  { %1402 = vmatmul.f32.gmra.mxu3 %v3739_v27  ;;  %v4042_v5 = vpop.f32.mrf.mxu0  ;;  %v152_v27 = vld [vmem:[%s5725_s0 + $0x4a] sm:$0xff] }
  0xcc   :  { %v4050_v9 = vpop.f32.mrf.mxu2 }
  0xce   :  { %v4052_v10 = vpop.f32.mrf.mxu1  ;;  %v4054_v12 = vpop.f32.mrf.mxu3  ;;  %1611 = vmatmul.f32.gmra.mxu0 %v2997_v7 }
  0xcf   :  { %5735 = vst [vmem:[#allocation13_spill] sm:$0xff] %v4054_v12  ;;  %v3008_v12 = vld [vmem:[%s5725_s0 + $0xd9] sm:$0xff] }
  0xd1   :  { %987 = vmatmul.f32.gmra.mxu1 %v2996_v62  ;;  %1196 = vmatmul.f32.gmra.mxu2 %v152_v27  ;;  %v3003_v27 = vld [vmem:[%s5725_s0 + $0x99] sm:$0xff] }
  0xd3   :  { %1405 = vmatmul.f32.gmra.mxu3 %v3766_v35  ;;  %v4060_v13 = vpop.f32.mrf.mxu0 }
  0xd4   :  { %v4065_v16 = vpop.f32.mrf.mxu2 }
  0xd6   :  { %v4067_v17 = vpop.f32.mrf.mxu1  ;;  %v4069_v18 = vpop.f32.mrf.mxu3  ;;  %1614 = vmatmul.f32.gmra.mxu0 %v2998_v15 }
  0xd7   :  { %5736 = vst [vmem:[#allocation14_spill] sm:$0xff] %v4069_v18 }
  0xd9   :  { %990 = vmatmul.f32.gmra.mxu1 %v2997_v7  ;;  %1199 = vmatmul.f32.gmra.mxu2 %v153_v21 }
  0xdb   :  { %1408 = vmatmul.f32.gmra.mxu3 %v3793_v43  ;;  %v4075_v35 = vpop.f32.mrf.mxu0  ;;  %v704_v43 = vld [vmem:[%s5726_s1 + $0x360] sm:$0xff] }
  0xdc   :  { %v4080_v23 = vpop.f32.mrf.mxu2  ;;  %2001 = vmatpush.msra.mxu2 %v704_v43 }
  0xde   :  { %v4082_v26 = vpop.f32.mrf.mxu1  ;;  %v4084_v28 = vpop.f32.mrf.mxu3  ;;  %1617 = vmatmul.f32.gmra.mxu0 %v2999_v22 }
  0xdf   :  { %5737 = vst [vmem:[#allocation15_spill] sm:$0xff] %v4084_v28 }
  0xe1   :  { %993 = vmatmul.f32.gmra.mxu1 %v2998_v15  ;;  %1202 = vmatmul.f32.gmra.mxu2 %v154_v29  ;;  %v158_v29 = vld [vmem:[%s5725_s0 + $0x92] sm:$0xff] }
  0xe3   :  { %1411 = vmatmul.f32.gmra.mxu3 %v3820_v52  ;;  %v4093_v31 = vpop.f32.mrf.mxu0 }
  0xe4   :  { %v4101_v37 = vpop.f32.mrf.mxu2 }
  0xe6   :  { %v4106_v40 = vpop.f32.mrf.mxu1  ;;  %v4108_v52 = vpop.f32.mrf.mxu3  ;;  %1620 = vmatmul.f32.gmra.mxu0 %v3000_v32 }
  0xe7   :  { %5738 = vst [vmem:[#allocation16_spill] sm:$0xff] %v4108_v52  ;;  %v162_v52 = vld [vmem:[%s5725_s0 + $0xc2] sm:$0xff] }
  0xe9   :  { %996 = vmatmul.f32.gmra.mxu1 %v2999_v22  ;;  %1205 = vmatmul.f32.gmra.mxu2 %v155_v41  ;;  %v687_v41 = vld [vmem:[%s5726_s1 + $0x2d8] sm:$0xff] }
  0xea   :  { %1793 = vmatpush.msra.mxu1 %v687_v41 }
  0xeb   :  { %1414 = vmatmul.f32.gmra.mxu3 %v3847_v61  ;;  %v4114_v59 = vpop.f32.mrf.mxu0  ;;  %v156_v61 = vld [vmem:[%s5725_s0 + $0x7a] sm:$0xff] }
  0xec   :  { %v4122_v54 = vpop.f32.mrf.mxu2 }
  0xee   :  { %v4124_v58 = vpop.f32.mrf.mxu1  ;;  %v4126_v11 = vpop.f32.mrf.mxu3  ;;  %1623 = vmatmul.f32.gmra.mxu0 %v3001_v47 }
  0xef   :  { %5739 = vst [vmem:[#allocation17_spill] sm:$0xff] %v4126_v11 }
  0xf1   :  { %999 = vmatmul.f32.gmra.mxu1 %v3000_v32  ;;  %1208 = vmatmul.f32.gmra.mxu2 %v156_v61  ;;  %v3004_v32 = vld [vmem:[%s5725_s0 + $0xa9] sm:$0xff] }
  0xf3   :  { %1417 = vmatmul.f32.gmra.mxu3 %v3874_v6  ;;  %v4132_v62 = vpop.f32.mrf.mxu0 }
  0xf4   :  { %v4137_v1 = vpop.f32.mrf.mxu2 }
  0xf6   :  { %v4139_v4 = vpop.f32.mrf.mxu1  ;;  %v4141_v7 = vpop.f32.mrf.mxu3  ;;  %1626 = vmatmul.f32.gmra.mxu0 %v3002_v63 }
  0xf7   :  { %5740 = vst [vmem:[#allocation18_spill] sm:$0xff] %v4141_v7 }
  0xf9   :  { %1002 = vmatmul.f32.gmra.mxu1 %v3001_v47  ;;  %1211 = vmatmul.f32.gmra.mxu2 %v157_v8  ;;  %v735_v8 = vld [vmem:[%s5726_s1 + $0x458] sm:$0xff] }
  0xfa   :  { %2420 = vmatpush.msra.mxu0 %v735_v8 }
  0xfb   :  { %1420 = vmatmul.f32.gmra.mxu3 %v3898_v14  ;;  %v4147_v6 = vpop.f32.mrf.mxu0  ;;  %v703_v14 = vld [vmem:[%s5726_s1 + $0x358] sm:$0xff] }
  0xfc   :  { %v4152_v15 = vpop.f32.mrf.mxu2  ;;  %2002 = vmatpush.msra.mxu2 %v703_v14 }
  0xfe   :  { %v4154_v21 = vpop.f32.mrf.mxu1  ;;  %v4156_v22 = vpop.f32.mrf.mxu3  ;;  %1629 = vmatmul.f32.gmra.mxu0 %v3003_v27 }
  0xff   :  { %5741 = vst [vmem:[#allocation19_spill] sm:$0xff] %v4156_v22  ;;  %v161_v22 = vld [vmem:[%s5725_s0 + $0xb2] sm:$0xff] }
 0x101   :  { %1005 = vmatmul.f32.gmra.mxu1 %v3002_v63  ;;  %1214 = vmatmul.f32.gmra.mxu2 %v158_v29  ;;  %v3005_v63 = vld [vmem:[%s5725_s0 + $0xb1] sm:$0xff] }
 0x103   :  { %1423 = vmatmul.f32.gmra.mxu3 %v3916_v20  ;;  %v4165_v43 = vpop.f32.mrf.mxu0 }
 0x104   :  { %v4173_v38 = vpop.f32.mrf.mxu2 }
 0x106   :  { %v4178_v47 = vpop.f32.mrf.mxu1  ;;  %v4180_v20 = vpop.f32.mrf.mxu3  ;;  %1632 = vmatmul.f32.gmra.mxu0 %v3004_v32 }
 0x107   :  { %5742 = vst [vmem:[#allocation20_spill] sm:$0xff] %v4180_v20 }
 0x109   :  { %1008 = vmatmul.f32.gmra.mxu1 %v3003_v27  ;;  %1217 = vmatmul.f32.gmra.mxu2 %v159_v53  ;;  %v2942_v27 = vld [vmem:[%s5725_s0 + $0xc0] sm:$0xff] }
 0x10a   :  { %v3006_v53 = vld [vmem:[%s5725_s0 + $0xc1] sm:$0xff] }
 0x10b   :  { %1426 = vmatmul.f32.gmra.mxu3 %v3931_v24  ;;  %v4186_v61 = vpop.f32.mrf.mxu0  ;;  %v160_v24 = vld [vmem:[%s5725_s0 + $0xaa] sm:$0xff] }
 0x10c   :  { %v4194_v29 = vpop.f32.mrf.mxu2 }
 0x10e   :  { %v4196_v14 = vpop.f32.mrf.mxu1  ;;  %v4198_v34 = vpop.f32.mrf.mxu3  ;;  %1635 = vmatmul.f32.gmra.mxu0 %v3005_v63 }
 0x10f   :  { %5743 = vst [vmem:[#allocation21_spill] sm:$0xff] %v4198_v34 }
 0x111   :  { %1011 = vmatmul.f32.gmra.mxu1 %v3004_v32  ;;  %1220 = vmatmul.f32.gmra.mxu2 %v160_v24  ;;  %v2943_v32 = vld [vmem:[%s5725_s0 + $0xc8] sm:$0xff] }
 0x113   :  { %1429 = vmatmul.f32.gmra.mxu3 %v2942_v27  ;;  %v4206_v41 = vpop.f32.mrf.mxu0  ;;  %v3007_v27 = vld [vmem:[%s5725_s0 + $0xc9] sm:$0xff] }
 0x114   :  { %v4211_v8 = vpop.f32.mrf.mxu2 }
 0x116   :  { %v4213_v34 = vpop.f32.mrf.mxu1  ;;  %v4215_v20 = vpop.f32.mrf.mxu3  ;;  %1638 = vmatmul.f32.gmra.mxu0 %v3006_v53 }
 0x117   :  { %5744 = vst [vmem:[#allocation22_spill] sm:$0xff] %v4215_v20 }
 0x119   :  { %1014 = vmatmul.f32.gmra.mxu1 %v3005_v63  ;;  %1223 = vmatmul.f32.gmra.mxu2 %v161_v22  ;;  %v4238_v22 = vld [vmem:[%s5727_s2] ss:$0 sm:$0xff]  ;;  %v2944_v63 = vld [vmem:[%s5725_s0 + $0xd8] sm:$0xff] }
 0x11b   :  { %1432 = vmatmul.f32.gmra.mxu3 %v2943_v32  ;;  %v4223_v24 = vpop.f32.mrf.mxu0  ;;  %v762_v32 = vadd.f32 %v4238_v22, %v3946_v30 }
 0x11c   :  { %v4228_v7 = vpop.f32.mrf.mxu2 }
 0x11e   :  { %v4230_v20 = vpop.f32.mrf.mxu3  ;;  %v970_v11 = vpop.f32.mrf.mxu1  ;;  %1641 = vmatmul.f32.gmra.mxu0 %v3007_v27 }
 0x11f   :  { %5745 = vst [vmem:[#allocation23_spill] sm:$0xff] %v4230_v20  ;;  %v702_v20 = vld [vmem:[%s5726_s1 + $0x350] sm:$0xff]  ;;  %v971_v28 = vadd.f32 %v970_v11, %v762_v32  ;;  %v2945_v32 = vld [vmem:[%s5725_s0 + $0xe0] sm:$0xff] }
 0x120   :  { %2003 = vmatpush.msra.mxu2 %v702_v20  ;;  %v163_v11 = vld [vmem:[%s5725_s0 + $0xca] sm:$0xff] }
 0x121   :  { %1017 = vmatmul.f32.gmra.mxu1 %v3006_v53  ;;  %1226 = vmatmul.f32.gmra.mxu2 %v162_v52  ;;  %v686_v52 = vld [vmem:[%s5726_s1 + $0x2d0] sm:$0xff] }
 0x122   :  { %1794 = vmatpush.msra.mxu1 %v686_v52 }
 0x123   :  { %1435 = vmatmul.f32.gmra.mxu3 %v2944_v63  ;;  %v1597_v18 = vpop.f32.mrf.mxu0 }
 0x124   :  { %v1179_v57 = vpop.f32.mrf.mxu2 }
 0x125   :  { %v1180_v30 = vadd.f32 %v1179_v57, %v971_v28  ;;  %v765_v57 = vadd.f32 %v4238_v22, %v3970_v39 }
 0x126   :  { %v973_v53 = vpop.f32.mrf.mxu1  ;;  %v1388_v20 = vpop.f32.mrf.mxu3  ;;  %1644 = vmatmul.f32.gmra.mxu0 %v3008_v12 }
 0x127   :  { %v1389_v63 = vadd.f32 %v1388_v20, %v1180_v30  ;;  %v974_v28 = vadd.f32 %v973_v53, %v765_v57  ;;  %v734_v30 = vld [vmem:[%s5726_s1 + $0x450] sm:$0xff] }
 0x128   :  { %2421 = vmatpush.msra.mxu0 %v734_v30  ;;  %v2946_v53 = vld [vmem:[%s5725_s0 + $0xf0] sm:$0xff] }
 0x129   :  { %v4265_v19 = vadd.f32 %v1597_v18, %v1389_v63  ;;  %1020 = vmatmul.f32.gmra.mxu1 %v3007_v27  ;;  %1229 = vmatmul.f32.gmra.mxu2 %v163_v11  ;;  %v164_v18 = vld [vmem:[%s5725_s0 + $0xda] sm:$0xff]  ;;  %v768_v11 = vadd.f32 %v4238_v22, %v3988_v46 }
 0x12b   :  { %5746 = vst [vmem:[#allocation24_spill] sm:$0xff] %v4265_v19  ;;  %1438 = vmatmul.f32.gmra.mxu3 %v2945_v32  ;;  %v1600_v50 = vpop.f32.mrf.mxu0  ;;  %v165_v19 = vld [vmem:[%s5725_s0 + $0xe2] sm:$0xff] }
 0x12c   :  { %v1182_v52 = vpop.f32.mrf.mxu2 }
 0x12d   :  { %v1183_v20 = vadd.f32 %v1182_v52, %v974_v28  ;;  %v3010_v28 = vld [vmem:[%s5725_s0 + $0xf1] sm:$0xff] }
 0x12e   :  { %v976_v51 = vpop.f32.mrf.mxu1  ;;  %v1391_v39 = vpop.f32.mrf.mxu3  ;;  %1647 = vmatmul.f32.gmra.mxu0 %v3009_v45 }
 0x12f   :  { %v1392_v27 = vadd.f32 %v1391_v39, %v1183_v20  ;;  %v977_v32 = vadd.f32 %v976_v51, %v768_v11  ;;  %v2947_v51 = vld [vmem:[%s5725_s0 + $0xf8] sm:$0xff] }
 0x131   :  { %v4281_v63 = vadd.f32 %v1600_v50, %v1392_v27  ;;  %1023 = vmatmul.f32.gmra.mxu1 %v3008_v12  ;;  %1232 = vmatmul.f32.gmra.mxu2 %v164_v18  ;;  %v771_v50 = vadd.f32 %v4238_v22, %v4003_v3 }
 0x133   :  { %1441 = vmatmul.f32.gmra.mxu3 %v2946_v53  ;;  %v1603_v57 = vpop.f32.mrf.mxu0  ;;  %v3011_v53 = vld [vmem:[%s5725_s0 + $0xf9] sm:$0xff] }
 0x134   :  { %v1185_v30 = vpop.f32.mrf.mxu2 }
 0x135   :  { %v1186_v52 = vadd.f32 %v1185_v30, %v977_v32 }
 0x136   :  { %v979_v20 = vpop.f32.mrf.mxu1  ;;  %v1394_v39 = vpop.f32.mrf.mxu3  ;;  %1650 = vmatmul.f32.gmra.mxu0 %v3010_v28 }
 0x137   :  { %v1395_v46 = vadd.f32 %v1394_v39, %v1186_v52  ;;  %v980_v18 = vadd.f32 %v979_v20, %v771_v50  ;;  %v166_v39 = vld [vmem:[%s5725_s0 + $0xf2] sm:$0xff]  ;;  %v701_v20 = vld [vmem:[%s5726_s1 + $0x348] sm:$0xff] }
 0x138   :  { %2004 = vmatpush.msra.mxu2 %v701_v20  ;;  %v3012_v50 = vld [vmem:[%s5725_s0 + $0x109] sm:$0xff] }
 0x139   :  { %v4294_v12 = vadd.f32 %v1603_v57, %v1395_v46  ;;  %1026 = vmatmul.f32.gmra.mxu1 %v3009_v45  ;;  %1235 = vmatmul.f32.gmra.mxu2 %v165_v19  ;;  %v2948_v45 = vld [vmem:[%s5725_s0 + $0x108] sm:$0xff]  ;;  %v774_v19 = vadd.f32 %v4238_v22, %v4021_v60 }
 0x13a   :  { %v717_v60 = vld [vmem:[%s5726_s1 + $0x3c8] sm:$0xff] }
 0x13b   :  { %1444 = vmatmul.f32.gmra.mxu3 %v2947_v51  ;;  %v1606_v27 = vpop.f32.mrf.mxu0 }
 0x13c   :  { %v1188_v11 = vpop.f32.mrf.mxu2  ;;  %2213 = vmatpush.msra.mxu3 %v717_v60  ;;  %v733_v60 = vld [vmem:[%s5726_s1 + $0x448] sm:$0xff] }
 0x13d   :  { %v1189_v32 = vadd.f32 %v1188_v11, %v980_v18  ;;  %2422 = vmatpush.msra.mxu0 %v733_v60 }
 0x13e   :  { %v982_v30 = vpop.f32.mrf.mxu1  ;;  %v1397_v52 = vpop.f32.mrf.mxu3  ;;  %1653 = vmatmul.f32.gmra.mxu0 %v3011_v53 }
 0x13f   :  { %v1398_v3 = vadd.f32 %v1397_v52, %v1189_v32  ;;  %v983_v46 = vadd.f32 %v982_v30, %v774_v19  ;;  %v167_v30 = vld [vmem:[%s5725_s0 + $0xfa] sm:$0xff] }
 0x141   :  { %v4307_v57 = vadd.f32 %v1606_v27, %v1398_v3  ;;  %1029 = vmatmul.f32.gmra.mxu1 %v3010_v28  ;;  %1238 = vmatmul.f32.gmra.mxu2 %v166_v39  ;;  %v685_v27 = vld [vmem:[%s5726_s1 + $0x2c8] sm:$0xff]  ;;  %v2949_v39 = vld [vmem:[%s5725_s0 + $0x110] sm:$0xff]  ;;  %v777_v3 = vadd.f32 %v4238_v22, %v4042_v5 }
 0x142   :  { %1795 = vmatpush.msra.mxu1 %v685_v27 }
 0x143   :  { %1447 = vmatmul.f32.gmra.mxu3 %v2948_v45  ;;  %v1609_v51 = vpop.f32.mrf.mxu0 }
 0x144   :  { %v1191_v18 = vpop.f32.mrf.mxu2 }
 0x145   :  { %v1192_v28 = vadd.f32 %v1191_v18, %v983_v46  ;;  %v3013_v46 = vld [vmem:[%s5725_s0 + $0x111] sm:$0xff] }
 0x146   :  { %v985_v11 = vpop.f32.mrf.mxu1  ;;  %v1400_v32 = vpop.f32.mrf.mxu3  ;;  %1656 = vmatmul.f32.gmra.mxu0 %v3012_v50 }
 0x147   :  { %v1401_v52 = vadd.f32 %v1400_v32, %v1192_v28  ;;  %v986_v19 = vadd.f32 %v985_v11, %v777_v3  ;;  %v2950_v11 = vld [vmem:[%s5725_s0 + $0x120] sm:$0xff]  ;;  %v780_v32 = vadd.f32 %v4238_v22, %v4060_v13 }
 0x148   :  { %v3014_v3 = vld [vmem:[%s5725_s0 + $0x121] sm:$0xff] }
 0x149   :  { %v4329_v45 = vadd.f32 %v1609_v51, %v1401_v52  ;;  %1032 = vmatmul.f32.gmra.mxu1 %v3011_v53  ;;  %1241 = vmatmul.f32.gmra.mxu2 %v167_v30  ;;  %v168_v53 = vld [vmem:[%s5725_s0 + $0x10a] sm:$0xff] }
 0x14b   :  { %1450 = vmatmul.f32.gmra.mxu3 %v2949_v39  ;;  %v1612_v20 = vpop.f32.mrf.mxu0 }
 0x14c   :  { %v1194_v18 = vpop.f32.mrf.mxu2 }
 0x14d   :  { %v1195_v28 = vadd.f32 %v1194_v18, %v986_v19 }
 0x14e   :  { %v988_v27 = vpop.f32.mrf.mxu1  ;;  %v1403_v5 = vpop.f32.mrf.mxu3  ;;  %1659 = vmatmul.f32.gmra.mxu0 %v3013_v46 }
 0x14f   :  { %v1404_v51 = vadd.f32 %v1403_v5, %v1195_v28  ;;  %v989_v52 = vadd.f32 %v988_v27, %v780_v32  ;;  %v169_v5 = vld [vmem:[%s5725_s0 + $0x112] sm:$0xff] }
 0x151   :  { %v4345_v30 = vadd.f32 %v1612_v20, %v1404_v51  ;;  %1035 = vmatmul.f32.gmra.mxu1 %v3012_v50  ;;  %1244 = vmatmul.f32.gmra.mxu2 %v168_v53  ;;  %v2951_v50 = vld [vmem:[%s5725_s0 + $0x128] sm:$0xff]  ;;  %v783_v20 = vadd.f32 %v4238_v22, %v4075_v35 }
 0x153   :  { %1453 = vmatmul.f32.gmra.mxu3 %v2950_v11  ;;  %v1615_v39 = vpop.f32.mrf.mxu0  ;;  %v3015_v11 = vld [vmem:[%s5725_s0 + $0x129] sm:$0xff] }
 0x154   :  { %v1197_v19 = vpop.f32.mrf.mxu2 }
 0x155   :  { %v1198_v60 = vadd.f32 %v1197_v19, %v989_v52 }
 0x156   :  { %v991_v18 = vpop.f32.mrf.mxu1  ;;  %v1406_v28 = vpop.f32.mrf.mxu3  ;;  %1662 = vmatmul.f32.gmra.mxu0 %v3014_v3 }
 0x157   :  { %v1407_v13 = vadd.f32 %v1406_v28, %v1198_v60  ;;  %v992_v53 = vadd.f32 %v991_v18, %v783_v20  ;;  %v170_v28 = vld [vmem:[%s5725_s0 + $0x122] sm:$0xff]  ;;  %v3016_v20 = vld [vmem:[%s5725_s0 + $0x139] sm:$0xff] }
 0x159   :  { %v4358_v27 = vadd.f32 %v1615_v39, %v1407_v13  ;;  %1038 = vmatmul.f32.gmra.mxu1 %v3013_v46  ;;  %1247 = vmatmul.f32.gmra.mxu2 %v169_v5  ;;  %v2952_v46 = vld [vmem:[%s5725_s0 + $0x138] sm:$0xff]  ;;  %v786_v39 = vadd.f32 %v4238_v22, %v4093_v31  ;;  %v700_v5 = vld [vmem:[%s5726_s1 + $0x340] sm:$0xff] }
 0x15a   :  { %2005 = vmatpush.msra.mxu2 %v700_v5  ;;  %v716_v31 = vld [vmem:[%s5726_s1 + $0x3c0] sm:$0xff] }
 0x15b   :  { %1456 = vmatmul.f32.gmra.mxu3 %v2951_v50  ;;  %v1618_v51 = vpop.f32.mrf.mxu0 }
 0x15c   :  { %v1200_v32 = vpop.f32.mrf.mxu2  ;;  %2214 = vmatpush.msra.mxu3 %v716_v31  ;;  %v732_v31 = vld [vmem:[%s5726_s1 + $0x440] sm:$0xff] }
 0x15d   :  { %v1201_v52 = vadd.f32 %v1200_v32, %v992_v53  ;;  %2423 = vmatpush.msra.mxu0 %v732_v31 }
 0x15e   :  { %v994_v19 = vpop.f32.mrf.mxu1  ;;  %v1409_v60 = vpop.f32.mrf.mxu3  ;;  %1665 = vmatmul.f32.gmra.mxu0 %v3015_v11 }
 0x15f   :  { %v1410_v35 = vadd.f32 %v1409_v60, %v1201_v52  ;;  %v995_v13 = vadd.f32 %v994_v19, %v786_v39  ;;  %v171_v19 = vld [vmem:[%s5725_s0 + $0x12a] sm:$0xff] }
 0x161   :  { %v4371_v18 = vadd.f32 %v1618_v51, %v1410_v35  ;;  %1041 = vmatmul.f32.gmra.mxu1 %v3014_v3  ;;  %1250 = vmatmul.f32.gmra.mxu2 %v170_v28  ;;  %v684_v51 = vld [vmem:[%s5726_s1 + $0x2c0] sm:$0xff]  ;;  %v789_v35 = vadd.f32 %v4238_v22, %v4114_v59 }
 0x162   :  { %1796 = vmatpush.msra.mxu1 %v684_v51  ;;  %v2953_v28 = vld [vmem:[%s5725_s0 + $0x140] sm:$0xff] }
 0x163   :  { %1459 = vmatmul.f32.gmra.mxu3 %v2952_v46  ;;  %v1621_v50 = vpop.f32.mrf.mxu0 }
 0x164   :  { %v1203_v53 = vpop.f32.mrf.mxu2 }
 0x165   :  { %v1204_v3 = vadd.f32 %v1203_v53, %v995_v13  ;;  %v3017_v13 = vld [vmem:[%s5725_s0 + $0x141] sm:$0xff] }
 0x166   :  { %v997_v32 = vpop.f32.mrf.mxu1  ;;  %v1412_v52 = vpop.f32.mrf.mxu3  ;;  %1668 = vmatmul.f32.gmra.mxu0 %v3016_v20 }
 0x167   :  { %v1413_v60 = vadd.f32 %v1412_v52, %v1204_v3  ;;  %v998_v39 = vadd.f32 %v997_v32, %v789_v35  ;;  %v2954_v32 = vld [vmem:[%s5725_s0 + $0x150] sm:$0xff]  ;;  %v792_v52 = vadd.f32 %v4238_v22, %v4132_v62 }
 0x168   :  { %v3018_v35 = vld [vmem:[%s5725_s0 + $0x151] sm:$0xff] }
 0x169   :  { %v4393_v46 = vadd.f32 %v1621_v50, %v1413_v60  ;;  %1044 = vmatmul.f32.gmra.mxu1 %v3015_v11  ;;  %1253 = vmatmul.f32.gmra.mxu2 %v171_v19  ;;  %v172_v11 = vld [vmem:[%s5725_s0 + $0x13a] sm:$0xff] }
 0x16b   :  { %1462 = vmatmul.f32.gmra.mxu3 %v2953_v28  ;;  %v1624_v5 = vpop.f32.mrf.mxu0 }
 0x16c   :  { %v1206_v53 = vpop.f32.mrf.mxu2 }
 0x16d   :  { %v1207_v3 = vadd.f32 %v1206_v53, %v998_v39 }
 0x16e   :  { %v1000_v51 = vpop.f32.mrf.mxu1  ;;  %v1415_v59 = vpop.f32.mrf.mxu3  ;;  %1671 = vmatmul.f32.gmra.mxu0 %v3017_v13 }
 0x16f   :  { %v1416_v50 = vadd.f32 %v1415_v59, %v1207_v3  ;;  %v1001_v60 = vadd.f32 %v1000_v51, %v792_v52  ;;  %v173_v59 = vld [vmem:[%s5725_s0 + $0x142] sm:$0xff] }
 0x171   :  { %v4409_v19 = vadd.f32 %v1624_v5, %v1416_v50  ;;  %1047 = vmatmul.f32.gmra.mxu1 %v3016_v20  ;;  %1256 = vmatmul.f32.gmra.mxu2 %v172_v11  ;;  %v2955_v20 = vld [vmem:[%s5725_s0 + $0x158] sm:$0xff]  ;;  %v795_v5 = vadd.f32 %v4238_v22, %v4147_v6 }
 0x173   :  { %1465 = vmatmul.f32.gmra.mxu3 %v2954_v32  ;;  %v1627_v28 = vpop.f32.mrf.mxu0  ;;  %v3019_v32 = vld [vmem:[%s5725_s0 + $0x159] sm:$0xff] }
 0x174   :  { %v1209_v39 = vpop.f32.mrf.mxu2 }
 0x175   :  { %v1210_v31 = vadd.f32 %v1209_v39, %v1001_v60 }
 0x176   :  { %v1003_v53 = vpop.f32.mrf.mxu1  ;;  %v1418_v3 = vpop.f32.mrf.mxu3  ;;  %1674 = vmatmul.f32.gmra.mxu0 %v3018_v35 }
 0x177   :  { %v1419_v62 = vadd.f32 %v1418_v3, %v1210_v31  ;;  %v1004_v11 = vadd.f32 %v1003_v53, %v795_v5  ;;  %v174_v3 = vld [vmem:[%s5725_s0 + $0x152] sm:$0xff]  ;;  %v3020_v5 = vld [vmem:[%s5725_s0 + $0x169] sm:$0xff] }
 0x179   :  { %v4422_v51 = vadd.f32 %v1627_v28, %v1419_v62  ;;  %1050 = vmatmul.f32.gmra.mxu1 %v3017_v13  ;;  %1259 = vmatmul.f32.gmra.mxu2 %v173_v59  ;;  %v2956_v13 = vld [vmem:[%s5725_s0 + $0x168] sm:$0xff]  ;;  %v798_v28 = vadd.f32 %v4238_v22, %v4165_v43  ;;  %v699_v59 = vld [vmem:[%s5726_s1 + $0x338] sm:$0xff] }
 0x17a   :  { %2006 = vmatpush.msra.mxu2 %v699_v59  ;;  %v715_v43 = vld [vmem:[%s5726_s1 + $0x3b8] sm:$0xff] }
 0x17b   :  { %1468 = vmatmul.f32.gmra.mxu3 %v2955_v20  ;;  %v1630_v50 = vpop.f32.mrf.mxu0 }
 0x17c   :  { %v1212_v52 = vpop.f32.mrf.mxu2  ;;  %2215 = vmatpush.msra.mxu3 %v715_v43  ;;  %v731_v43 = vld [vmem:[%s5726_s1 + $0x438] sm:$0xff] }
 0x17d   :  { %v1213_v60 = vadd.f32 %v1212_v52, %v1004_v11  ;;  %2424 = vmatpush.msra.mxu0 %v731_v43 }
 0x17e   :  { %v1006_v39 = vpop.f32.mrf.mxu1  ;;  %v1421_v31 = vpop.f32.mrf.mxu3  ;;  %1677 = vmatmul.f32.gmra.mxu0 %v3019_v32 }
 0x17f   :  { %v1422_v6 = vadd.f32 %v1421_v31, %v1213_v60  ;;  %v1007_v62 = vadd.f32 %v1006_v39, %v798_v28  ;;  %v175_v39 = vld [vmem:[%s5725_s0 + $0x15a] sm:$0xff] }
 0x181   :  { %v4435_v53 = vadd.f32 %v1630_v50, %v1422_v6  ;;  %1053 = vmatmul.f32.gmra.mxu1 %v3018_v35  ;;  %1262 = vmatmul.f32.gmra.mxu2 %v174_v3  ;;  %v683_v50 = vld [vmem:[%s5726_s1 + $0x2b8] sm:$0xff]  ;;  %v2957_v3 = vld [vmem:[%s5725_s0 + $0x170] sm:$0xff]  ;;  %v801_v6 = vadd.f32 %v4238_v22, %v4186_v61 }
 0x182   :  { %1797 = vmatpush.msra.mxu1 %v683_v50 }
 0x183   :  { %1471 = vmatmul.f32.gmra.mxu3 %v2956_v13  ;;  %v1633_v20 = vpop.f32.mrf.mxu0 }
 0x184   :  { %v1215_v11 = vpop.f32.mrf.mxu2 }
 0x185   :  { %v1216_v35 = vadd.f32 %v1215_v11, %v1007_v62  ;;  %v3021_v62 = vld [vmem:[%s5725_s0 + $0x171] sm:$0xff] }
 0x186   :  { %v1009_v52 = vpop.f32.mrf.mxu1  ;;  %v1424_v60 = vpop.f32.mrf.mxu3  ;;  %1680 = vmatmul.f32.gmra.mxu0 %v3020_v5 }
 0x187   :  { %v1425_v31 = vadd.f32 %v1424_v60, %v1216_v35  ;;  %v1010_v28 = vadd.f32 %v1009_v52, %v801_v6  ;;  %v2958_v52 = vld [vmem:[%s5725_s0 + $0x180] sm:$0xff]  ;;  %v804_v60 = vadd.f32 %v4238_v22, %v4206_v41 }
 0x188   :  { %v3022_v6 = vld [vmem:[%s5725_s0 + $0x181] sm:$0xff] }
 0x189   :  { %v4457_v13 = vadd.f32 %v1633_v20, %v1425_v31  ;;  %1056 = vmatmul.f32.gmra.mxu1 %v3019_v32  ;;  %1265 = vmatmul.f32.gmra.mxu2 %v175_v39  ;;  %v176_v32 = vld [vmem:[%s5725_s0 + $0x16a] sm:$0xff] }
 0x18b   :  { %1474 = vmatmul.f32.gmra.mxu3 %v2957_v3  ;;  %v1636_v59 = vpop.f32.mrf.mxu0 }
 0x18c   :  { %v1218_v11 = vpop.f32.mrf.mxu2 }
 0x18d   :  { %v1219_v35 = vadd.f32 %v1218_v11, %v1010_v28 }
 0x18e   :  { %v1012_v50 = vpop.f32.mrf.mxu1  ;;  %v1427_v61 = vpop.f32.mrf.mxu3  ;;  %1683 = vmatmul.f32.gmra.mxu0 %v3021_v62 }
 0x18f   :  { %v1428_v20 = vadd.f32 %v1427_v61, %v1219_v35  ;;  %v1013_v31 = vadd.f32 %v1012_v50, %v804_v60  ;;  %v177_v61 = vld [vmem:[%s5725_s0 + $0x172] sm:$0xff] }
 0x191   :  { %v4473_v39 = vadd.f32 %v1636_v59, %v1428_v20  ;;  %1059 = vmatmul.f32.gmra.mxu1 %v3020_v5  ;;  %1268 = vmatmul.f32.gmra.mxu2 %v176_v32  ;;  %v2959_v5 = vld [vmem:[%s5725_s0 + $0x188] sm:$0xff]  ;;  %v807_v59 = vadd.f32 %v4238_v22, %v4223_v24  ;;  %v178_v24 = vld [vmem:[%s5725_s0 + $0x1b2] sm:$0xff] }
 0x193   :  { %1477 = vmatmul.f32.gmra.mxu3 %v2958_v52  ;;  %v1639_v3 = vpop.f32.mrf.mxu0  ;;  %v3023_v52 = vld [vmem:[%s5725_s0 + $0x189] sm:$0xff] }
 0x194   :  { %v1221_v28 = vpop.f32.mrf.mxu2 }
 0x195   :  { %v1222_v43 = vadd.f32 %v1221_v28, %v1013_v31 }
 0x196   :  { %v1015_v11 = vpop.f32.mrf.mxu1  ;;  %v1430_v35 = vpop.f32.mrf.mxu3  ;;  %1686 = vmatmul.f32.gmra.mxu0 %v3022_v6 }
 0x197   :  { %v1431_v41 = vadd.f32 %v1430_v35, %v1222_v43  ;;  %v1016_v32 = vadd.f32 %v1015_v11, %v807_v59  ;;  %v114_v43 = vld [vmem:[%s5725_s0 + $0x1b1] sm:$0xff]  ;;  %v810_v11 = vadd.f32 %v4238_v22, %v3933_v25  ;;  %v3024_v59 = vld [vmem:[%s5725_s0 + $0x1c9] sm:$0xff] }
 0x198   :  { %v714_v25 = vld [vmem:[%s5726_s1 + $0x3b0] sm:$0xff] }
 0x199   :  { %v4486_v50 = vadd.f32 %v1639_v3, %v1431_v41  ;;  %1062 = vmatmul.f32.gmra.mxu1 %v3021_v62  ;;  %1271 = vmatmul.f32.gmra.mxu2 %v177_v61  ;;  %v2960_v3 = vld [vmem:[%s5725_s0 + $0x1c8] sm:$0xff]  ;;  %v698_v61 = vld [vmem:[%s5726_s1 + $0x330] sm:$0xff] }
 0x19a   :  { %2007 = vmatpush.msra.mxu2 %v698_v61  ;;  %2216 = vmatpush.msra.mxu3 %v714_v25  ;;  %v730_v25 = vld [vmem:[%s5726_s1 + $0x430] sm:$0xff] }
 0x19b   :  { %1480 = vmatmul.f32.gmra.mxu3 %v2959_v5  ;;  %v1642_v20 = vpop.f32.mrf.mxu0  ;;  %2425 = vmatpush.msra.mxu0 %v730_v25 }
 0x19c   :  { %v1224_v60 = vpop.f32.mrf.mxu2 }
 0x19d   :  { %v1225_v31 = vadd.f32 %v1224_v60, %v1016_v32 }
 0x19e   :  { %v1018_v6 = vpop.f32.mrf.mxu1  ;;  %v1433_v28 = vpop.f32.mrf.mxu3  ;;  %1689 = vmatmul.f32.gmra.mxu0 %v3023_v52  ;;  %v682_v52 = vld [vmem:[%s5726_s1 + $0x2b0] sm:$0xff] }
 0x19f   :  { %v1434_v62 = vadd.f32 %v1433_v28, %v1225_v31  ;;  %v1019_v41 = vadd.f32 %v1018_v6, %v810_v11  ;;  %v115_v6 = vld [vmem:[%s5725_s0 + $0x1b9] sm:$0xff]  ;;  %1798 = vmatpush.msra.mxu1 %v682_v52 }
 0x1a0   :  { %v179_v28 = vld [vmem:[%s5725_s0 + $0x1ba] sm:$0xff] }
 0x1a1   :  { %v4502_v35 = vadd.f32 %v1642_v20, %v1434_v62  ;;  %1065 = vmatmul.f32.gmra.mxu1 %v114_v43  ;;  %1274 = vmatmul.f32.gmra.mxu2 %v178_v24  ;;  %v2961_v24 = vld [vmem:[%s5725_s0 + $0x1d0] sm:$0xff]  ;;  %v813_v62 = vadd.f32 %v4238_v22, %v3959_v36 }
 0x1a3   :  { %1483 = vmatmul.f32.gmra.mxu3 %v2960_v3  ;;  %v1645_v5 = vpop.f32.mrf.mxu0 }
 0x1a4   :  { %v1227_v32 = vpop.f32.mrf.mxu2 }
 0x1a5   :  { %v1228_v20 = vadd.f32 %v1227_v32, %v1019_v41  ;;  %v3025_v41 = vld [vmem:[%s5725_s0 + $0x1d1] sm:$0xff] }
 0x1a6   :  { %v1021_v60 = vpop.f32.mrf.mxu1  ;;  %v1436_v31 = vpop.f32.mrf.mxu3  ;;  %1692 = vmatmul.f32.gmra.mxu0 %v3024_v59 }
 0x1a7   :  { %v1437_v43 = vadd.f32 %v1436_v31, %v1228_v20  ;;  %v1022_v11 = vadd.f32 %v1021_v60, %v813_v62  ;;  %v2962_v31 = vld [vmem:[%s5725_s0 + $0x1e0] sm:$0xff] }
 0x1a8   :  { %v3026_v62 = vld [vmem:[%s5725_s0 + $0x1e1] sm:$0xff] }
 0x1a9   :  { %v4527_v3 = vadd.f32 %v1645_v5, %v1437_v43  ;;  %1068 = vmatmul.f32.gmra.mxu1 %v115_v6  ;;  %1277 = vmatmul.f32.gmra.mxu2 %v179_v28  ;;  %v180_v5 = vld [vmem:[%s5725_s0 + $0x1ca] sm:$0xff]  ;;  %v816_v6 = vadd.f32 %v4238_v22, %v3980_v44 }
 0x1ab   :  { %1486 = vmatmul.f32.gmra.mxu3 %v2961_v24  ;;  %v1648_v61 = vpop.f32.mrf.mxu0 }
 0x1ac   :  { %v1230_v32 = vpop.f32.mrf.mxu2 }
 0x1ad   :  { %v1231_v20 = vadd.f32 %v1230_v32, %v1022_v11 }
 0x1ae   :  { %v1024_v52 = vpop.f32.mrf.mxu1  ;;  %v1439_v36 = vpop.f32.mrf.mxu3  ;;  %1695 = vmatmul.f32.gmra.mxu0 %v3025_v41 }
 0x1af   :  { %v1440_v60 = vadd.f32 %v1439_v36, %v1231_v20  ;;  %v1025_v43 = vadd.f32 %v1024_v52, %v816_v6  ;;  %v181_v36 = vld [vmem:[%s5725_s0 + $0x1d2] sm:$0xff] }
 0x1b1   :  { %v4543_v28 = vadd.f32 %v1648_v61, %v1440_v60  ;;  %1071 = vmatmul.f32.gmra.mxu1 %v3024_v59  ;;  %1280 = vmatmul.f32.gmra.mxu2 %v180_v5  ;;  %v2963_v59 = vld [vmem:[%s5725_s0 + $0x1e8] sm:$0xff]  ;;  %v819_v61 = vadd.f32 %v4238_v22, %v3995_v49 }
 0x1b3   :  { %1489 = vmatmul.f32.gmra.mxu3 %v2962_v31  ;;  %v1651_v24 = vpop.f32.mrf.mxu0  ;;  %v3027_v31 = vld [vmem:[%s5725_s0 + $0x1e9] sm:$0xff] }
 0x1b4   :  { %v1233_v11 = vpop.f32.mrf.mxu2 }
 0x1b5   :  { %v1234_v25 = vadd.f32 %v1233_v11, %v1025_v43 }
 0x1b6   :  { %v1027_v32 = vpop.f32.mrf.mxu1  ;;  %v1442_v20 = vpop.f32.mrf.mxu3  ;;  %1698 = vmatmul.f32.gmra.mxu0 %v3026_v62 }
 0x1b7   :  { %v1443_v44 = vadd.f32 %v1442_v20, %v1234_v25  ;;  %v1028_v5 = vadd.f32 %v1027_v32, %v819_v61  ;;  %v182_v20 = vld [vmem:[%s5725_s0 + $0x1e2] sm:$0xff]  ;;  %v3028_v61 = vld [vmem:[%s5725_s0 + $0x1f9] sm:$0xff] }
 0x1b9   :  { %v4556_v52 = vadd.f32 %v1651_v24, %v1443_v44  ;;  %1074 = vmatmul.f32.gmra.mxu1 %v3025_v41  ;;  %1283 = vmatmul.f32.gmra.mxu2 %v181_v36  ;;  %v2964_v41 = vld [vmem:[%s5725_s0 + $0x1f8] sm:$0xff]  ;;  %v822_v24 = vadd.f32 %v4238_v22, %v4010_v56  ;;  %v697_v36 = vld [vmem:[%s5726_s1 + $0x328] sm:$0xff] }
 0x1ba   :  { %2008 = vmatpush.msra.mxu2 %v697_v36  ;;  %v713_v56 = vld [vmem:[%s5726_s1 + $0x3a8] sm:$0xff] }
 0x1bb   :  { %1492 = vmatmul.f32.gmra.mxu3 %v2963_v59  ;;  %v1654_v60 = vpop.f32.mrf.mxu0 }
 0x1bc   :  { %v1236_v6 = vpop.f32.mrf.mxu2  ;;  %2217 = vmatpush.msra.mxu3 %v713_v56  ;;  %v729_v56 = vld [vmem:[%s5726_s1 + $0x428] sm:$0xff] }
 0x1bd   :  { %v1237_v43 = vadd.f32 %v1236_v6, %v1028_v5  ;;  %2426 = vmatpush.msra.mxu0 %v729_v56 }
 0x1be   :  { %v1030_v11 = vpop.f32.mrf.mxu1  ;;  %v1445_v25 = vpop.f32.mrf.mxu3  ;;  %1701 = vmatmul.f32.gmra.mxu0 %v3027_v31 }
 0x1bf   :  { %v1446_v49 = vadd.f32 %v1445_v25, %v1237_v43  ;;  %v1031_v44 = vadd.f32 %v1030_v11, %v822_v24  ;;  %v183_v11 = vld [vmem:[%s5725_s0 + $0x1ea] sm:$0xff] }
 0x1c1   :  { %v4569_v32 = vadd.f32 %v1654_v60, %v1446_v49  ;;  %1077 = vmatmul.f32.gmra.mxu1 %v3026_v62  ;;  %1286 = vmatmul.f32.gmra.mxu2 %v182_v20  ;;  %v681_v60 = vld [vmem:[%s5726_s1 + $0x2a8] sm:$0xff]  ;;  %v2965_v20 = vld [vmem:[%s5725_s0 + $0x200] sm:$0xff]  ;;  %v825_v49 = vadd.f32 %v4238_v22, %v4034_v2 }
 0x1c2   :  { %1799 = vmatpush.msra.mxu1 %v681_v60 }
 0x1c3   :  { %1495 = vmatmul.f32.gmra.mxu3 %v2964_v41  ;;  %v1657_v59 = vpop.f32.mrf.mxu0 }
 0x1c4   :  { %v1239_v5 = vpop.f32.mrf.mxu2 }
 0x1c5   :  { %v1240_v62 = vadd.f32 %v1239_v5, %v1031_v44  ;;  %v3029_v44 = vld [vmem:[%s5725_s0 + $0x201] sm:$0xff] }
 0x1c6   :  { %v1033_v6 = vpop.f32.mrf.mxu1  ;;  %v1448_v43 = vpop.f32.mrf.mxu3  ;;  %1704 = vmatmul.f32.gmra.mxu0 %v3028_v61 }
 0x1c7   :  { %v1449_v25 = vadd.f32 %v1448_v43, %v1240_v62  ;;  %v1034_v24 = vadd.f32 %v1033_v6, %v825_v49  ;;  %v2966_v6 = vld [vmem:[%s5725_s0 + $0x210] sm:$0xff]  ;;  %v828_v43 = vadd.f32 %v4238_v22, %v4052_v10 }
 0x1c8   :  { %v3030_v49 = vld [vmem:[%s5725_s0 + $0x211] sm:$0xff] }
 0x1c9   :  { %v4591_v41 = vadd.f32 %v1657_v59, %v1449_v25  ;;  %1080 = vmatmul.f32.gmra.mxu1 %v3027_v31  ;;  %1289 = vmatmul.f32.gmra.mxu2 %v183_v11  ;;  %v184_v31 = vld [vmem:[%s5725_s0 + $0x1fa] sm:$0xff] }
 0x1cb   :  { %1498 = vmatmul.f32.gmra.mxu3 %v2965_v20  ;;  %v1660_v36 = vpop.f32.mrf.mxu0 }
 0x1cc   :  { %v1242_v5 = vpop.f32.mrf.mxu2 }
 0x1cd   :  { %v1243_v62 = vadd.f32 %v1242_v5, %v1034_v24 }
 0x1ce   :  { %v1036_v60 = vpop.f32.mrf.mxu1  ;;  %v1451_v2 = vpop.f32.mrf.mxu3  ;;  %1707 = vmatmul.f32.gmra.mxu0 %v3029_v44 }
 0x1cf   :  { %v1452_v59 = vadd.f32 %v1451_v2, %v1243_v62  ;;  %v1037_v25 = vadd.f32 %v1036_v60, %v828_v43  ;;  %v185_v2 = vld [vmem:[%s5725_s0 + $0x202] sm:$0xff] }
 0x1d1   :  { %v4607_v11 = vadd.f32 %v1660_v36, %v1452_v59  ;;  %1083 = vmatmul.f32.gmra.mxu1 %v3028_v61  ;;  %1292 = vmatmul.f32.gmra.mxu2 %v184_v31  ;;  %v2967_v61 = vld [vmem:[%s5725_s0 + $0x218] sm:$0xff]  ;;  %v831_v36 = vadd.f32 %v4238_v22, %v4067_v17 }
 0x1d3   :  { %1501 = vmatmul.f32.gmra.mxu3 %v2966_v6  ;;  %v1663_v20 = vpop.f32.mrf.mxu0  ;;  %v3031_v6 = vld [vmem:[%s5725_s0 + $0x219] sm:$0xff] }
 0x1d4   :  { %v1245_v24 = vpop.f32.mrf.mxu2 }
 0x1d5   :  { %v1246_v56 = vadd.f32 %v1245_v24, %v1037_v25 }
 0x1d6   :  { %v1039_v5 = vpop.f32.mrf.mxu1  ;;  %v1454_v62 = vpop.f32.mrf.mxu3  ;;  %1710 = vmatmul.f32.gmra.mxu0 %v3030_v49 }
 0x1d7   :  { %v1455_v10 = vadd.f32 %v1454_v62, %v1246_v56  ;;  %v1040_v31 = vadd.f32 %v1039_v5, %v831_v36  ;;  %v186_v62 = vld [vmem:[%s5725_s0 + $0x212] sm:$0xff]  ;;  %v3032_v36 = vld [vmem:[%s5725_s0 + $0x229] sm:$0xff] }
 0x1d9   :  { %v4620_v60 = vadd.f32 %v1663_v20, %v1455_v10  ;;  %1086 = vmatmul.f32.gmra.mxu1 %v3029_v44  ;;  %1295 = vmatmul.f32.gmra.mxu2 %v185_v2  ;;  %v2968_v44 = vld [vmem:[%s5725_s0 + $0x228] sm:$0xff]  ;;  %v834_v20 = vadd.f32 %v4238_v22, %v4082_v26  ;;  %v696_v2 = vld [vmem:[%s5726_s1 + $0x320] sm:$0xff] }
 0x1da   :  { %2009 = vmatpush.msra.mxu2 %v696_v2  ;;  %v712_v26 = vld [vmem:[%s5726_s1 + $0x3a0] sm:$0xff] }
 0x1db   :  { %1504 = vmatmul.f32.gmra.mxu3 %v2967_v61  ;;  %v1666_v59 = vpop.f32.mrf.mxu0 }
 0x1dc   :  { %v1248_v43 = vpop.f32.mrf.mxu2  ;;  %2218 = vmatpush.msra.mxu3 %v712_v26  ;;  %v728_v26 = vld [vmem:[%s5726_s1 + $0x420] sm:$0xff] }
 0x1dd   :  { %v1249_v25 = vadd.f32 %v1248_v43, %v1040_v31  ;;  %2427 = vmatpush.msra.mxu0 %v728_v26 }
 0x1de   :  { %v1042_v24 = vpop.f32.mrf.mxu1  ;;  %v1457_v56 = vpop.f32.mrf.mxu3  ;;  %1713 = vmatmul.f32.gmra.mxu0 %v3031_v6 }
 0x1df   :  { %v1458_v17 = vadd.f32 %v1457_v56, %v1249_v25  ;;  %v1043_v10 = vadd.f32 %v1042_v24, %v834_v20  ;;  %v187_v24 = vld [vmem:[%s5725_s0 + $0x21a] sm:$0xff] }
 0x1e1   :  { %v4633_v5 = vadd.f32 %v1666_v59, %v1458_v17  ;;  %1089 = vmatmul.f32.gmra.mxu1 %v3030_v49  ;;  %1298 = vmatmul.f32.gmra.mxu2 %v186_v62  ;;  %v680_v59 = vld [vmem:[%s5726_s1 + $0x2a0] sm:$0xff]  ;;  %v2969_v62 = vld [vmem:[%s5725_s0 + $0x230] sm:$0xff]  ;;  %v837_v17 = vadd.f32 %v4238_v22, %v4106_v40 }
 0x1e2   :  { %1800 = vmatpush.msra.mxu1 %v680_v59 }
 0x1e3   :  { %1507 = vmatmul.f32.gmra.mxu3 %v2968_v44  ;;  %v1669_v61 = vpop.f32.mrf.mxu0 }
 0x1e4   :  { %v1251_v31 = vpop.f32.mrf.mxu2 }
 0x1e5   :  { %v1252_v49 = vadd.f32 %v1251_v31, %v1043_v10  ;;  %v3033_v10 = vld [vmem:[%s5725_s0 + $0x231] sm:$0xff] }
 0x1e6   :  { %v1045_v43 = vpop.f32.mrf.mxu1  ;;  %v1460_v25 = vpop.f32.mrf.mxu3  ;;  %1716 = vmatmul.f32.gmra.mxu0 %v3032_v36 }
 0x1e7   :  { %v1461_v56 = vadd.f32 %v1460_v25, %v1252_v49  ;;  %v1046_v20 = vadd.f32 %v1045_v43, %v837_v17  ;;  %v2970_v43 = vld [vmem:[%s5725_s0 + $0x240] sm:$0xff]  ;;  %v840_v25 = vadd.f32 %v4238_v22, %v4124_v58 }
 0x1e8   :  { %v3034_v17 = vld [vmem:[%s5725_s0 + $0x241] sm:$0xff] }
 0x1e9   :  { %v4655_v44 = vadd.f32 %v1669_v61, %v1461_v56  ;;  %1092 = vmatmul.f32.gmra.mxu1 %v3031_v6  ;;  %1301 = vmatmul.f32.gmra.mxu2 %v187_v24  ;;  %v188_v6 = vld [vmem:[%s5725_s0 + $0x22a] sm:$0xff] }
 0x1eb   :  { %1510 = vmatmul.f32.gmra.mxu3 %v2969_v62  ;;  %v1672_v2 = vpop.f32.mrf.mxu0 }
 0x1ec   :  { %v1254_v31 = vpop.f32.mrf.mxu2 }
 0x1ed   :  { %v1255_v49 = vadd.f32 %v1254_v31, %v1046_v20 }
 0x1ee   :  { %v1048_v59 = vpop.f32.mrf.mxu1  ;;  %v1463_v40 = vpop.f32.mrf.mxu3  ;;  %1719 = vmatmul.f32.gmra.mxu0 %v3033_v10 }
 0x1ef   :  { %v1464_v61 = vadd.f32 %v1463_v40, %v1255_v49  ;;  %v1049_v56 = vadd.f32 %v1048_v59, %v840_v25  ;;  %v189_v40 = vld [vmem:[%s5725_s0 + $0x232] sm:$0xff] }
 0x1f1   :  { %v4671_v24 = vadd.f32 %v1672_v2, %v1464_v61  ;;  %1095 = vmatmul.f32.gmra.mxu1 %v3032_v36  ;;  %1304 = vmatmul.f32.gmra.mxu2 %v188_v6  ;;  %v2971_v36 = vld [vmem:[%s5725_s0 + $0x248] sm:$0xff]  ;;  %v843_v2 = vadd.f32 %v4238_v22, %v4139_v4 }
 0x1f3   :  { %1513 = vmatmul.f32.gmra.mxu3 %v2970_v43  ;;  %v1675_v62 = vpop.f32.mrf.mxu0  ;;  %v3035_v43 = vld [vmem:[%s5725_s0 + $0x249] sm:$0xff] }
 0x1f4   :  { %v1257_v20 = vpop.f32.mrf.mxu2 }
 0x1f5   :  { %v1258_v26 = vadd.f32 %v1257_v20, %v1049_v56 }
 0x1f6   :  { %v1051_v31 = vpop.f32.mrf.mxu1  ;;  %v1466_v49 = vpop.f32.mrf.mxu3  ;;  %1722 = vmatmul.f32.gmra.mxu0 %v3034_v17 }
 0x1f7   :  { %v1467_v58 = vadd.f32 %v1466_v49, %v1258_v26  ;;  %v1052_v6 = vadd.f32 %v1051_v31, %v843_v2  ;;  %v190_v49 = vld [vmem:[%s5725_s0 + $0x242] sm:$0xff]  ;;  %v3036_v2 = vld [vmem:[%s5725_s0 + $0x259] sm:$0xff] }
 0x1f9   :  { %v4684_v59 = vadd.f32 %v1675_v62, %v1467_v58  ;;  %1098 = vmatmul.f32.gmra.mxu1 %v3033_v10  ;;  %1307 = vmatmul.f32.gmra.mxu2 %v189_v40  ;;  %v2972_v10 = vld [vmem:[%s5725_s0 + $0x258] sm:$0xff]  ;;  %v846_v62 = vadd.f32 %v4238_v22, %v4154_v21 }
 0x1fa   :  { %v695_v40 = vld [vmem:[%s5726_s1 + $0x318] sm:$0xff] }
 0x1fb   :  { %1516 = vmatmul.f32.gmra.mxu3 %v2971_v36  ;;  %v1678_v61 = vpop.f32.mrf.mxu0  ;;  %2010 = vmatpush.msra.mxu2 %v695_v40  ;;  %v711_v21 = vld [vmem:[%s5726_s1 + $0x398] sm:$0xff] }
 0x1fc   :  { %v1260_v25 = vpop.f32.mrf.mxu2  ;;  %2219 = vmatpush.msra.mxu3 %v711_v21  ;;  %v727_v21 = vld [vmem:[%s5726_s1 + $0x418] sm:$0xff] }
 0x1fd   :  { %v1261_v56 = vadd.f32 %v1260_v25, %v1052_v6  ;;  %v679_v6 = vld [vmem:[%s5726_s1 + $0x298] sm:$0xff]  ;;  %2428 = vmatpush.msra.mxu0 %v727_v21 }
 0x1fe   :  { %v1054_v20 = vpop.f32.mrf.mxu1  ;;  %v1469_v26 = vpop.f32.mrf.mxu3  ;;  %1725 = vmatmul.f32.gmra.mxu0 %v3035_v43  ;;  %1801 = vmatpush.msra.mxu1 %v679_v6 }
 0x1ff   :  { %v1470_v4 = vadd.f32 %v1469_v26, %v1261_v56  ;;  %v1055_v58 = vadd.f32 %v1054_v20, %v846_v62  ;;  %v191_v56 = vld [vmem:[%s5725_s0 + $0x24a] sm:$0xff]  ;;  %v2973_v26 = vld [vmem:[%s5725_s0 + $0x260] sm:$0xff] }
 0x201   :  { %v4697_v31 = vadd.f32 %v1678_v61, %v1470_v4  ;;  %1101 = vmatmul.f32.gmra.mxu1 %v3034_v17  ;;  %1310 = vmatmul.f32.gmra.mxu2 %v190_v49  ;;  %v4720_v49 = vld [vmem:[%s5727_s2] ss:$0 sm:$0xff] }
 0x202   :  { %v849_v4 = vadd.f32 %v4720_v49, %v4178_v47 }
 0x203   :  { %1519 = vmatmul.f32.gmra.mxu3 %v2972_v10  ;;  %v1681_v36 = vpop.f32.mrf.mxu0 }
 0x204   :  { %v1263_v22 = vpop.f32.mrf.mxu2 }
 0x205   :  { %v1264_v17 = vadd.f32 %v1263_v22, %v1055_v58  ;;  %v3037_v58 = vld [vmem:[%s5725_s0 + $0x261] sm:$0xff] }
 0x206   :  { %v1057_v61 = vpop.f32.mrf.mxu1  ;;  %v1472_v25 = vpop.f32.mrf.mxu3  ;;  %1728 = vmatmul.f32.gmra.mxu0 %v3036_v2 }
 0x207   :  { %v1473_v20 = vadd.f32 %v1472_v25, %v1264_v17  ;;  %v1058_v62 = vadd.f32 %v1057_v61, %v849_v4  ;;  %v2974_v61 = vld [vmem:[%s5725_s0 + $0x270] sm:$0xff]  ;;  %v852_v25 = vadd.f32 %v4720_v49, %v4196_v14 }
 0x208   :  { %v3038_v4 = vld [vmem:[%s5725_s0 + $0x271] sm:$0xff] }
 0x209   :  { %v4724_v10 = vadd.f32 %v1681_v36, %v1473_v20  ;;  %1104 = vmatmul.f32.gmra.mxu1 %v3035_v43  ;;  %1313 = vmatmul.f32.gmra.mxu2 %v191_v56  ;;  %v192_v43 = vld [vmem:[%s5725_s0 + $0x25a] sm:$0xff] }
 0x20b   :  { %1522 = vmatmul.f32.gmra.mxu3 %v2973_v26  ;;  %v1684_v40 = vpop.f32.mrf.mxu0 }
 0x20c   :  { %v1266_v22 = vpop.f32.mrf.mxu2 }
 0x20d   :  { %v1267_v17 = vadd.f32 %v1266_v22, %v1058_v62 }
 0x20e   :  { %v1060_v6 = vpop.f32.mrf.mxu1  ;;  %v1475_v47 = vpop.f32.mrf.mxu3  ;;  %1731 = vmatmul.f32.gmra.mxu0 %v3037_v58 }
 0x20f   :  { %v1476_v36 = vadd.f32 %v1475_v47, %v1267_v17  ;;  %v1061_v20 = vadd.f32 %v1060_v6, %v852_v25  ;;  %v193_v47 = vld [vmem:[%s5725_s0 + $0x262] sm:$0xff] }
 0x211   :  { %v4740_v56 = vadd.f32 %v1684_v40, %v1476_v36  ;;  %1107 = vmatmul.f32.gmra.mxu1 %v3036_v2  ;;  %1316 = vmatmul.f32.gmra.mxu2 %v192_v43  ;;  %v2975_v2 = vld [vmem:[%s5725_s0 + $0x278] sm:$0xff]  ;;  %v855_v40 = vadd.f32 %v4720_v49, %v4213_v34 }
 0x213   :  { %1525 = vmatmul.f32.gmra.mxu3 %v2974_v61  ;;  %v1687_v26 = vpop.f32.mrf.mxu0  ;;  %v3039_v61 = vld [vmem:[%s5725_s0 + $0x279] sm:$0xff] }
 0x214   :  { %v1269_v62 = vpop.f32.mrf.mxu2 }
 0x215   :  { %v1270_v21 = vadd.f32 %v1269_v62, %v1061_v20 }
 0x216   :  { %v1063_v22 = vpop.f32.mrf.mxu1  ;;  %v1478_v17 = vpop.f32.mrf.mxu3  ;;  %1734 = vmatmul.f32.gmra.mxu0 %v3038_v4 }
 0x217   :  { %v1479_v14 = vadd.f32 %v1478_v17, %v1270_v21  ;;  %v1064_v43 = vadd.f32 %v1063_v22, %v855_v40  ;;  %v194_v17 = vld [vmem:[%s5725_s0 + $0x272] sm:$0xff]  ;;  %v3040_v40 = vld [vmem:[%s5725_s0 + $0x289] sm:$0xff] }
 0x219   :  { %v4753_v6 = vadd.f32 %v1687_v26, %v1479_v14  ;;  %1110 = vmatmul.f32.gmra.mxu1 %v3037_v58  ;;  %1319 = vmatmul.f32.gmra.mxu2 %v193_v47  ;;  %v2976_v58 = vld [vmem:[%s5725_s0 + $0x288] sm:$0xff]  ;;  %v858_v26 = vadd.f32 %v4720_v49, %v3954_v33  ;;  %v694_v47 = vld [vmem:[%s5726_s1 + $0x310] sm:$0xff] }
 0x21a   :  { %2011 = vmatpush.msra.mxu2 %v694_v47  ;;  %v710_v33 = vld [vmem:[%s5726_s1 + $0x390] sm:$0xff] }
 0x21b   :  { %1528 = vmatmul.f32.gmra.mxu3 %v2975_v2  ;;  %v1690_v36 = vpop.f32.mrf.mxu0 }
 0x21c   :  { %v1272_v25 = vpop.f32.mrf.mxu2  ;;  %2220 = vmatpush.msra.mxu3 %v710_v33  ;;  %v726_v33 = vld [vmem:[%s5726_s1 + $0x410] sm:$0xff] }
 0x21d   :  { %v1273_v20 = vadd.f32 %v1272_v25, %v1064_v43  ;;  %2429 = vmatpush.msra.mxu0 %v726_v33 }
 0x21e   :  { %v1066_v62 = vpop.f32.mrf.mxu1  ;;  %v1481_v21 = vpop.f32.mrf.mxu3  ;;  %1737 = vmatmul.f32.gmra.mxu0 %v3039_v61 }
 0x21f   :  { %v1482_v34 = vadd.f32 %v1481_v21, %v1273_v20  ;;  %v1067_v14 = vadd.f32 %v1066_v62, %v858_v26  ;;  %v195_v62 = vld [vmem:[%s5725_s0 + $0x27a] sm:$0xff] }
 0x221   :  { %v4766_v22 = vadd.f32 %v1690_v36, %v1482_v34  ;;  %1113 = vmatmul.f32.gmra.mxu1 %v3038_v4  ;;  %1322 = vmatmul.f32.gmra.mxu2 %v194_v17  ;;  %v678_v36 = vld [vmem:[%s5726_s1 + $0x290] sm:$0xff]  ;;  %v861_v34 = vadd.f32 %v4720_v49, %v3978_v42 }
 0x222   :  { %1802 = vmatpush.msra.mxu1 %v678_v36  ;;  %v2977_v17 = vld [vmem:[%s5725_s0 + $0x290] sm:$0xff] }
 0x223   :  { %1531 = vmatmul.f32.gmra.mxu3 %v2976_v58  ;;  %v1693_v2 = vpop.f32.mrf.mxu0 }
 0x224   :  { %v1275_v43 = vpop.f32.mrf.mxu2 }
 0x225   :  { %v1276_v4 = vadd.f32 %v1275_v43, %v1067_v14  ;;  %v3041_v14 = vld [vmem:[%s5725_s0 + $0x291] sm:$0xff] }
 0x226   :  { %v1069_v25 = vpop.f32.mrf.mxu1  ;;  %v1484_v20 = vpop.f32.mrf.mxu3  ;;  %1740 = vmatmul.f32.gmra.mxu0 %v3040_v40 }
 0x227   :  { %v1485_v21 = vadd.f32 %v1484_v20, %v1276_v4  ;;  %v1070_v26 = vadd.f32 %v1069_v25, %v861_v34  ;;  %v2978_v25 = vld [vmem:[%s5725_s0 + $0x2a0] sm:$0xff]  ;;  %v864_v20 = vadd.f32 %v4720_v49, %v3993_v48 }
 0x228   :  { %v3042_v34 = vld [vmem:[%s5725_s0 + $0x2a1] sm:$0xff] }
 0x229   :  { %v4788_v58 = vadd.f32 %v1693_v2, %v1485_v21  ;;  %1116 = vmatmul.f32.gmra.mxu1 %v3039_v61  ;;  %1325 = vmatmul.f32.gmra.mxu2 %v195_v62  ;;  %v196_v61 = vld [vmem:[%s5725_s0 + $0x28a] sm:$0xff] }
 0x22b   :  { %1534 = vmatmul.f32.gmra.mxu3 %v2977_v17  ;;  %v1696_v47 = vpop.f32.mrf.mxu0 }
 0x22c   :  { %v1278_v43 = vpop.f32.mrf.mxu2 }
 0x22d   :  { %v1279_v4 = vadd.f32 %v1278_v43, %v1070_v26 }
 0x22e   :  { %v1072_v36 = vpop.f32.mrf.mxu1  ;;  %v1487_v42 = vpop.f32.mrf.mxu3  ;;  %1743 = vmatmul.f32.gmra.mxu0 %v3041_v14 }
 0x22f   :  { %v1488_v2 = vadd.f32 %v1487_v42, %v1279_v4  ;;  %v1073_v21 = vadd.f32 %v1072_v36, %v864_v20  ;;  %v197_v42 = vld [vmem:[%s5725_s0 + $0x292] sm:$0xff] }
 0x231   :  { %v4804_v62 = vadd.f32 %v1696_v47, %v1488_v2  ;;  %1119 = vmatmul.f32.gmra.mxu1 %v3040_v40  ;;  %1328 = vmatmul.f32.gmra.mxu2 %v196_v61  ;;  %v2979_v40 = vld [vmem:[%s5725_s0 + $0x2a8] sm:$0xff]  ;;  %v867_v47 = vadd.f32 %v4720_v49, %v4008_v55 }
 0x233   :  { %1537 = vmatmul.f32.gmra.mxu3 %v2978_v25  ;;  %v1699_v17 = vpop.f32.mrf.mxu0  ;;  %v3043_v25 = vld [vmem:[%s5725_s0 + $0x2a9] sm:$0xff] }
 0x234   :  { %v1281_v26 = vpop.f32.mrf.mxu2 }
 0x235   :  { %v1282_v33 = vadd.f32 %v1281_v26, %v1073_v21 }
 0x236   :  { %v1075_v43 = vpop.f32.mrf.mxu1  ;;  %v1490_v4 = vpop.f32.mrf.mxu3  ;;  %1746 = vmatmul.f32.gmra.mxu0 %v3042_v34 }
 0x237   :  { %v1491_v48 = vadd.f32 %v1490_v4, %v1282_v33  ;;  %v1076_v61 = vadd.f32 %v1075_v43, %v867_v47  ;;  %v198_v4 = vld [vmem:[%s5725_s0 + $0x2a2] sm:$0xff]  ;;  %v3044_v47 = vld [vmem:[%s5725_s0 + $0x2b9] sm:$0xff] }
 0x239   :  { %v4817_v36 = vadd.f32 %v1699_v17, %v1491_v48  ;;  %1122 = vmatmul.f32.gmra.mxu1 %v3041_v14  ;;  %1331 = vmatmul.f32.gmra.mxu2 %v197_v42  ;;  %v2980_v14 = vld [vmem:[%s5725_s0 + $0x2b8] sm:$0xff]  ;;  %v870_v17 = vadd.f32 %v4720_v49, %v4029_v0  ;;  %v693_v42 = vld [vmem:[%s5726_s1 + $0x308] sm:$0xff] }
 0x23a   :  { %2012 = vmatpush.msra.mxu2 %v693_v42  ;;  %v709_v0 = vld [vmem:[%s5726_s1 + $0x388] sm:$0xff] }
 0x23b   :  { %1540 = vmatmul.f32.gmra.mxu3 %v2979_v40  ;;  %v1702_v2 = vpop.f32.mrf.mxu0 }
 0x23c   :  { %v1284_v20 = vpop.f32.mrf.mxu2  ;;  %2221 = vmatpush.msra.mxu3 %v709_v0  ;;  %v725_v0 = vld [vmem:[%s5726_s1 + $0x408] sm:$0xff] }
 0x23d   :  { %v1285_v21 = vadd.f32 %v1284_v20, %v1076_v61  ;;  %2430 = vmatpush.msra.mxu0 %v725_v0 }
 0x23e   :  { %v1078_v26 = vpop.f32.mrf.mxu1  ;;  %v1493_v33 = vpop.f32.mrf.mxu3  ;;  %1749 = vmatmul.f32.gmra.mxu0 %v3043_v25 }
 0x23f   :  { %v1494_v55 = vadd.f32 %v1493_v33, %v1285_v21  ;;  %v1079_v48 = vadd.f32 %v1078_v26, %v870_v17  ;;  %v199_v26 = vld [vmem:[%s5725_s0 + $0x2aa] sm:$0xff] }
 0x241   :  { %v4830_v43 = vadd.f32 %v1702_v2, %v1494_v55  ;;  %1125 = vmatmul.f32.gmra.mxu1 %v3042_v34  ;;  %1334 = vmatmul.f32.gmra.mxu2 %v198_v4  ;;  %v677_v2 = vld [vmem:[%s5726_s1 + $0x288] sm:$0xff]  ;;  %v2981_v4 = vld [vmem:[%s5725_s0 + $0x2c0] sm:$0xff]  ;;  %v873_v55 = vadd.f32 %v4720_v49, %v4050_v9 }
 0x242   :  { %1803 = vmatpush.msra.mxu1 %v677_v2 }
 0x243   :  { %1543 = vmatmul.f32.gmra.mxu3 %v2980_v14  ;;  %v1705_v40 = vpop.f32.mrf.mxu0 }
 0x244   :  { %v1287_v61 = vpop.f32.mrf.mxu2 }
 0x245   :  { %v1288_v34 = vadd.f32 %v1287_v61, %v1079_v48  ;;  %v3045_v48 = vld [vmem:[%s5725_s0 + $0x2c1] sm:$0xff] }
 0x246   :  { %v1081_v20 = vpop.f32.mrf.mxu1  ;;  %v1496_v21 = vpop.f32.mrf.mxu3  ;;  %1752 = vmatmul.f32.gmra.mxu0 %v3044_v47 }
 0x247   :  { %v1497_v33 = vadd.f32 %v1496_v21, %v1288_v34  ;;  %v1082_v17 = vadd.f32 %v1081_v20, %v873_v55  ;;  %v2982_v20 = vld [vmem:[%s5725_s0 + $0x2d0] sm:$0xff]  ;;  %v876_v21 = vadd.f32 %v4720_v49, %v4065_v16 }
 0x248   :  { %v3046_v55 = vld [vmem:[%s5725_s0 + $0x2d1] sm:$0xff] }
 0x249   :  { %v4852_v14 = vadd.f32 %v1705_v40, %v1497_v33  ;;  %1128 = vmatmul.f32.gmra.mxu1 %v3043_v25  ;;  %1337 = vmatmul.f32.gmra.mxu2 %v199_v26  ;;  %v200_v25 = vld [vmem:[%s5725_s0 + $0x2ba] sm:$0xff] }
 0x24b   :  { %1546 = vmatmul.f32.gmra.mxu3 %v2981_v4  ;;  %v1708_v42 = vpop.f32.mrf.mxu0 }
 0x24c   :  { %v1290_v61 = vpop.f32.mrf.mxu2 }
 0x24d   :  { %v1291_v34 = vadd.f32 %v1290_v61, %v1082_v17 }
 0x24e   :  { %v1084_v2 = vpop.f32.mrf.mxu1  ;;  %v1499_v9 = vpop.f32.mrf.mxu3  ;;  %1755 = vmatmul.f32.gmra.mxu0 %v3045_v48 }
 0x24f   :  { %v1500_v40 = vadd.f32 %v1499_v9, %v1291_v34  ;;  %v1085_v33 = vadd.f32 %v1084_v2, %v876_v21  ;;  %v201_v9 = vld [vmem:[%s5725_s0 + $0x2c2] sm:$0xff] }
 0x251   :  { %v4868_v26 = vadd.f32 %v1708_v42, %v1500_v40  ;;  %1131 = vmatmul.f32.gmra.mxu1 %v3044_v47  ;;  %1340 = vmatmul.f32.gmra.mxu2 %v200_v25  ;;  %v2983_v47 = vld [vmem:[%s5725_s0 + $0x2d8] sm:$0xff]  ;;  %v879_v42 = vadd.f32 %v4720_v49, %v4080_v23 }
 0x253   :  { %1549 = vmatmul.f32.gmra.mxu3 %v2982_v20  ;;  %v1711_v4 = vpop.f32.mrf.mxu0  ;;  %v3047_v20 = vld [vmem:[%s5725_s0 + $0x2d9] sm:$0xff] }
 0x254   :  { %v1293_v17 = vpop.f32.mrf.mxu2 }
 0x255   :  { %v1294_v0 = vadd.f32 %v1293_v17, %v1085_v33 }
 0x256   :  { %v1087_v61 = vpop.f32.mrf.mxu1  ;;  %v1502_v34 = vpop.f32.mrf.mxu3  ;;  %1758 = vmatmul.f32.gmra.mxu0 %v3046_v55 }
 0x257   :  { %v1503_v16 = vadd.f32 %v1502_v34, %v1294_v0  ;;  %v1088_v25 = vadd.f32 %v1087_v61, %v879_v42  ;;  %v202_v34 = vld [vmem:[%s5725_s0 + $0x2d2] sm:$0xff]  ;;  %v3048_v42 = vld [vmem:[%s5725_s0 + $0x2e9] sm:$0xff] }
 0x259   :  { %v4881_v2 = vadd.f32 %v1711_v4, %v1503_v16  ;;  %1134 = vmatmul.f32.gmra.mxu1 %v3045_v48  ;;  %1343 = vmatmul.f32.gmra.mxu2 %v201_v9  ;;  %v2984_v48 = vld [vmem:[%s5725_s0 + $0x2e8] sm:$0xff]  ;;  %v882_v4 = vadd.f32 %v4720_v49, %v4101_v37  ;;  %v692_v9 = vld [vmem:[%s5726_s1 + $0x300] sm:$0xff] }
 0x25a   :  { %2013 = vmatpush.msra.mxu2 %v692_v9  ;;  %v708_v37 = vld [vmem:[%s5726_s1 + $0x380] sm:$0xff] }
 0x25b   :  { %1552 = vmatmul.f32.gmra.mxu3 %v2983_v47  ;;  %v1714_v40 = vpop.f32.mrf.mxu0 }
 0x25c   :  { %v1296_v21 = vpop.f32.mrf.mxu2  ;;  %2222 = vmatpush.msra.mxu3 %v708_v37  ;;  %v724_v37 = vld [vmem:[%s5726_s1 + $0x400] sm:$0xff] }
 0x25d   :  { %v1297_v33 = vadd.f32 %v1296_v21, %v1088_v25  ;;  %2431 = vmatpush.msra.mxu0 %v724_v37 }
 0x25e   :  { %v1090_v17 = vpop.f32.mrf.mxu1  ;;  %v1505_v0 = vpop.f32.mrf.mxu3  ;;  %1761 = vmatmul.f32.gmra.mxu0 %v3047_v20 }
 0x25f   :  { %v1506_v23 = vadd.f32 %v1505_v0, %v1297_v33  ;;  %v1091_v16 = vadd.f32 %v1090_v17, %v882_v4  ;;  %v203_v17 = vld [vmem:[%s5725_s0 + $0x2da] sm:$0xff] }
 0x261   :  { %v4894_v61 = vadd.f32 %v1714_v40, %v1506_v23  ;;  %1137 = vmatmul.f32.gmra.mxu1 %v3046_v55  ;;  %1346 = vmatmul.f32.gmra.mxu2 %v202_v34  ;;  %v676_v40 = vld [vmem:[%s5726_s1 + $0x280] sm:$0xff]  ;;  %v2985_v34 = vld [vmem:[%s5725_s0 + $0x2f0] sm:$0xff]  ;;  %v885_v23 = vadd.f32 %v4720_v49, %v4122_v54 }
 0x262   :  { %1804 = vmatpush.msra.mxu1 %v676_v40 }
 0x263   :  { %1555 = vmatmul.f32.gmra.mxu3 %v2984_v48  ;;  %v1717_v47 = vpop.f32.mrf.mxu0 }
 0x264   :  { %v1299_v25 = vpop.f32.mrf.mxu2 }
 0x265   :  { %v1300_v55 = vadd.f32 %v1299_v25, %v1091_v16  ;;  %v3049_v16 = vld [vmem:[%s5725_s0 + $0x2f1] sm:$0xff] }
 0x266   :  { %v1093_v21 = vpop.f32.mrf.mxu1  ;;  %v1508_v33 = vpop.f32.mrf.mxu3  ;;  %1764 = vmatmul.f32.gmra.mxu0 %v3048_v42 }
 0x267   :  { %v1509_v0 = vadd.f32 %v1508_v33, %v1300_v55  ;;  %v1094_v4 = vadd.f32 %v1093_v21, %v885_v23  ;;  %v2986_v21 = vld [vmem:[%s5725_s0 + $0x300] sm:$0xff]  ;;  %v888_v33 = vadd.f32 %v4720_v49, %v4137_v1 }
 0x268   :  { %v3050_v23 = vld [vmem:[%s5725_s0 + $0x301] sm:$0xff] }
 0x269   :  { %v4916_v48 = vadd.f32 %v1717_v47, %v1509_v0  ;;  %1140 = vmatmul.f32.gmra.mxu1 %v3047_v20  ;;  %1349 = vmatmul.f32.gmra.mxu2 %v203_v17  ;;  %v204_v20 = vld [vmem:[%s5725_s0 + $0x2ea] sm:$0xff] }
 0x26b   :  { %1558 = vmatmul.f32.gmra.mxu3 %v2985_v34  ;;  %v1720_v9 = vpop.f32.mrf.mxu0 }
 0x26c   :  { %v1302_v25 = vpop.f32.mrf.mxu2 }
 0x26d   :  { %v1303_v55 = vadd.f32 %v1302_v25, %v1094_v4 }
 0x26e   :  { %v1096_v40 = vpop.f32.mrf.mxu1  ;;  %v1511_v54 = vpop.f32.mrf.mxu3  ;;  %1767 = vmatmul.f32.gmra.mxu0 %v3049_v16 }
 0x26f   :  { %v1512_v47 = vadd.f32 %v1511_v54, %v1303_v55  ;;  %v1097_v0 = vadd.f32 %v1096_v40, %v888_v33  ;;  %v205_v54 = vld [vmem:[%s5725_s0 + $0x2f2] sm:$0xff] }
 0x271   :  { %v4932_v17 = vadd.f32 %v1720_v9, %v1512_v47  ;;  %1143 = vmatmul.f32.gmra.mxu1 %v3048_v42  ;;  %1352 = vmatmul.f32.gmra.mxu2 %v204_v20  ;;  %v2987_v42 = vld [vmem:[%s5725_s0 + $0x308] sm:$0xff]  ;;  %v891_v9 = vadd.f32 %v4720_v49, %v4152_v15 }
 0x273   :  { %1561 = vmatmul.f32.gmra.mxu3 %v2986_v21  ;;  %v1723_v34 = vpop.f32.mrf.mxu0  ;;  %v3051_v21 = vld [vmem:[%s5725_s0 + $0x309] sm:$0xff] }
 0x274   :  { %v1305_v4 = vpop.f32.mrf.mxu2 }
 0x275   :  { %v1306_v37 = vadd.f32 %v1305_v4, %v1097_v0 }
 0x276   :  { %v1099_v25 = vpop.f32.mrf.mxu1  ;;  %v1514_v55 = vpop.f32.mrf.mxu3  ;;  %1770 = vmatmul.f32.gmra.mxu0 %v3050_v23 }
 0x277   :  { %v1515_v1 = vadd.f32 %v1514_v55, %v1306_v37  ;;  %v1100_v20 = vadd.f32 %v1099_v25, %v891_v9  ;;  %v206_v55 = vld [vmem:[%s5725_s0 + $0x302] sm:$0xff] }
 0x279   :  { %v4945_v40 = vadd.f32 %v1723_v34, %v1515_v1  ;;  %1146 = vmatmul.f32.gmra.mxu1 %v3049_v16  ;;  %1355 = vmatmul.f32.gmra.mxu2 %v205_v54  ;;  %v2988_v16 = vld [vmem:[%s5725_s0 + $0x318] sm:$0xff]  ;;  %v894_v34 = vadd.f32 %v4720_v49, %v4173_v38 }
 0x27b   :  { %1564 = vmatmul.f32.gmra.mxu3 %v2987_v42  ;;  %v1726_v47 = vpop.f32.mrf.mxu0  ;;  %v3052_v42 = vld [vmem:[%s5725_s0 + $0x319] sm:$0xff] }
 0x27c   :  { %v1308_v33 = vpop.f32.mrf.mxu2 }
 0x27d   :  { %v1309_v0 = vadd.f32 %v1308_v33, %v1100_v20 }
 0x27e   :  { %v1102_v4 = vpop.f32.mrf.mxu1  ;;  %v1517_v37 = vpop.f32.mrf.mxu3  ;;  %1773 = vmatmul.f32.gmra.mxu0 %v3051_v21 }
 0x27f   :  { %v1518_v15 = vadd.f32 %v1517_v37, %v1309_v0  ;;  %v1103_v54 = vadd.f32 %v1102_v4, %v894_v34  ;;  %v207_v37 = vld [vmem:[%s5725_s0 + $0x30a] sm:$0xff] }
 0x281   :  { %v4958_v25 = vadd.f32 %v1726_v47, %v1518_v15  ;;  %1149 = vmatmul.f32.gmra.mxu1 %v3050_v23  ;;  %1358 = vmatmul.f32.gmra.mxu2 %v206_v55  ;;  %v2989_v23 = vld [vmem:[%s5725_s0 + $0x320] sm:$0xff]  ;;  %v897_v47 = vadd.f32 %v4720_v49, %v4194_v29 }
 0x283   :  { %1567 = vmatmul.f32.gmra.mxu3 %v2988_v16  ;;  %v1729_v1 = vpop.f32.mrf.mxu0  ;;  %v3053_v16 = vld [vmem:[%s5725_s0 + $0x321] sm:$0xff] }
 0x284   :  { %v1311_v9 = vpop.f32.mrf.mxu2 }
 0x285   :  { %v1312_v20 = vadd.f32 %v1311_v9, %v1103_v54 }
 0x286   :  { %v1105_v33 = vpop.f32.mrf.mxu1  ;;  %v1520_v0 = vpop.f32.mrf.mxu3  ;;  %1776 = vmatmul.f32.gmra.mxu0 %v3052_v42 }
 0x287   :  { %v1521_v38 = vadd.f32 %v1520_v0, %v1312_v20  ;;  %v1106_v55 = vadd.f32 %v1105_v33, %v897_v47  ;;  %v208_v0 = vld [vmem:[%s5725_s0 + $0x31a] sm:$0xff] }
 0x289   :  { %v4971_v4 = vadd.f32 %v1729_v1, %v1521_v38  ;;  %1152 = vmatmul.f32.gmra.mxu1 %v3051_v21  ;;  %1361 = vmatmul.f32.gmra.mxu2 %v207_v37  ;;  %v2990_v21 = vld [vmem:[%s5725_s0 + $0x330] sm:$0xff]  ;;  %v900_v1 = vadd.f32 %v4720_v49, %v4211_v8 }
 0x28b   :  { %1570 = vmatmul.f32.gmra.mxu3 %v2989_v23  ;;  %v1732_v15 = vpop.f32.mrf.mxu0  ;;  %v3054_v23 = vld [vmem:[%s5725_s0 + $0x331] sm:$0xff] }
 0x28c   :  { %v1314_v34 = vpop.f32.mrf.mxu2 }
 0x28d   :  { %v1315_v54 = vadd.f32 %v1314_v34, %v1106_v55 }
 0x28e   :  { %v1108_v9 = vpop.f32.mrf.mxu1  ;;  %v1523_v20 = vpop.f32.mrf.mxu3  ;;  %1779 = vmatmul.f32.gmra.mxu0 %v3053_v16 }
 0x28f   :  { %v1524_v29 = vadd.f32 %v1523_v20, %v1315_v54  ;;  %v1109_v37 = vadd.f32 %v1108_v9, %v900_v1  ;;  %v209_v20 = vld [vmem:[%s5725_s0 + $0x322] sm:$0xff] }
 0x291   :  { %v4984_v33 = vadd.f32 %v1732_v15, %v1524_v29  ;;  %1155 = vmatmul.f32.gmra.mxu1 %v3052_v42  ;;  %1364 = vmatmul.f32.gmra.mxu2 %v208_v0  ;;  %v2991_v42 = vld [vmem:[%s5725_s0 + $0x338] sm:$0xff]  ;;  %v903_v15 = vadd.f32 %v4720_v49, %v4228_v7  ;;  %v3120_v7 = vld [vmem:[%s5725_s0 + $0x30] sm:$0xff] }
 0x293   :  { %1573 = vmatmul.f32.gmra.mxu3 %v2990_v21  ;;  %v1735_v38 = vpop.f32.mrf.mxu0  ;;  %v3055_v21 = vld [vmem:[%s5725_s0 + $0x339] sm:$0xff] }
 0x294   :  { %v1317_v47 = vpop.f32.mrf.mxu2 }
 0x295   :  { %v1318_v55 = vadd.f32 %v1317_v47, %v1109_v37 }
 0x296   :  { %v1111_v34 = vpop.f32.mrf.mxu1  ;;  %v1526_v54 = vpop.f32.mrf.mxu3  ;;  %1782 = vmatmul.f32.gmra.mxu0 %v3054_v23 }
 0x297   :  { %v1527_v8 = vadd.f32 %v1526_v54, %v1318_v55  ;;  %v1112_v0 = vadd.f32 %v1111_v34, %v903_v15  ;;  %v3056_v55 = vld [vmem:[%s5725_s0 + $0x1a] sm:$0xff]  ;;  %v5748_v34 = vld [vmem:[#allocation8_spill] sm:$0xff]  ;;  %v3248_v15 = vld [vmem:[%s5725_s0 + $0x32] sm:$0xff] }
 0x298   :  { %v906_v54 = vadd.f32 %v4720_v49, %v5748_v34 }
 0x299   :  { %v4997_v9 = vadd.f32 %v1735_v38, %v1527_v8  ;;  %1158 = vmatmul.f32.gmra.mxu1 %v3053_v16  ;;  %1367 = vmatmul.f32.gmra.mxu2 %v209_v20  ;;  %v3184_v38 = vld [vmem:[%s5725_s0 + $0x31] sm:$0xff] }
 0x29b   :  { %5747 = vst [vmem:[#allocation25_spill] sm:$0xff] %v4997_v9  ;;  %1576 = vmatmul.f32.gmra.mxu3 %v2991_v42  ;;  %v1738_v29 = vpop.f32.mrf.mxu0  ;;  %v3122_v9 = vld [vmem:[%s5725_s0 + $0x48] sm:$0xff] }
 0x29c   :  { %v1320_v1 = vpop.f32.mrf.mxu2 }
 0x29d   :  { %v1321_v37 = vadd.f32 %v1320_v1, %v1112_v0 }
 0x29e   :  { %v1114_v23 = vpop.f32.mrf.mxu1  ;;  %v1529_v47 = vpop.f32.mrf.mxu3  ;;  %1785 = vmatmul.f32.gmra.mxu0 %v3055_v21 }
 0x29f   :  { %v1530_v16 = vadd.f32 %v1529_v47, %v1321_v37  ;;  %v1115_v8 = vadd.f32 %v1114_v23, %v906_v54  ;;  %v3057_v47 = vld [vmem:[%s5725_s0 + $0x22] sm:$0xff] }
 0x2a1   :  { %v5013_v20 = vadd.f32 %v1738_v29, %v1530_v16  ;;  %1805 = vmatmul.f32.vlgmr.msra.gmra.mxu1 %v3056_v55  ;;  %2014 = vmatmul.f32.vlgmr.msra.gmra.mxu2 %v3120_v7  ;;  %v3121_v29 = vld [vmem:[%s5725_s0 + $0x38] sm:$0xff]  ;;  %v5750_v7 = vld [vmem:[#allocation9_spill] sm:$0xff] }
 0x2a2   :  { %v3185_v55 = vld [vmem:[%s5725_s0 + $0x39] sm:$0xff]  ;;  %v909_v16 = vadd.f32 %v4720_v49, %v5750_v7 }
 0x2a3   :  { %5749 = vst [vmem:[#allocation8_spill] sm:$0xff] %v5013_v20  ;;  %2223 = vmatmul.f32.vlgmr.msra.gmra.mxu3 %v3184_v38  ;;  %v1741_v42 = vpop.f32.mrf.mxu0 }
 0x2a4   :  { %v1323_v0 = vpop.f32.mrf.mxu2 }
 0x2a5   :  { %v1324_v21 = vadd.f32 %v1323_v0, %v1115_v8  ;;  %v3249_v8 = vld [vmem:[%s5725_s0 + $0x3a] sm:$0xff] }
 0x2a6   :  { %v1117_v1 = vpop.f32.mrf.mxu1  ;;  %v1532_v37 = vpop.f32.mrf.mxu3  ;;  %2432 = vmatmul.f32.vlgmr.msra.gmra.mxu0 %v3248_v15 }
 0x2a7   :  { %v1533_v23 = vadd.f32 %v1532_v37, %v1324_v21  ;;  %v1118_v34 = vadd.f32 %v1117_v1, %v909_v16  ;;  %v3186_v1 = vld [vmem:[%s5725_s0 + $0x49] sm:$0xff] }
 0x2a8   :  { %v3250_v16 = vld [vmem:[%s5725_s0 + $0x4a] sm:$0xff] }
 0x2a9   :  { %v5029_v38 = vadd.f32 %v1741_v42, %v1533_v23  ;;  %1808 = vmatmul.f32.gmra.mxu1 %v3057_v47  ;;  %2017 = vmatmul.f32.gmra.mxu2 %v3121_v29  ;;  %v5752_v47 = vld [vmem:[#allocation10_spill] sm:$0xff] }
 0x2aa   :  { %v912_v29 = vadd.f32 %v4720_v49, %v5752_v47 }
 0x2ab   :  { %5751 = vst [vmem:[#allocation9_spill] sm:$0xff] %v5029_v38  ;;  %2226 = vmatmul.f32.gmra.mxu3 %v3185_v55  ;;  %v1744_v54 = vpop.f32.mrf.mxu0  ;;  %v3123_v38 = vld [vmem:[%s5725_s0 + $0x50] sm:$0xff] }
 0x2ac   :  { %v1326_v0 = vpop.f32.mrf.mxu2 }
 0x2ad   :  { %v1327_v21 = vadd.f32 %v1326_v0, %v1118_v34 }
 0x2ae   :  { %v1120_v37 = vpop.f32.mrf.mxu1  ;;  %v1535_v20 = vpop.f32.mrf.mxu3  ;;  %2435 = vmatmul.f32.gmra.mxu0 %v3249_v8 }
 0x2af   :  { %v1536_v42 = vadd.f32 %v1535_v20, %v1327_v21  ;;  %v1121_v55 = vadd.f32 %v1120_v37, %v912_v29  ;;  %v3251_v29 = vld [vmem:[%s5725_s0 + $0x52] sm:$0xff] }
 0x2b1   :  { %v5042_v23 = vadd.f32 %v1744_v54, %v1536_v42  ;;  %1811 = vmatmul.f32.gmra.mxu1 %v3248_v15  ;;  %2020 = vmatmul.f32.gmra.mxu2 %v3122_v9  ;;  %v3187_v9 = vld [vmem:[%s5725_s0 + $0x51] sm:$0xff]  ;;  %v5754_v15 = vld [vmem:[#allocation11_spill] sm:$0xff] }
 0x2b2   :  { %v915_v37 = vadd.f32 %v4720_v49, %v5754_v15 }
 0x2b3   :  { %5753 = vst [vmem:[#allocation10_spill] sm:$0xff] %v5042_v23  ;;  %2229 = vmatmul.f32.gmra.mxu3 %v3186_v1  ;;  %v1747_v7 = vpop.f32.mrf.mxu0  ;;  %v3124_v23 = vld [vmem:[%s5725_s0 + $0x60] sm:$0xff] }
 0x2b4   :  { %v1329_v34 = vpop.f32.mrf.mxu2 }
 0x2b5   :  { %v1330_v20 = vadd.f32 %v1329_v34, %v1121_v55 }
 0x2b6   :  { %v1123_v0 = vpop.f32.mrf.mxu1  ;;  %v1538_v21 = vpop.f32.mrf.mxu3  ;;  %2438 = vmatmul.f32.gmra.mxu0 %v3250_v16 }
 0x2b7   :  { %v1539_v54 = vadd.f32 %v1538_v21, %v1330_v20  ;;  %v1124_v1 = vadd.f32 %v1123_v0, %v915_v37  ;;  %v3252_v37 = vld [vmem:[%s5725_s0 + $0x62] sm:$0xff] }
 0x2b9   :  { %v5055_v42 = vadd.f32 %v1747_v7, %v1539_v54  ;;  %1814 = vmatmul.f32.gmra.mxu1 %v3249_v8  ;;  %2023 = vmatmul.f32.gmra.mxu2 %v3123_v38  ;;  %v3188_v38 = vld [vmem:[%s5725_s0 + $0x61] sm:$0xff] }
 0x2ba   :  { %v5756_v8 = vld [vmem:[#allocation12_spill] sm:$0xff] }
 0x2bb   :  { %5755 = vst [vmem:[#allocation11_spill] sm:$0xff] %v5055_v42  ;;  %2232 = vmatmul.f32.gmra.mxu3 %v3187_v9  ;;  %v1750_v47 = vpop.f32.mrf.mxu0  ;;  %v918_v0 = vadd.f32 %v4720_v49, %v5756_v8  ;;  %v3125_v42 = vld [vmem:[%s5725_s0 + $0x68] sm:$0xff] }
 0x2bc   :  { %v1332_v55 = vpop.f32.mrf.mxu2 }
 0x2bd   :  { %v1333_v34 = vadd.f32 %v1332_v55, %v1124_v1 }
 0x2be   :  { %v1126_v20 = vpop.f32.mrf.mxu1  ;;  %v1541_v21 = vpop.f32.mrf.mxu3  ;;  %2441 = vmatmul.f32.gmra.mxu0 %v3251_v29 }
 0x2bf   :  { %v1542_v7 = vadd.f32 %v1541_v21, %v1333_v34  ;;  %v1127_v9 = vadd.f32 %v1126_v20, %v918_v0  ;;  %v3253_v0 = vld [vmem:[%s5725_s0 + $0x6a] sm:$0xff] }
 0x2c1   :  { %v5068_v54 = vadd.f32 %v1750_v47, %v1542_v7  ;;  %1817 = vmatmul.f32.gmra.mxu1 %v3250_v16  ;;  %2026 = vmatmul.f32.gmra.mxu2 %v3124_v23  ;;  %v3189_v23 = vld [vmem:[%s5725_s0 + $0x69] sm:$0xff] }
 0x2c2   :  { %v5758_v16 = vld [vmem:[#allocation13_spill] sm:$0xff] }
 0x2c3   :  { %5757 = vst [vmem:[#allocation12_spill] sm:$0xff] %v5068_v54  ;;  %2235 = vmatmul.f32.gmra.mxu3 %v3188_v38  ;;  %v1753_v15 = vpop.f32.mrf.mxu0  ;;  %v921_v20 = vadd.f32 %v4720_v49, %v5758_v16  ;;  %v3126_v54 = vld [vmem:[%s5725_s0 + $0x78] sm:$0xff] }
 0x2c4   :  { %v1335_v1 = vpop.f32.mrf.mxu2 }
 0x2c5   :  { %v1336_v55 = vadd.f32 %v1335_v1, %v1127_v9 }
 0x2c6   :  { %v1129_v34 = vpop.f32.mrf.mxu1  ;;  %v1544_v21 = vpop.f32.mrf.mxu3  ;;  %2444 = vmatmul.f32.gmra.mxu0 %v3252_v37 }
 0x2c7   :  { %v1545_v47 = vadd.f32 %v1544_v21, %v1336_v55  ;;  %v1130_v38 = vadd.f32 %v1129_v34, %v921_v20  ;;  %v3254_v20 = vld [vmem:[%s5725_s0 + $0x7a] sm:$0xff] }
 0x2c9   :  { %v5081_v7 = vadd.f32 %v1753_v15, %v1545_v47  ;;  %1820 = vmatmul.f32.gmra.mxu1 %v3251_v29  ;;  %2029 = vmatmul.f32.gmra.mxu2 %v3125_v42  ;;  %v3190_v42 = vld [vmem:[%s5725_s0 + $0x79] sm:$0xff] }
 0x2ca   :  { %v5760_v29 = vld [vmem:[#allocation14_spill] sm:$0xff] }
 0x2cb   :  { %5759 = vst [vmem:[#allocation13_spill] sm:$0xff] %v5081_v7  ;;  %2238 = vmatmul.f32.gmra.mxu3 %v3189_v23  ;;  %v1756_v8 = vpop.f32.mrf.mxu0  ;;  %v924_v34 = vadd.f32 %v4720_v49, %v5760_v29  ;;  %v3127_v7 = vld [vmem:[%s5725_s0 + $0x80] sm:$0xff] }
 0x2cc   :  { %v1338_v9 = vpop.f32.mrf.mxu2 }
 0x2cd   :  { %v1339_v1 = vadd.f32 %v1338_v9, %v1130_v38 }
 0x2ce   :  { %v1132_v55 = vpop.f32.mrf.mxu1  ;;  %v1547_v21 = vpop.f32.mrf.mxu3  ;;  %2447 = vmatmul.f32.gmra.mxu0 %v3253_v0 }
 0x2cf   :  { %v1548_v15 = vadd.f32 %v1547_v21, %v1339_v1  ;;  %v1133_v23 = vadd.f32 %v1132_v55, %v924_v34  ;;  %v3255_v34 = vld [vmem:[%s5725_s0 + $0x82] sm:$0xff] }
 0x2d1   :  { %v5094_v47 = vadd.f32 %v1756_v8, %v1548_v15  ;;  %1823 = vmatmul.f32.gmra.mxu1 %v3252_v37  ;;  %2032 = vmatmul.f32.gmra.mxu2 %v3126_v54  ;;  %v3191_v54 = vld [vmem:[%s5725_s0 + $0x81] sm:$0xff] }
 0x2d2   :  { %v5762_v37 = vld [vmem:[#allocation15_spill] sm:$0xff] }
 0x2d3   :  { %5761 = vst [vmem:[#allocation14_spill] sm:$0xff] %v5094_v47  ;;  %2241 = vmatmul.f32.gmra.mxu3 %v3190_v42  ;;  %v1759_v16 = vpop.f32.mrf.mxu0  ;;  %v927_v55 = vadd.f32 %v4720_v49, %v5762_v37  ;;  %v3128_v47 = vld [vmem:[%s5725_s0 + $0x90] sm:$0xff] }
 0x2d4   :  { %v1341_v38 = vpop.f32.mrf.mxu2 }
 0x2d5   :  { %v1342_v9 = vadd.f32 %v1341_v38, %v1133_v23 }
 0x2d6   :  { %v1135_v1 = vpop.f32.mrf.mxu1  ;;  %v1550_v21 = vpop.f32.mrf.mxu3  ;;  %2450 = vmatmul.f32.gmra.mxu0 %v3254_v20 }
 0x2d7   :  { %v1551_v8 = vadd.f32 %v1550_v21, %v1342_v9  ;;  %v1136_v42 = vadd.f32 %v1135_v1, %v927_v55  ;;  %v3256_v55 = vld [vmem:[%s5725_s0 + $0x92] sm:$0xff] }
 0x2d9   :  { %v5107_v15 = vadd.f32 %v1759_v16, %v1551_v8  ;;  %1826 = vmatmul.f32.gmra.mxu1 %v3253_v0  ;;  %2035 = vmatmul.f32.gmra.mxu2 %v3127_v7  ;;  %v3192_v7 = vld [vmem:[%s5725_s0 + $0x91] sm:$0xff]  ;;  %v5764_v0 = vld [vmem:[#allocation16_spill] sm:$0xff] }
 0x2da   :  { %v930_v1 = vadd.f32 %v4720_v49, %v5764_v0 }
 0x2db   :  { %5763 = vst [vmem:[#allocation15_spill] sm:$0xff] %v5107_v15  ;;  %2244 = vmatmul.f32.gmra.mxu3 %v3191_v54  ;;  %v1762_v29 = vpop.f32.mrf.mxu0  ;;  %v3129_v15 = vld [vmem:[%s5725_s0 + $0x98] sm:$0xff] }
 0x2dc   :  { %v1344_v23 = vpop.f32.mrf.mxu2 }
 0x2dd   :  { %v1345_v38 = vadd.f32 %v1344_v23, %v1136_v42 }
 0x2de   :  { %v1138_v9 = vpop.f32.mrf.mxu1  ;;  %v1553_v21 = vpop.f32.mrf.mxu3  ;;  %2453 = vmatmul.f32.gmra.mxu0 %v3255_v34 }
 0x2df   :  { %v1554_v16 = vadd.f32 %v1553_v21, %v1345_v38  ;;  %v1139_v54 = vadd.f32 %v1138_v9, %v930_v1  ;;  %v3257_v1 = vld [vmem:[%s5725_s0 + $0x9a] sm:$0xff] }
 0x2e1   :  { %v5120_v8 = vadd.f32 %v1762_v29, %v1554_v16  ;;  %1829 = vmatmul.f32.gmra.mxu1 %v3254_v20  ;;  %2038 = vmatmul.f32.gmra.mxu2 %v3128_v47  ;;  %v3193_v47 = vld [vmem:[%s5725_s0 + $0x99] sm:$0xff]  ;;  %v5766_v20 = vld [vmem:[#allocation17_spill] sm:$0xff] }
 0x2e2   :  { %v933_v9 = vadd.f32 %v4720_v49, %v5766_v20 }
 0x2e3   :  { %5765 = vst [vmem:[#allocation16_spill] sm:$0xff] %v5120_v8  ;;  %2247 = vmatmul.f32.gmra.mxu3 %v3192_v7  ;;  %v1765_v37 = vpop.f32.mrf.mxu0  ;;  %v3130_v8 = vld [vmem:[%s5725_s0 + $0xa8] sm:$0xff] }
 0x2e4   :  { %v1347_v42 = vpop.f32.mrf.mxu2 }
 0x2e5   :  { %v1348_v23 = vadd.f32 %v1347_v42, %v1139_v54 }
 0x2e6   :  { %v1141_v38 = vpop.f32.mrf.mxu1  ;;  %v1556_v21 = vpop.f32.mrf.mxu3  ;;  %2456 = vmatmul.f32.gmra.mxu0 %v3256_v55 }
 0x2e7   :  { %v1557_v29 = vadd.f32 %v1556_v21, %v1348_v23  ;;  %v1142_v7 = vadd.f32 %v1141_v38, %v933_v9  ;;  %v3258_v9 = vld [vmem:[%s5725_s0 + $0xaa] sm:$0xff] }
 0x2e9   :  { %v5133_v16 = vadd.f32 %v1765_v37, %v1557_v29  ;;  %1832 = vmatmul.f32.gmra.mxu1 %v3255_v34  ;;  %2041 = vmatmul.f32.gmra.mxu2 %v3129_v15  ;;  %v3194_v15 = vld [vmem:[%s5725_s0 + $0xa9] sm:$0xff]  ;;  %v5768_v34 = vld [vmem:[#allocation18_spill] sm:$0xff] }
 0x2ea   :  { %v936_v38 = vadd.f32 %v4720_v49, %v5768_v34 }
 0x2eb   :  { %5767 = vst [vmem:[#allocation17_spill] sm:$0xff] %v5133_v16  ;;  %2250 = vmatmul.f32.gmra.mxu3 %v3193_v47  ;;  %v1768_v0 = vpop.f32.mrf.mxu0  ;;  %v3131_v16 = vld [vmem:[%s5725_s0 + $0xb0] sm:$0xff] }
 0x2ec   :  { %v1350_v54 = vpop.f32.mrf.mxu2 }
 0x2ed   :  { %v1351_v42 = vadd.f32 %v1350_v54, %v1142_v7 }
 0x2ee   :  { %v1144_v23 = vpop.f32.mrf.mxu1  ;;  %v1559_v21 = vpop.f32.mrf.mxu3  ;;  %2459 = vmatmul.f32.gmra.mxu0 %v3257_v1 }
 0x2ef   :  { %v1560_v37 = vadd.f32 %v1559_v21, %v1351_v42  ;;  %v1145_v47 = vadd.f32 %v1144_v23, %v936_v38  ;;  %v3259_v38 = vld [vmem:[%s5725_s0 + $0xb2] sm:$0xff] }
 0x2f1   :  { %v5146_v29 = vadd.f32 %v1768_v0, %v1560_v37  ;;  %1835 = vmatmul.f32.gmra.mxu1 %v3256_v55  ;;  %2044 = vmatmul.f32.gmra.mxu2 %v3130_v8  ;;  %v3195_v8 = vld [vmem:[%s5725_s0 + $0xb1] sm:$0xff]  ;;  %v5770_v55 = vld [vmem:[#allocation19_spill] sm:$0xff] }
 0x2f2   :  { %v939_v23 = vadd.f32 %v4720_v49, %v5770_v55 }
 0x2f3   :  { %5769 = vst [vmem:[#allocation18_spill] sm:$0xff] %v5146_v29  ;;  %2253 = vmatmul.f32.gmra.mxu3 %v3194_v15  ;;  %v1771_v20 = vpop.f32.mrf.mxu0  ;;  %v3132_v29 = vld [vmem:[%s5725_s0 + $0xc0] sm:$0xff] }
 0x2f4   :  { %v1353_v7 = vpop.f32.mrf.mxu2 }
 0x2f5   :  { %v1354_v54 = vadd.f32 %v1353_v7, %v1145_v47 }
 0x2f6   :  { %v1147_v42 = vpop.f32.mrf.mxu1  ;;  %v1562_v21 = vpop.f32.mrf.mxu3  ;;  %2462 = vmatmul.f32.gmra.mxu0 %v3258_v9 }
 0x2f7   :  { %v1563_v0 = vadd.f32 %v1562_v21, %v1354_v54  ;;  %v1148_v15 = vadd.f32 %v1147_v42, %v939_v23  ;;  %v3260_v23 = vld [vmem:[%s5725_s0 + $0xc2] sm:$0xff] }
 0x2f9   :  { %v5159_v37 = vadd.f32 %v1771_v20, %v1563_v0  ;;  %1838 = vmatmul.f32.gmra.mxu1 %v3257_v1  ;;  %2047 = vmatmul.f32.gmra.mxu2 %v3131_v16  ;;  %v3196_v16 = vld [vmem:[%s5725_s0 + $0xc1] sm:$0xff]  ;;  %v3366_v1 = vld [vmem:[%s5727_s2] ss:$0 sm:$0xff] }
 0x2fa   :  { %v5772_v20 = vld [vmem:[#allocation20_spill] sm:$0xff] }
 0x2fb   :  { %5771 = vst [vmem:[#allocation19_spill] sm:$0xff] %v5159_v37  ;;  %2256 = vmatmul.f32.gmra.mxu3 %v3195_v8  ;;  %v1774_v34 = vpop.f32.mrf.mxu0  ;;  %v942_v42 = vadd.f32 %v3366_v1, %v5772_v20  ;;  %v3133_v37 = vld [vmem:[%s5725_s0 + $0xc8] sm:$0xff] }
 0x2fc   :  { %v1356_v47 = vpop.f32.mrf.mxu2 }
 0x2fd   :  { %v1357_v7 = vadd.f32 %v1356_v47, %v1148_v15 }
 0x2fe   :  { %v1150_v54 = vpop.f32.mrf.mxu1  ;;  %v1565_v21 = vpop.f32.mrf.mxu3  ;;  %2465 = vmatmul.f32.gmra.mxu0 %v3259_v38 }
 0x2ff   :  { %v1566_v49 = vadd.f32 %v1565_v21, %v1357_v7  ;;  %v1151_v8 = vadd.f32 %v1150_v54, %v942_v42  ;;  %v3261_v42 = vld [vmem:[%s5725_s0 + $0xca] sm:$0xff] }
 0x301   :  { %v5174_v0 = vadd.f32 %v1774_v34, %v1566_v49  ;;  %1841 = vmatmul.f32.gmra.mxu1 %v3258_v9  ;;  %2050 = vmatmul.f32.gmra.mxu2 %v3132_v29  ;;  %v3197_v29 = vld [vmem:[%s5725_s0 + $0xc9] sm:$0xff] }
 0x302   :  { %v5774_v9 = vld [vmem:[#allocation21_spill] sm:$0xff] }
 0x303   :  { %5773 = vst [vmem:[#allocation20_spill] sm:$0xff] %v5174_v0  ;;  %2259 = vmatmul.f32.gmra.mxu3 %v3196_v16  ;;  %v1777_v55 = vpop.f32.mrf.mxu0  ;;  %v945_v54 = vadd.f32 %v3366_v1, %v5774_v9  ;;  %v3134_v0 = vld [vmem:[%s5725_s0 + $0xd8] sm:$0xff] }
 0x304   :  { %v1359_v15 = vpop.f32.mrf.mxu2 }
 0x305   :  { %v1360_v47 = vadd.f32 %v1359_v15, %v1151_v8 }
 0x306   :  { %v1153_v7 = vpop.f32.mrf.mxu1  ;;  %v1568_v21 = vpop.f32.mrf.mxu3  ;;  %2468 = vmatmul.f32.gmra.mxu0 %v3260_v23 }
 0x307   :  { %v1569_v34 = vadd.f32 %v1568_v21, %v1360_v47  ;;  %v1154_v16 = vadd.f32 %v1153_v7, %v945_v54  ;;  %v3262_v54 = vld [vmem:[%s5725_s0 + $0xda] sm:$0xff] }
 0x309   :  { %v5186_v49 = vadd.f32 %v1777_v55, %v1569_v34  ;;  %1844 = vmatmul.f32.gmra.mxu1 %v3259_v38  ;;  %2053 = vmatmul.f32.gmra.mxu2 %v3133_v37  ;;  %v3198_v37 = vld [vmem:[%s5725_s0 + $0xd9] sm:$0xff] }
 0x30a   :  { %v5776_v38 = vld [vmem:[#allocation22_spill] sm:$0xff] }
 0x30b   :  { %5775 = vst [vmem:[#allocation21_spill] sm:$0xff] %v5186_v49  ;;  %2262 = vmatmul.f32.gmra.mxu3 %v3197_v29  ;;  %v1780_v20 = vpop.f32.mrf.mxu0  ;;  %v948_v7 = vadd.f32 %v3366_v1, %v5776_v38  ;;  %v3135_v49 = vld [vmem:[%s5725_s0 + $0xe0] sm:$0xff] }
 0x30c   :  { %v1362_v8 = vpop.f32.mrf.mxu2 }
 0x30d   :  { %v1363_v15 = vadd.f32 %v1362_v8, %v1154_v16 }
 0x30e   :  { %v1156_v47 = vpop.f32.mrf.mxu1  ;;  %v1571_v21 = vpop.f32.mrf.mxu3  ;;  %2471 = vmatmul.f32.gmra.mxu0 %v3261_v42 }
 0x30f   :  { %v1572_v55 = vadd.f32 %v1571_v21, %v1363_v15  ;;  %v1157_v29 = vadd.f32 %v1156_v47, %v948_v7  ;;  %v3263_v7 = vld [vmem:[%s5725_s0 + $0xe2] sm:$0xff] }
 0x311   :  { %v5198_v34 = vadd.f32 %v1780_v20, %v1572_v55  ;;  %1847 = vmatmul.f32.gmra.mxu1 %v3260_v23  ;;  %2056 = vmatmul.f32.gmra.mxu2 %v3134_v0  ;;  %v3199_v0 = vld [vmem:[%s5725_s0 + $0xe1] sm:$0xff] }
 0x312   :  { %v5778_v23 = vld [vmem:[#allocation23_spill] sm:$0xff] }
 0x313   :  { %5777 = vst [vmem:[#allocation22_spill] sm:$0xff] %v5198_v34  ;;  %2265 = vmatmul.f32.gmra.mxu3 %v3198_v37  ;;  %v1783_v9 = vpop.f32.mrf.mxu0  ;;  %v951_v47 = vadd.f32 %v3366_v1, %v5778_v23  ;;  %v3136_v34 = vld [vmem:[%s5725_s0 + $0xf0] sm:$0xff] }
 0x314   :  { %v1365_v16 = vpop.f32.mrf.mxu2 }
 0x315   :  { %v1366_v8 = vadd.f32 %v1365_v16, %v1157_v29 }
 0x316   :  { %v1159_v15 = vpop.f32.mrf.mxu1  ;;  %v1574_v21 = vpop.f32.mrf.mxu3  ;;  %2474 = vmatmul.f32.gmra.mxu0 %v3262_v54 }
 0x317   :  { %v1575_v20 = vadd.f32 %v1574_v21, %v1366_v8  ;;  %v1160_v37 = vadd.f32 %v1159_v15, %v951_v47 }
 0x319   :  { %v5210_v55 = vadd.f32 %v1783_v9, %v1575_v20  ;;  %1850 = vmatmul.f32.gmra.mxu1 %v3261_v42  ;;  %2059 = vmatmul.f32.gmra.mxu2 %v3135_v49  ;;  %v3200_v49 = vld [vmem:[%s5725_s0 + $0xf1] sm:$0xff]  ;;  %v5781_v9 = vld [vmem:[#allocation24_spill] sm:$0xff] }
 0x31b   :  { %5779 = vst [vmem:[#allocation23_spill] sm:$0xff] %v5210_v55  ;;  %2268 = vmatmul.f32.gmra.mxu3 %v3199_v0  ;;  %v1786_v38 = vpop.f32.mrf.mxu0  ;;  %v3264_v0 = vld [vmem:[%s5725_s0 + $0xf2] sm:$0xff] }
 0x31c   :  { %v1368_v29 = vpop.f32.mrf.mxu2 }
 0x31d   :  { %v1369_v16 = vadd.f32 %v1368_v29, %v1160_v37 }
 0x31e   :  { %v1577_v8 = vpop.f32.mrf.mxu3  ;;  %v1806_v21 = vpop.f32.mrf.mxu1  ;;  %2477 = vmatmul.f32.gmra.mxu0 %v3263_v7 }
 0x31f   :  { %v1578_v1 = vadd.f32 %v1577_v8, %v1369_v16  ;;  %v1807_v15 = vadd.f32 %v1806_v21, %v5781_v9  ;;  %v3137_v16 = vld [vmem:[%s5725_s0 + $0xf8] sm:$0xff] }
 0x321   :  { %v5221_v42 = vadd.f32 %v1786_v38, %v1578_v1  ;;  %1853 = vmatmul.f32.gmra.mxu1 %v3262_v54  ;;  %2062 = vmatmul.f32.gmra.mxu2 %v3136_v34  ;;  %v3201_v34 = vld [vmem:[%s5725_s0 + $0xf9] sm:$0xff] }
 0x322   :  { %v3265_v1 = vld [vmem:[%s5725_s0 + $0xfa] sm:$0xff] }
 0x323   :  { %5780 = vst [vmem:[#allocation26_spill] sm:$0xff] %v5221_v42  ;;  %2271 = vmatmul.f32.gmra.mxu3 %v3200_v49  ;;  %v2433_v20 = vpop.f32.mrf.mxu0 }
 0x324   :  { %v2015_v23 = vpop.f32.mrf.mxu2 }
 0x325   :  { %v2016_v47 = vadd.f32 %v2015_v23, %v1807_v15 }
 0x326   :  { %v1809_v37 = vpop.f32.mrf.mxu1  ;;  %v2224_v29 = vpop.f32.mrf.mxu3  ;;  %2480 = vmatmul.f32.gmra.mxu0 %v3264_v0 }
 0x327   :  { %v2225_v38 = vadd.f32 %v2224_v29, %v2016_v47  ;;  %v1810_v8 = vadd.f32 %v1809_v37, %v4281_v63  ;;  %v3138_v47 = vld [vmem:[%s5725_s0 + $0x108] sm:$0xff] }
 0x328   :  { %v3202_v63 = vld [vmem:[%s5725_s0 + $0x109] sm:$0xff] }
 0x329   :  { %v2434_v54 = vadd.f32 %v2433_v20, %v2225_v38  ;;  %1856 = vmatmul.f32.gmra.mxu1 %v3263_v7  ;;  %2065 = vmatmul.f32.gmra.mxu2 %v3137_v16 }
 0x32b   :  { %2830 = vst [vmem:[#allocation2] sm:$0xff] %v2434_v54  ;;  %2274 = vmatmul.f32.gmra.mxu3 %v3201_v34  ;;  %v2436_v21 = vpop.f32.mrf.mxu0  ;;  %v2694_v37 = vmul.f32 %v2434_v54, %v2434_v54 }
 0x32c   :  { %v2018_v49 = vpop.f32.mrf.mxu2 }
 0x32d   :  { %v2019_v9 = vadd.f32 %v2018_v49, %v1810_v8  ;;  %v3266_v8 = vld [vmem:[%s5725_s0 + $0x10a] sm:$0xff] }
 0x32e   :  { %v1812_v15 = vpop.f32.mrf.mxu1  ;;  %v2227_v23 = vpop.f32.mrf.mxu3  ;;  %2483 = vmatmul.f32.gmra.mxu0 %v3265_v1 }
 0x32f   :  { %v2228_v7 = vadd.f32 %v2227_v23, %v2019_v9  ;;  %v1813_v29 = vadd.f32 %v1812_v15, %v4294_v12 }
 0x331   :  { %v2437_v20 = vadd.f32 %v2436_v21, %v2228_v7  ;;  %1859 = vmatmul.f32.gmra.mxu1 %v3264_v0  ;;  %2068 = vmatmul.f32.gmra.mxu2 %v3138_v47  ;;  %v3139_v0 = vld [vmem:[%s5725_s0 + $0x110] sm:$0xff] }
 0x333   :  { %v2625_v16 = vadd.f32 %v2437_v20, %v2434_v54  ;;  %v2695_v38 = vmul.f32 %v2437_v20, %v2437_v20  ;;  %2831 = vst [vmem:[#allocation2 + $0x8] sm:$0xff] %v2437_v20  ;;  %2277 = vmatmul.f32.gmra.mxu3 %v3202_v63  ;;  %v2439_v34 = vpop.f32.mrf.mxu0  ;;  %v3203_v54 = vld [vmem:[%s5725_s0 + $0x111] sm:$0xff] }
 0x334   :  { %v2021_v49 = vpop.f32.mrf.mxu2  ;;  %v3267_v20 = vld [vmem:[%s5725_s0 + $0x112] sm:$0xff] }
 0x335   :  { %v2758_v9 = vadd.f32 %v2695_v38, %v2694_v37  ;;  %v2022_v23 = vadd.f32 %v2021_v49, %v1813_v29 }
 0x336   :  { %v1815_v42 = vpop.f32.mrf.mxu1  ;;  %v2230_v55 = vpop.f32.mrf.mxu3  ;;  %2486 = vmatmul.f32.gmra.mxu0 %v3266_v8 }
 0x337   :  { %v2231_v12 = vadd.f32 %v2230_v55, %v2022_v23  ;;  %v1816_v15 = vadd.f32 %v1815_v42, %v4307_v57  ;;  %v3204_v42 = vld [vmem:[%s5725_s0 + $0x121] sm:$0xff] }
 0x339   :  { %v2440_v21 = vadd.f32 %v2439_v34, %v2231_v12  ;;  %1862 = vmatmul.f32.gmra.mxu1 %v3265_v1  ;;  %2071 = vmatmul.f32.gmra.mxu2 %v3139_v0  ;;  %v3140_v1 = vld [vmem:[%s5725_s0 + $0x120] sm:$0xff] }
 0x33a   :  { %v3268_v12 = vld [vmem:[%s5725_s0 + $0x122] sm:$0xff] }
 0x33b   :  { %v2626_v47 = vadd.f32 %v2625_v16, %v2440_v21  ;;  %v2696_v7 = vmul.f32 %v2440_v21, %v2440_v21  ;;  %2832 = vst [vmem:[#allocation2 + $0x10] sm:$0xff] %v2440_v21  ;;  %2280 = vmatmul.f32.gmra.mxu3 %v3203_v54  ;;  %v2442_v63 = vpop.f32.mrf.mxu0 }
 0x33c   :  { %v2024_v37 = vpop.f32.mrf.mxu2 }
 0x33d   :  { %v2759_v55 = vadd.f32 %v2758_v9, %v2696_v7  ;;  %v2025_v29 = vadd.f32 %v2024_v37, %v1816_v15 }
 0x33e   :  { %v1818_v38 = vpop.f32.mrf.mxu1  ;;  %v2233_v49 = vpop.f32.mrf.mxu3  ;;  %2489 = vmatmul.f32.gmra.mxu0 %v3267_v20 }
 0x33f   :  { %v2234_v57 = vadd.f32 %v2233_v49, %v2025_v29  ;;  %v1819_v34 = vadd.f32 %v1818_v38, %v4329_v45 }
 0x341   :  { %v2443_v16 = vadd.f32 %v2442_v63, %v2234_v57  ;;  %1865 = vmatmul.f32.gmra.mxu1 %v3266_v8  ;;  %2074 = vmatmul.f32.gmra.mxu2 %v3140_v1  ;;  %v3141_v8 = vld [vmem:[%s5725_s0 + $0x128] sm:$0xff] }
 0x342   :  { %v3269_v1 = vld [vmem:[%s5725_s0 + $0x12a] sm:$0xff] }
 0x343   :  { %v2627_v23 = vadd.f32 %v2626_v47, %v2443_v16  ;;  %v2697_v9 = vmul.f32 %v2443_v16, %v2443_v16  ;;  %2833 = vst [vmem:[#allocation2 + $0x18] sm:$0xff] %v2443_v16  ;;  %2283 = vmatmul.f32.gmra.mxu3 %v3204_v42  ;;  %v2445_v0 = vpop.f32.mrf.mxu0  ;;  %v3205_v47 = vld [vmem:[%s5725_s0 + $0x129] sm:$0xff] }
 0x344   :  { %v2027_v54 = vpop.f32.mrf.mxu2 }
 0x345   :  { %v2760_v21 = vadd.f32 %v2759_v55, %v2697_v9  ;;  %v2028_v15 = vadd.f32 %v2027_v54, %v1819_v34 }
 0x346   :  { %v1821_v7 = vpop.f32.mrf.mxu1  ;;  %v2236_v37 = vpop.f32.mrf.mxu3  ;;  %2492 = vmatmul.f32.gmra.mxu0 %v3268_v12 }
 0x347   :  { %v2237_v45 = vadd.f32 %v2236_v37, %v2028_v15  ;;  %v1822_v29 = vadd.f32 %v1821_v7, %v4345_v30  ;;  %v3270_v37 = vld [vmem:[%s5725_s0 + $0x13a] sm:$0xff] }
 0x349   :  { %v2446_v63 = vadd.f32 %v2445_v0, %v2237_v45  ;;  %1868 = vmatmul.f32.gmra.mxu1 %v3267_v20  ;;  %2077 = vmatmul.f32.gmra.mxu2 %v3141_v8  ;;  %v3142_v20 = vld [vmem:[%s5725_s0 + $0x138] sm:$0xff] }
 0x34b   :  { %v2628_v38 = vadd.f32 %v2627_v23, %v2446_v63  ;;  %v2698_v55 = vmul.f32 %v2446_v63, %v2446_v63  ;;  %2834 = vst [vmem:[#allocation2 + $0x20] sm:$0xff] %v2446_v63  ;;  %2286 = vmatmul.f32.gmra.mxu3 %v3205_v47  ;;  %v2448_v49 = vpop.f32.mrf.mxu0  ;;  %v3206_v23 = vld [vmem:[%s5725_s0 + $0x139] sm:$0xff] }
 0x34c   :  { %v2030_v57 = vpop.f32.mrf.mxu2 }
 0x34d   :  { %v2761_v42 = vadd.f32 %v2760_v21, %v2698_v55  ;;  %v2031_v16 = vadd.f32 %v2030_v57, %v1822_v29 }
 0x34e   :  { %v1824_v34 = vpop.f32.mrf.mxu1  ;;  %v2239_v9 = vpop.f32.mrf.mxu3  ;;  %2495 = vmatmul.f32.gmra.mxu0 %v3269_v1 }
 0x34f   :  { %v2240_v30 = vadd.f32 %v2239_v9, %v2031_v16  ;;  %v1825_v54 = vadd.f32 %v1824_v34, %v4358_v27  ;;  %v3271_v34 = vld [vmem:[%s5725_s0 + $0x142] sm:$0xff] }
 0x351   :  { %v2449_v0 = vadd.f32 %v2448_v49, %v2240_v30  ;;  %1871 = vmatmul.f32.gmra.mxu1 %v3268_v12  ;;  %2080 = vmatmul.f32.gmra.mxu2 %v3142_v20  ;;  %v3143_v12 = vld [vmem:[%s5725_s0 + $0x140] sm:$0xff] }
 0x353   :  { %v2629_v15 = vadd.f32 %v2628_v38, %v2449_v0  ;;  %v2699_v21 = vmul.f32 %v2449_v0, %v2449_v0  ;;  %2835 = vst [vmem:[#allocation2 + $0x28] sm:$0xff] %v2449_v0  ;;  %2289 = vmatmul.f32.gmra.mxu3 %v3206_v23  ;;  %v2451_v7 = vpop.f32.mrf.mxu0  ;;  %v3207_v38 = vld [vmem:[%s5725_s0 + $0x141] sm:$0xff] }
 0x354   :  { %v2033_v8 = vpop.f32.mrf.mxu2 }
 0x355   :  { %v2762_v45 = vadd.f32 %v2761_v42, %v2699_v21  ;;  %v2034_v47 = vadd.f32 %v2033_v8, %v1825_v54  ;;  %v3208_v54 = vld [vmem:[%s5725_s0 + $0x151] sm:$0xff] }
 0x356   :  { %v1827_v63 = vpop.f32.mrf.mxu1  ;;  %v2242_v29 = vpop.f32.mrf.mxu3  ;;  %2498 = vmatmul.f32.gmra.mxu0 %v3270_v37 }
 0x357   :  { %v2243_v27 = vadd.f32 %v2242_v29, %v2034_v47  ;;  %v1828_v49 = vadd.f32 %v1827_v63, %v4371_v18  ;;  %v3272_v47 = vld [vmem:[%s5725_s0 + $0x152] sm:$0xff] }
 0x359   :  { %v2452_v55 = vadd.f32 %v2451_v7, %v2243_v27  ;;  %1874 = vmatmul.f32.gmra.mxu1 %v3269_v1  ;;  %2083 = vmatmul.f32.gmra.mxu2 %v3143_v12  ;;  %v3144_v1 = vld [vmem:[%s5725_s0 + $0x150] sm:$0xff] }
 0x35b   :  { %v2630_v57 = vadd.f32 %v2629_v15, %v2452_v55  ;;  %v2700_v42 = vmul.f32 %v2452_v55, %v2452_v55  ;;  %2836 = vst [vmem:[#allocation2 + $0x30] sm:$0xff] %v2452_v55  ;;  %2292 = vmatmul.f32.gmra.mxu3 %v3207_v38  ;;  %v2454_v16 = vpop.f32.mrf.mxu0  ;;  %v3209_v55 = vld [vmem:[%s5725_s0 + $0x159] sm:$0xff] }
 0x35c   :  { %v2036_v9 = vpop.f32.mrf.mxu2 }
 0x35d   :  { %v2763_v20 = vadd.f32 %v2762_v45, %v2700_v42  ;;  %v2037_v30 = vadd.f32 %v2036_v9, %v1828_v49 }
 0x35e   :  { %v1830_v23 = vpop.f32.mrf.mxu1  ;;  %v2245_v0 = vpop.f32.mrf.mxu3  ;;  %2501 = vmatmul.f32.gmra.mxu0 %v3271_v34 }
 0x35f   :  { %v2246_v18 = vadd.f32 %v2245_v0, %v2037_v30  ;;  %v1831_v21 = vadd.f32 %v1830_v23, %v4393_v46 }
 0x361   :  { %v2455_v15 = vadd.f32 %v2454_v16, %v2246_v18  ;;  %1877 = vmatmul.f32.gmra.mxu1 %v3270_v37  ;;  %2086 = vmatmul.f32.gmra.mxu2 %v3144_v1  ;;  %v3145_v37 = vld [vmem:[%s5725_s0 + $0x158] sm:$0xff] }
 0x363   :  { %v2631_v7 = vadd.f32 %v2630_v57, %v2455_v15  ;;  %v2701_v8 = vmul.f32 %v2455_v15, %v2455_v15  ;;  %2837 = vst [vmem:[#allocation2 + $0x38] sm:$0xff] %v2455_v15  ;;  %2295 = vmatmul.f32.gmra.mxu3 %v3208_v54  ;;  %v2457_v45 = vpop.f32.mrf.mxu0  ;;  %v3210_v54 = vld [vmem:[%s5725_s0 + $0x169] sm:$0xff] }
 0x364   :  { %v2039_v63 = vpop.f32.mrf.mxu2 }
 0x365   :  { %v2764_v29 = vadd.f32 %v2763_v20, %v2701_v8  ;;  %v2040_v12 = vadd.f32 %v2039_v63, %v1831_v21  ;;  %v3273_v20 = vld [vmem:[%s5725_s0 + $0x15a] sm:$0xff]  ;;  %v3274_v63 = vld [vmem:[%s5725_s0 + $0x16a] sm:$0xff] }
 0x366   :  { %v1833_v27 = vpop.f32.mrf.mxu1  ;;  %v2248_v38 = vpop.f32.mrf.mxu3  ;;  %2504 = vmatmul.f32.gmra.mxu0 %v3272_v47 }
 0x367   :  { %v2249_v46 = vadd.f32 %v2248_v38, %v2040_v12  ;;  %v1834_v57 = vadd.f32 %v1833_v27, %v4409_v19 }
 0x369   :  { %v2458_v49 = vadd.f32 %v2457_v45, %v2249_v46  ;;  %1880 = vmatmul.f32.gmra.mxu1 %v3271_v34  ;;  %2089 = vmatmul.f32.gmra.mxu2 %v3145_v37  ;;  %v3146_v34 = vld [vmem:[%s5725_s0 + $0x168] sm:$0xff]  ;;  %v3211_v46 = vld [vmem:[%s5725_s0 + $0x171] sm:$0xff] }
 0x36b   :  { %v2632_v42 = vadd.f32 %v2631_v7, %v2458_v49  ;;  %v2702_v16 = vmul.f32 %v2458_v49, %v2458_v49  ;;  %2838 = vst [vmem:[#allocation2 + $0x40] sm:$0xff] %v2458_v49  ;;  %2298 = vmatmul.f32.gmra.mxu3 %v3209_v55  ;;  %v2460_v9 = vpop.f32.mrf.mxu0 }
 0x36c   :  { %v2042_v30 = vpop.f32.mrf.mxu2 }
 0x36d   :  { %v2765_v23 = vadd.f32 %v2764_v29, %v2702_v16  ;;  %v2043_v0 = vadd.f32 %v2042_v30, %v1834_v57 }
 0x36e   :  { %v1836_v1 = vpop.f32.mrf.mxu1  ;;  %v2251_v18 = vpop.f32.mrf.mxu3  ;;  %2507 = vmatmul.f32.gmra.mxu0 %v3273_v20 }
 0x36f   :  { %v2252_v19 = vadd.f32 %v2251_v18, %v2043_v0  ;;  %v1837_v21 = vadd.f32 %v1836_v1, %v4422_v51 }
 0x371   :  { %v2461_v15 = vadd.f32 %v2460_v9, %v2252_v19  ;;  %1883 = vmatmul.f32.gmra.mxu1 %v3272_v47  ;;  %2092 = vmatmul.f32.gmra.mxu2 %v3146_v34  ;;  %v3147_v47 = vld [vmem:[%s5725_s0 + $0x170] sm:$0xff]  ;;  %v3212_v34 = vld [vmem:[%s5725_s0 + $0x181] sm:$0xff] }
 0x372   :  { %v3275_v9 = vld [vmem:[%s5725_s0 + $0x172] sm:$0xff] }
 0x373   :  { %v2633_v7 = vadd.f32 %v2632_v42, %v2461_v15  ;;  %v2703_v8 = vmul.f32 %v2461_v15, %v2461_v15  ;;  %2839 = vst [vmem:[#allocation2 + $0x48] sm:$0xff] %v2461_v15  ;;  %2301 = vmatmul.f32.gmra.mxu3 %v3210_v54  ;;  %v2463_v45 = vpop.f32.mrf.mxu0 }
 0x374   :  { %v2045_v29 = vpop.f32.mrf.mxu2 }
 0x375   :  { %v2766_v12 = vadd.f32 %v2765_v23, %v2703_v8  ;;  %v2046_v27 = vadd.f32 %v2045_v29, %v1837_v21  ;;  %v3276_v8 = vld [vmem:[%s5725_s0 + $0x182] sm:$0xff] }
 0x376   :  { %v1839_v38 = vpop.f32.mrf.mxu1  ;;  %v2254_v37 = vpop.f32.mrf.mxu3  ;;  %2510 = vmatmul.f32.gmra.mxu0 %v3274_v63 }
 0x377   :  { %v2255_v51 = vadd.f32 %v2254_v37, %v2046_v27  ;;  %v1840_v49 = vadd.f32 %v1839_v38, %v4435_v53  ;;  %v3213_v37 = vld [vmem:[%s5725_s0 + $0x189] sm:$0xff] }
 0x379   :  { %v2464_v55 = vadd.f32 %v2463_v45, %v2255_v51  ;;  %1886 = vmatmul.f32.gmra.mxu1 %v3273_v20  ;;  %2095 = vmatmul.f32.gmra.mxu2 %v3147_v47  ;;  %v3148_v20 = vld [vmem:[%s5725_s0 + $0x180] sm:$0xff] }
 0x37b   :  { %v2634_v57 = vadd.f32 %v2633_v7, %v2464_v55  ;;  %v2704_v42 = vmul.f32 %v2464_v55, %v2464_v55  ;;  %2840 = vst [vmem:[#allocation2 + $0x50] sm:$0xff] %v2464_v55  ;;  %2304 = vmatmul.f32.gmra.mxu3 %v3211_v46  ;;  %v2466_v16 = vpop.f32.mrf.mxu0 }
 0x37c   :  { %v2048_v30 = vpop.f32.mrf.mxu2 }
 0x37d   :  { %v2767_v23 = vadd.f32 %v2766_v12, %v2704_v42  ;;  %v2049_v0 = vadd.f32 %v2048_v30, %v1840_v49 }
 0x37e   :  { %v1842_v1 = vpop.f32.mrf.mxu1  ;;  %v2257_v18 = vpop.f32.mrf.mxu3  ;;  %2513 = vmatmul.f32.gmra.mxu0 %v3275_v9 }
 0x37f   :  { %v2258_v53 = vadd.f32 %v2257_v18, %v2049_v0  ;;  %v1843_v54 = vadd.f32 %v1842_v1, %v4457_v13  ;;  %v3214_v1 = vld [vmem:[%s5725_s0 + $0x199] sm:$0xff] }
 0x381   :  { %v2467_v19 = vadd.f32 %v2466_v16, %v2258_v53  ;;  %1889 = vmatmul.f32.gmra.mxu1 %v3274_v63  ;;  %2098 = vmatmul.f32.gmra.mxu2 %v3148_v20  ;;  %v3149_v63 = vld [vmem:[%s5725_s0 + $0x188] sm:$0xff] }
 0x383   :  { %v2635_v15 = vadd.f32 %v2634_v57, %v2467_v19  ;;  %v2705_v21 = vmul.f32 %v2467_v19, %v2467_v19  ;;  %2841 = vst [vmem:[#allocation2 + $0x58] sm:$0xff] %v2467_v19  ;;  %2307 = vmatmul.f32.gmra.mxu3 %v3212_v34  ;;  %v2469_v7 = vpop.f32.mrf.mxu0  ;;  %v3277_v57 = vld [vmem:[%s5725_s0 + $0x18a] sm:$0xff] }
 0x384   :  { %v2051_v45 = vpop.f32.mrf.mxu2 }
 0x385   :  { %v2768_v29 = vadd.f32 %v2767_v23, %v2705_v21  ;;  %v2052_v12 = vadd.f32 %v2051_v45, %v1843_v54  ;;  %v3278_v54 = vld [vmem:[%s5725_s0 + $0x19a] sm:$0xff] }
 0x386   :  { %v1845_v27 = vpop.f32.mrf.mxu1  ;;  %v2260_v38 = vpop.f32.mrf.mxu3  ;;  %2516 = vmatmul.f32.gmra.mxu0 %v3276_v8 }
 0x387   :  { %v2261_v13 = vadd.f32 %v2260_v38, %v2052_v12  ;;  %v1846_v51 = vadd.f32 %v1845_v27, %v4473_v39  ;;  %v3215_v12 = vld [vmem:[%s5725_s0 + $0x1a1] sm:$0xff] }
 0x389   :  { %v2470_v47 = vadd.f32 %v2469_v7, %v2261_v13  ;;  %1892 = vmatmul.f32.gmra.mxu1 %v3275_v9  ;;  %2101 = vmatmul.f32.gmra.mxu2 %v3149_v63  ;;  %v3150_v9 = vld [vmem:[%s5725_s0 + $0x198] sm:$0xff] }
 0x38b   :  { %v2636_v46 = vadd.f32 %v2635_v15, %v2470_v47  ;;  %v2706_v55 = vmul.f32 %v2470_v47, %v2470_v47  ;;  %2842 = vst [vmem:[#allocation2 + $0x60] sm:$0xff] %v2470_v47  ;;  %2310 = vmatmul.f32.gmra.mxu3 %v3213_v37  ;;  %v2472_v49 = vpop.f32.mrf.mxu0  ;;  %v3279_v47 = vld [vmem:[%s5725_s0 + $0x1a2] sm:$0xff] }
 0x38c   :  { %v2054_v42 = vpop.f32.mrf.mxu2 }
 0x38d   :  { %v2769_v16 = vadd.f32 %v2768_v29, %v2706_v55  ;;  %v2055_v30 = vadd.f32 %v2054_v42, %v1846_v51 }
 0x38e   :  { %v1848_v23 = vpop.f32.mrf.mxu1  ;;  %v2263_v0 = vpop.f32.mrf.mxu3  ;;  %2519 = vmatmul.f32.gmra.mxu0 %v3277_v57 }
 0x38f   :  { %v2264_v39 = vadd.f32 %v2263_v0, %v2055_v30  ;;  %v1849_v20 = vadd.f32 %v1848_v23, %v4486_v50  ;;  %v3216_v30 = vld [vmem:[%s5725_s0 + $0x1e1] sm:$0xff] }
 0x391   :  { %v2473_v18 = vadd.f32 %v2472_v49, %v2264_v39  ;;  %1895 = vmatmul.f32.gmra.mxu1 %v3276_v8  ;;  %2104 = vmatmul.f32.gmra.mxu2 %v3150_v9  ;;  %v3151_v8 = vld [vmem:[%s5725_s0 + $0x1a0] sm:$0xff] }
 0x393   :  { %v2637_v53 = vadd.f32 %v2636_v46, %v2473_v18  ;;  %v2707_v34 = vmul.f32 %v2473_v18, %v2473_v18  ;;  %2843 = vst [vmem:[#allocation2 + $0x68] sm:$0xff] %v2473_v18  ;;  %2313 = vmatmul.f32.gmra.mxu3 %v3214_v1  ;;  %v2475_v19 = vpop.f32.mrf.mxu0  ;;  %v3280_v18 = vld [vmem:[%s5725_s0 + $0x1e2] sm:$0xff] }
 0x394   :  { %v2057_v15 = vpop.f32.mrf.mxu2 }
 0x395   :  { %v2770_v21 = vadd.f32 %v2769_v16, %v2707_v34  ;;  %v2058_v7 = vadd.f32 %v2057_v15, %v1849_v20  ;;  %v3089_v15 = vld [vmem:[%s5725_s0 + $0x1d2] sm:$0xff] }
 0x396   :  { %v1851_v45 = vpop.f32.mrf.mxu1  ;;  %v2266_v29 = vpop.f32.mrf.mxu3  ;;  %2522 = vmatmul.f32.gmra.mxu0 %v3278_v54 }
 0x397   :  { %v2267_v50 = vadd.f32 %v2266_v29, %v2058_v7  ;;  %v1852_v38 = vadd.f32 %v1851_v45, %v4502_v35  ;;  %v3152_v35 = vld [vmem:[%s5725_s0 + $0x1e0] sm:$0xff]  ;;  %v3217_v7 = vld [vmem:[%s5725_s0 + $0x1e9] sm:$0xff] }
 0x399   :  { %v2476_v27 = vadd.f32 %v2475_v19, %v2267_v50  ;;  %1898 = vmatmul.f32.gmra.mxu1 %v3277_v57  ;;  %2107 = vmatmul.f32.gmra.mxu2 %v3151_v8  ;;  %v3088_v57 = vld [vmem:[%s5725_s0 + $0x1ca] sm:$0xff] }
 0x39b   :  { %v2638_v63 = vadd.f32 %v2637_v53, %v2476_v27  ;;  %v2708_v13 = vmul.f32 %v2476_v27, %v2476_v27  ;;  %2844 = vst [vmem:[#allocation2 + $0x70] sm:$0xff] %v2476_v27  ;;  %2316 = vmatmul.f32.gmra.mxu3 %v3215_v12  ;;  %v2478_v37 = vpop.f32.mrf.mxu0  ;;  %v3281_v27 = vld [vmem:[%s5725_s0 + $0x1ea] sm:$0xff] }
 0x39c   :  { %v2060_v51 = vpop.f32.mrf.mxu2 }
 0x39d   :  { %v2771_v46 = vadd.f32 %v2770_v21, %v2708_v13  ;;  %v2061_v55 = vadd.f32 %v2060_v51, %v1852_v38  ;;  %v3154_v51 = vld [vmem:[%s5725_s0 + $0x1f8] sm:$0xff] }
 0x39e   :  { %v1854_v49 = vpop.f32.mrf.mxu1  ;;  %v2269_v42 = vpop.f32.mrf.mxu3  ;;  %2525 = vmatmul.f32.gmra.mxu0 %v3279_v47 }
 0x39f   :  { %v2270_v16 = vadd.f32 %v2269_v42, %v2061_v55  ;;  %v1855_v0 = vadd.f32 %v1854_v49, %v4527_v3  ;;  %v3153_v3 = vld [vmem:[%s5725_s0 + $0x1e8] sm:$0xff] }
 0x3a1   :  { %v2479_v23 = vadd.f32 %v2478_v37, %v2270_v16  ;;  %1901 = vmatmul.f32.gmra.mxu1 %v3088_v57  ;;  %2110 = vmatmul.f32.gmra.mxu2 %v3152_v35  ;;  %v3282_v16 = vld [vmem:[%s5725_s0 + $0x1fa] sm:$0xff] }
 0x3a3   :  { %v2639_v9 = vadd.f32 %v2638_v63, %v2479_v23  ;;  %v2709_v39 = vmul.f32 %v2479_v23, %v2479_v23  ;;  %2845 = vst [vmem:[#allocation2 + $0x78] sm:$0xff] %v2479_v23  ;;  %2319 = vmatmul.f32.gmra.mxu3 %v3216_v30  ;;  %v2481_v1 = vpop.f32.mrf.mxu0 }
 0x3a4   :  { %v2063_v20 = vpop.f32.mrf.mxu2 }
 0x3a5   :  { %v2772_v53 = vadd.f32 %v2771_v46, %v2709_v39  ;;  %v2064_v34 = vadd.f32 %v2063_v20, %v1855_v0  ;;  %v3218_v46 = vld [vmem:[%s5725_s0 + $0x1f9] sm:$0xff] }
 0x3a6   :  { %v1857_v19 = vpop.f32.mrf.mxu1  ;;  %v2272_v54 = vpop.f32.mrf.mxu3  ;;  %2528 = vmatmul.f32.gmra.mxu0 %v3280_v18 }
 0x3a7   :  { %v2273_v21 = vadd.f32 %v2272_v54, %v2064_v34  ;;  %v1858_v29 = vadd.f32 %v1857_v19, %v4543_v28 }
 0x3a9   :  { %v2482_v45 = vadd.f32 %v2481_v1, %v2273_v21  ;;  %1904 = vmatmul.f32.gmra.mxu1 %v3089_v15  ;;  %2113 = vmatmul.f32.gmra.mxu2 %v3153_v3  ;;  %v3155_v1 = vld [vmem:[%s5725_s0 + $0x200] sm:$0xff] }
 0x3aa   :  { %v3283_v15 = vld [vmem:[%s5725_s0 + $0x202] sm:$0xff] }
 0x3ab   :  { %v2640_v8 = vadd.f32 %v2639_v9, %v2482_v45  ;;  %v2710_v50 = vmul.f32 %v2482_v45, %v2482_v45  ;;  %2846 = vst [vmem:[#allocation2 + $0x80] sm:$0xff] %v2482_v45  ;;  %2322 = vmatmul.f32.gmra.mxu3 %v3217_v7  ;;  %v2484_v12 = vpop.f32.mrf.mxu0 }
 0x3ac   :  { %v2066_v38 = vpop.f32.mrf.mxu2 }
 0x3ad   :  { %v2773_v63 = vadd.f32 %v2772_v53, %v2710_v50  ;;  %v2067_v13 = vadd.f32 %v2066_v38, %v1858_v29  ;;  %v3220_v50 = vld [vmem:[%s5725_s0 + $0x211] sm:$0xff] }
 0x3ae   :  { %v1860_v37 = vpop.f32.mrf.mxu1  ;;  %v2275_v47 = vpop.f32.mrf.mxu3  ;;  %2531 = vmatmul.f32.gmra.mxu0 %v3281_v27 }
 0x3af   :  { %v2276_v28 = vadd.f32 %v2275_v47, %v2067_v13  ;;  %v1861_v49 = vadd.f32 %v1860_v37, %v4556_v52  ;;  %v3284_v37 = vld [vmem:[%s5725_s0 + $0x212] sm:$0xff] }
 0x3b1   :  { %v2485_v55 = vadd.f32 %v2484_v12, %v2276_v28  ;;  %1907 = vmatmul.f32.gmra.mxu1 %v3280_v18  ;;  %2116 = vmatmul.f32.gmra.mxu2 %v3154_v51  ;;  %v3219_v18 = vld [vmem:[%s5725_s0 + $0x201] sm:$0xff] }
 0x3b3   :  { %v2641_v42 = vadd.f32 %v2640_v8, %v2485_v55  ;;  %v2711_v57 = vmul.f32 %v2485_v55, %v2485_v55  ;;  %2847 = vst [vmem:[#allocation2 + $0x88] sm:$0xff] %v2485_v55  ;;  %2325 = vmatmul.f32.gmra.mxu3 %v3218_v46  ;;  %v2487_v35 = vpop.f32.mrf.mxu0  ;;  %v3156_v8 = vld [vmem:[%s5725_s0 + $0x210] sm:$0xff] }
 0x3b4   :  { %v2069_v30 = vpop.f32.mrf.mxu2 }
 0x3b5   :  { %v2774_v23 = vadd.f32 %v2773_v63, %v2711_v57  ;;  %v2070_v0 = vadd.f32 %v2069_v30, %v1861_v49  ;;  %v3157_v49 = vld [vmem:[%s5725_s0 + $0x218] sm:$0xff] }
 0x3b6   :  { %v1863_v9 = vpop.f32.mrf.mxu1  ;;  %v2278_v39 = vpop.f32.mrf.mxu3  ;;  %2534 = vmatmul.f32.gmra.mxu0 %v3282_v16 }
 0x3b7   :  { %v2279_v52 = vadd.f32 %v2278_v39, %v2070_v0  ;;  %v1864_v53 = vadd.f32 %v1863_v9, %v4569_v32  ;;  %v3285_v0 = vld [vmem:[%s5725_s0 + $0x21a] sm:$0xff] }
 0x3b9   :  { %v2488_v20 = vadd.f32 %v2487_v35, %v2279_v52  ;;  %1910 = vmatmul.f32.gmra.mxu1 %v3281_v27  ;;  %2119 = vmatmul.f32.gmra.mxu2 %v3155_v1 }
 0x3bb   :  { %v2642_v34 = vadd.f32 %v2641_v42, %v2488_v20  ;;  %v2712_v19 = vmul.f32 %v2488_v20, %v2488_v20  ;;  %2848 = vst [vmem:[#allocation2 + $0x90] sm:$0xff] %v2488_v20  ;;  %2328 = vmatmul.f32.gmra.mxu3 %v3219_v18  ;;  %v2490_v54 = vpop.f32.mrf.mxu0  ;;  %v3221_v42 = vld [vmem:[%s5725_s0 + $0x219] sm:$0xff]  ;;  %v3158_v20 = vld [vmem:[%s5725_s0 + $0x228] sm:$0xff] }
 0x3bc   :  { %v2072_v3 = vpop.f32.mrf.mxu2 }
 0x3bd   :  { %v2775_v21 = vadd.f32 %v2774_v23, %v2712_v19  ;;  %v2073_v7 = vadd.f32 %v2072_v3, %v1864_v53  ;;  %v3222_v53 = vld [vmem:[%s5725_s0 + $0x229] sm:$0xff] }
 0x3be   :  { %v1866_v45 = vpop.f32.mrf.mxu1  ;;  %v2281_v29 = vpop.f32.mrf.mxu3  ;;  %2537 = vmatmul.f32.gmra.mxu0 %v3283_v15 }
 0x3bf   :  { %v2282_v32 = vadd.f32 %v2281_v29, %v2073_v7  ;;  %v1867_v27 = vadd.f32 %v1866_v45, %v4591_v41 }
 0x3c1   :  { %v2491_v12 = vadd.f32 %v2490_v54, %v2282_v32  ;;  %1913 = vmatmul.f32.gmra.mxu1 %v3282_v16  ;;  %2122 = vmatmul.f32.gmra.mxu2 %v3156_v8 }
 0x3c3   :  { %v2643_v38 = vadd.f32 %v2642_v34, %v2491_v12  ;;  %v2713_v63 = vmul.f32 %v2491_v12, %v2491_v12  ;;  %2849 = vst [vmem:[#allocation2 + $0x98] sm:$0xff] %v2491_v12  ;;  %2331 = vmatmul.f32.gmra.mxu3 %v3220_v50  ;;  %v2493_v13 = vpop.f32.mrf.mxu0  ;;  %v3159_v50 = vld [vmem:[%s5725_s0 + $0x230] sm:$0xff] }
 0x3c4   :  { %v2075_v47 = vpop.f32.mrf.mxu2  ;;  %v3223_v12 = vld [vmem:[%s5725_s0 + $0x231] sm:$0xff] }
 0x3c5   :  { %v2776_v51 = vadd.f32 %v2775_v21, %v2713_v63  ;;  %v2076_v28 = vadd.f32 %v2075_v47, %v1867_v27  ;;  %v3286_v21 = vld [vmem:[%s5725_s0 + $0x22a] sm:$0xff]  ;;  %v3287_v47 = vld [vmem:[%s5725_s0 + $0x232] sm:$0xff] }
 0x3c6   :  { %v1869_v46 = vpop.f32.mrf.mxu1  ;;  %v2284_v55 = vpop.f32.mrf.mxu3  ;;  %2540 = vmatmul.f32.gmra.mxu0 %v3284_v37 }
 0x3c7   :  { %v2285_v41 = vadd.f32 %v2284_v55, %v2076_v28  ;;  %v1870_v35 = vadd.f32 %v1869_v46, %v4607_v11 }
 0x3c9   :  { %v2494_v57 = vadd.f32 %v2493_v13, %v2285_v41  ;;  %1916 = vmatmul.f32.gmra.mxu1 %v3283_v15  ;;  %2125 = vmatmul.f32.gmra.mxu2 %v3157_v49  ;;  %v3160_v41 = vld [vmem:[%s5725_s0 + $0x240] sm:$0xff] }
 0x3cb   :  { %v2644_v16 = vadd.f32 %v2643_v38, %v2494_v57  ;;  %v2714_v30 = vmul.f32 %v2494_v57, %v2494_v57  ;;  %2850 = vst [vmem:[#allocation2 + $0xa0] sm:$0xff] %v2494_v57  ;;  %2334 = vmatmul.f32.gmra.mxu3 %v3221_v42  ;;  %v2496_v23 = vpop.f32.mrf.mxu0  ;;  %v3224_v42 = vld [vmem:[%s5725_s0 + $0x241] sm:$0xff] }
 0x3cc   :  { %v2078_v9 = vpop.f32.mrf.mxu2 }
 0x3cd   :  { %v2777_v39 = vadd.f32 %v2776_v51, %v2714_v30  ;;  %v2079_v1 = vadd.f32 %v2078_v9, %v1870_v35 }
 0x3ce   :  { %v1872_v52 = vpop.f32.mrf.mxu1  ;;  %v2287_v18 = vpop.f32.mrf.mxu3  ;;  %2543 = vmatmul.f32.gmra.mxu0 %v3285_v0 }
 0x3cf   :  { %v2288_v11 = vadd.f32 %v2287_v18, %v2079_v1  ;;  %v1873_v19 = vadd.f32 %v1872_v52, %v4620_v60 }
 0x3d1   :  { %v2497_v34 = vadd.f32 %v2496_v23, %v2288_v11  ;;  %1919 = vmatmul.f32.gmra.mxu1 %v3284_v37  ;;  %2128 = vmatmul.f32.gmra.mxu2 %v3158_v20  ;;  %v3161_v20 = vld [vmem:[%s5725_s0 + $0x248] sm:$0xff] }
 0x3d2   :  { %v3225_v11 = vld [vmem:[%s5725_s0 + $0x249] sm:$0xff] }
 0x3d3   :  { %v2645_v54 = vadd.f32 %v2644_v16, %v2497_v34  ;;  %v2715_v15 = vmul.f32 %v2497_v34, %v2497_v34  ;;  %2851 = vst [vmem:[#allocation2 + $0xa8] sm:$0xff] %v2497_v34  ;;  %2337 = vmatmul.f32.gmra.mxu3 %v3222_v53  ;;  %v2499_v3 = vpop.f32.mrf.mxu0 }
 0x3d4   :  { %v2081_v7 = vpop.f32.mrf.mxu2 }
 0x3d5   :  { %v2778_v45 = vadd.f32 %v2777_v39, %v2715_v15  ;;  %v2082_v29 = vadd.f32 %v2081_v7, %v1873_v19 }
 0x3d6   :  { %v1875_v8 = vpop.f32.mrf.mxu1  ;;  %v2290_v32 = vpop.f32.mrf.mxu3  ;;  %2546 = vmatmul.f32.gmra.mxu0 %v3286_v21 }
 0x3d7   :  { %v2291_v60 = vadd.f32 %v2290_v32, %v2082_v29  ;;  %v1876_v38 = vadd.f32 %v1875_v8, %v4633_v5  ;;  %v3162_v32 = vld [vmem:[%s5725_s0 + $0x258] sm:$0xff] }
 0x3d9   :  { %v2500_v27 = vadd.f32 %v2499_v3, %v2291_v60  ;;  %1922 = vmatmul.f32.gmra.mxu1 %v3285_v0  ;;  %2131 = vmatmul.f32.gmra.mxu2 %v3159_v50  ;;  %v3288_v0 = vld [vmem:[%s5725_s0 + $0x242] sm:$0xff]  ;;  %v3289_v3 = vld [vmem:[%s5725_s0 + $0x24a] sm:$0xff]  ;;  %v3226_v50 = vld [vmem:[%s5725_s0 + $0x259] sm:$0xff] }
 0x3db   :  { %v2646_v63 = vadd.f32 %v2645_v54, %v2500_v27  ;;  %v2716_v13 = vmul.f32 %v2500_v27, %v2500_v27  ;;  %2852 = vst [vmem:[#allocation2 + $0xb0] sm:$0xff] %v2500_v27  ;;  %2340 = vmatmul.f32.gmra.mxu3 %v3223_v12  ;;  %v2502_v37 = vpop.f32.mrf.mxu0 }
 0x3dc   :  { %v2084_v51 = vpop.f32.mrf.mxu2 }
 0x3dd   :  { %v2779_v28 = vadd.f32 %v2778_v45, %v2716_v13  ;;  %v2085_v46 = vadd.f32 %v2084_v51, %v1876_v38  ;;  %v3290_v13 = vld [vmem:[%s5725_s0 + $0x25a] sm:$0xff] }
 0x3de   :  { %v1878_v55 = vpop.f32.mrf.mxu1  ;;  %v2293_v49 = vpop.f32.mrf.mxu3  ;;  %2549 = vmatmul.f32.gmra.mxu0 %v3287_v47 }
 0x3df   :  { %v2294_v5 = vadd.f32 %v2293_v49, %v2085_v46  ;;  %v1879_v35 = vadd.f32 %v1878_v55, %v4655_v44  ;;  %v3163_v55 = vld [vmem:[%s5725_s0 + $0x260] sm:$0xff] }
 0x3e0   :  { %v3227_v49 = vld [vmem:[%s5725_s0 + $0x261] sm:$0xff] }
 0x3e1   :  { %v2503_v57 = vadd.f32 %v2502_v37, %v2294_v5  ;;  %1925 = vmatmul.f32.gmra.mxu1 %v3286_v21  ;;  %2134 = vmatmul.f32.gmra.mxu2 %v3160_v41 }
 0x3e3   :  { %v2647_v16 = vadd.f32 %v2646_v63, %v2503_v57  ;;  %v2717_v30 = vmul.f32 %v2503_v57, %v2503_v57  ;;  %2853 = vst [vmem:[#allocation2 + $0xb8] sm:$0xff] %v2503_v57  ;;  %2343 = vmatmul.f32.gmra.mxu3 %v3224_v42  ;;  %v2505_v23 = vpop.f32.mrf.mxu0 }
 0x3e4   :  { %v2087_v9 = vpop.f32.mrf.mxu2 }
 0x3e5   :  { %v2780_v39 = vadd.f32 %v2779_v28, %v2717_v30  ;;  %v2088_v1 = vadd.f32 %v2087_v9, %v1879_v35 }
 0x3e6   :  { %v1881_v52 = vpop.f32.mrf.mxu1  ;;  %v2296_v18 = vpop.f32.mrf.mxu3  ;;  %2552 = vmatmul.f32.gmra.mxu0 %v3288_v0 }
 0x3e7   :  { %v2297_v44 = vadd.f32 %v2296_v18, %v2088_v1  ;;  %v1882_v34 = vadd.f32 %v1881_v52, %v4671_v24  ;;  %v3164_v1 = vld [vmem:[%s5725_s0 + $0x270] sm:$0xff] }
 0x3e8   :  { %v3228_v52 = vld [vmem:[%s5725_s0 + $0x271] sm:$0xff] }
 0x3e9   :  { %v2506_v53 = vadd.f32 %v2505_v23, %v2297_v44  ;;  %1928 = vmatmul.f32.gmra.mxu1 %v3287_v47  ;;  %2137 = vmatmul.f32.gmra.mxu2 %v3161_v20 }
 0x3eb   :  { %v2648_v19 = vadd.f32 %v2647_v16, %v2506_v53  ;;  %v2718_v54 = vmul.f32 %v2506_v53, %v2506_v53  ;;  %2854 = vst [vmem:[#allocation2 + $0xc0] sm:$0xff] %v2506_v53  ;;  %2346 = vmatmul.f32.gmra.mxu3 %v3225_v11  ;;  %v2508_v15 = vpop.f32.mrf.mxu0  ;;  %v3291_v16 = vld [vmem:[%s5725_s0 + $0x262] sm:$0xff] }
 0x3ec   :  { %v2090_v21 = vpop.f32.mrf.mxu2 }
 0x3ed   :  { %v2781_v7 = vadd.f32 %v2780_v39, %v2718_v54  ;;  %v2091_v45 = vadd.f32 %v2090_v21, %v1882_v34  ;;  %v3292_v34 = vld [vmem:[%s5725_s0 + $0x272] sm:$0xff] }
 0x3ee   :  { %v1884_v29 = vpop.f32.mrf.mxu1  ;;  %v2299_v8 = vpop.f32.mrf.mxu3  ;;  %2555 = vmatmul.f32.gmra.mxu0 %v3289_v3 }
 0x3ef   :  { %v2300_v24 = vadd.f32 %v2299_v8, %v2091_v45  ;;  %v1885_v12 = vadd.f32 %v1884_v29, %v4684_v59  ;;  %v3229_v45 = vld [vmem:[%s5725_s0 + $0x279] sm:$0xff] }
 0x3f1   :  { %v2509_v60 = vadd.f32 %v2508_v15, %v2300_v24  ;;  %1931 = vmatmul.f32.gmra.mxu1 %v3288_v0  ;;  %2140 = vmatmul.f32.gmra.mxu2 %v3162_v32 }
 0x3f3   :  { %v2649_v27 = vadd.f32 %v2648_v19, %v2509_v60  ;;  %v2719_v38 = vmul.f32 %v2509_v60, %v2509_v60  ;;  %2855 = vst [vmem:[#allocation2 + $0xc8] sm:$0xff] %v2509_v60  ;;  %2349 = vmatmul.f32.gmra.mxu3 %v3226_v50  ;;  %v2511_v63 = vpop.f32.mrf.mxu0  ;;  %v3293_v60 = vld [vmem:[%s5725_s0 + $0x27a] sm:$0xff] }
 0x3f4   :  { %v2093_v37 = vpop.f32.mrf.mxu2 }
 0x3f5   :  { %v2782_v47 = vadd.f32 %v2781_v7, %v2719_v38  ;;  %v2094_v51 = vadd.f32 %v2093_v37, %v1885_v12  ;;  %v3165_v7 = vld [vmem:[%s5725_s0 + $0x278] sm:$0xff]  ;;  %v3166_v37 = vld [vmem:[%s5725_s0 + $0x288] sm:$0xff] }
 0x3f6   :  { %v1887_v28 = vpop.f32.mrf.mxu1  ;;  %v2302_v46 = vpop.f32.mrf.mxu3  ;;  %2558 = vmatmul.f32.gmra.mxu0 %v3290_v13 }
 0x3f7   :  { %v2303_v59 = vadd.f32 %v2302_v46, %v2094_v51  ;;  %v1888_v5 = vadd.f32 %v1887_v28, %v4697_v31 }
 0x3f9   :  { %v2512_v41 = vadd.f32 %v2511_v63, %v2303_v59  ;;  %1934 = vmatmul.f32.gmra.mxu1 %v3289_v3  ;;  %2143 = vmatmul.f32.gmra.mxu2 %v3163_v55 }
 0x3fb   :  { %v2650_v42 = vadd.f32 %v2649_v27, %v2512_v41  ;;  %v2720_v57 = vmul.f32 %v2512_v41, %v2512_v41  ;;  %2856 = vst [vmem:[#allocation2 + $0xd0] sm:$0xff] %v2512_v41  ;;  %2352 = vmatmul.f32.gmra.mxu3 %v3227_v49  ;;  %v2514_v35 = vpop.f32.mrf.mxu0  ;;  %v3294_v49 = vld [vmem:[%s5725_s0 + $0x28a] sm:$0xff] }
 0x3fc   :  { %v2096_v30 = vpop.f32.mrf.mxu2 }
 0x3fd   :  { %v2783_v23 = vadd.f32 %v2782_v47, %v2720_v57  ;;  %v2097_v0 = vadd.f32 %v2096_v30, %v1888_v5  ;;  %v3230_v47 = vld [vmem:[%s5725_s0 + $0x289] sm:$0xff]  ;;  %v3231_v30 = vld [vmem:[%s5725_s0 + $0x291] sm:$0xff] }
 0x3fe   :  { %v1890_v9 = vpop.f32.mrf.mxu1  ;;  %v2305_v39 = vpop.f32.mrf.mxu3  ;;  %2561 = vmatmul.f32.gmra.mxu0 %v3291_v16 }
 0x3ff   :  { %v2306_v31 = vadd.f32 %v2305_v39, %v2097_v0  ;;  %v1891_v20 = vadd.f32 %v1890_v9, %v4724_v10 }
 0x401   :  { %v2515_v18 = vadd.f32 %v2514_v35, %v2306_v31  ;;  %1937 = vmatmul.f32.gmra.mxu1 %v3290_v13  ;;  %2146 = vmatmul.f32.gmra.mxu2 %v3164_v1  ;;  %v3295_v31 = vld [vmem:[%s5725_s0 + $0x292] sm:$0xff] }
 0x403   :  { %v2651_v44 = vadd.f32 %v2650_v42, %v2515_v18  ;;  %v2721_v11 = vmul.f32 %v2515_v18, %v2515_v18  ;;  %2857 = vst [vmem:[#allocation2 + $0xd8] sm:$0xff] %v2515_v18  ;;  %2355 = vmatmul.f32.gmra.mxu3 %v3228_v52  ;;  %v2517_v53 = vpop.f32.mrf.mxu0 }
 0x404   :  { %v2099_v19 = vpop.f32.mrf.mxu2 }
 0x405   :  { %v2784_v54 = vadd.f32 %v2783_v23, %v2721_v11  ;;  %v2100_v15 = vadd.f32 %v2099_v19, %v1891_v20 }
 0x406   :  { %v1893_v3 = vpop.f32.mrf.mxu1  ;;  %v2308_v21 = vpop.f32.mrf.mxu3  ;;  %2564 = vmatmul.f32.gmra.mxu0 %v3292_v34 }
 0x407   :  { %v2309_v10 = vadd.f32 %v2308_v21, %v2100_v15  ;;  %v1894_v8 = vadd.f32 %v1893_v3, %v4740_v56 }
 0x409   :  { %v2518_v29 = vadd.f32 %v2517_v53, %v2309_v10  ;;  %1940 = vmatmul.f32.gmra.mxu1 %v3291_v16  ;;  %2149 = vmatmul.f32.gmra.mxu2 %v3165_v7  ;;  %v3167_v16 = vld [vmem:[%s5725_s0 + $0x290] sm:$0xff]  ;;  %v3168_v53 = vld [vmem:[%s5725_s0 + $0x2a0] sm:$0xff] }
 0x40a   :  { %v3296_v7 = vld [vmem:[%s5725_s0 + $0x2a2] sm:$0xff] }
 0x40b   :  { %v2652_v32 = vadd.f32 %v2651_v44, %v2518_v29  ;;  %v2722_v24 = vmul.f32 %v2518_v29, %v2518_v29  ;;  %2858 = vst [vmem:[#allocation2 + $0xe0] sm:$0xff] %v2518_v29  ;;  %2358 = vmatmul.f32.gmra.mxu3 %v3229_v45  ;;  %v2520_v50 = vpop.f32.mrf.mxu0 }
 0x40c   :  { %v2102_v12 = vpop.f32.mrf.mxu2 }
 0x40d   :  { %v2785_v27 = vadd.f32 %v2784_v54, %v2722_v24  ;;  %v2103_v38 = vadd.f32 %v2102_v12, %v1894_v8  ;;  %v3169_v24 = vld [vmem:[%s5725_s0 + $0x2a8] sm:$0xff] }
 0x40e   :  { %v1896_v63 = vpop.f32.mrf.mxu1  ;;  %v2311_v13 = vpop.f32.mrf.mxu3  ;;  %2567 = vmatmul.f32.gmra.mxu0 %v3293_v60 }
 0x40f   :  { %v2312_v56 = vadd.f32 %v2311_v13, %v2103_v38  ;;  %v1897_v28 = vadd.f32 %v1896_v63, %v4753_v6  ;;  %v3297_v13 = vld [vmem:[%s5725_s0 + $0x2aa] sm:$0xff] }
 0x411   :  { %v2521_v51 = vadd.f32 %v2520_v50, %v2312_v56  ;;  %1943 = vmatmul.f32.gmra.mxu1 %v3292_v34  ;;  %2152 = vmatmul.f32.gmra.mxu2 %v3166_v37  ;;  %v3232_v34 = vld [vmem:[%s5725_s0 + $0x2a1] sm:$0xff]  ;;  %v3233_v50 = vld [vmem:[%s5725_s0 + $0x2a9] sm:$0xff] }
 0x413   :  { %v2653_v46 = vadd.f32 %v2652_v32, %v2521_v51  ;;  %v2723_v55 = vmul.f32 %v2521_v51, %v2521_v51  ;;  %2859 = vst [vmem:[#allocation2 + $0xe8] sm:$0xff] %v2521_v51  ;;  %2361 = vmatmul.f32.gmra.mxu3 %v3230_v47  ;;  %v2523_v59 = vpop.f32.mrf.mxu0 }
 0x414   :  { %v2105_v41 = vpop.f32.mrf.mxu2 }
 0x415   :  { %v2786_v5 = vadd.f32 %v2785_v27, %v2723_v55  ;;  %v2106_v42 = vadd.f32 %v2105_v41, %v1897_v28  ;;  %v3234_v55 = vld [vmem:[%s5725_s0 + $0x2b9] sm:$0xff] }
 0x416   :  { %v1899_v57 = vpop.f32.mrf.mxu1  ;;  %v2314_v35 = vpop.f32.mrf.mxu3  ;;  %2570 = vmatmul.f32.gmra.mxu0 %v3294_v49 }
 0x417   :  { %v2315_v6 = vadd.f32 %v2314_v35, %v2106_v42  ;;  %v1900_v0 = vadd.f32 %v1899_v57, %v4766_v22  ;;  %v3298_v57 = vld [vmem:[%s5725_s0 + $0x2ba] sm:$0xff] }
 0x419   :  { %v2524_v23 = vadd.f32 %v2523_v59, %v2315_v6  ;;  %1946 = vmatmul.f32.gmra.mxu1 %v3293_v60  ;;  %2155 = vmatmul.f32.gmra.mxu2 %v3167_v16 }
 0x41b   :  { %v2654_v9 = vadd.f32 %v2653_v46, %v2524_v23  ;;  %v2724_v39 = vmul.f32 %v2524_v23, %v2524_v23  ;;  %2860 = vst [vmem:[#allocation2 + $0xf0] sm:$0xff] %v2524_v23  ;;  %2364 = vmatmul.f32.gmra.mxu3 %v3231_v30  ;;  %v2526_v1 = vpop.f32.mrf.mxu0  ;;  %v3170_v46 = vld [vmem:[%s5725_s0 + $0x2b8] sm:$0xff] }
 0x41c   :  { %v2108_v52 = vpop.f32.mrf.mxu2 }
 0x41d   :  { %v2787_v18 = vadd.f32 %v2786_v5, %v2724_v39  ;;  %v2109_v20 = vadd.f32 %v2108_v52, %v1900_v0  ;;  %v3171_v0 = vld [vmem:[%s5725_s0 + $0x2c0] sm:$0xff] }
 0x41e   :  { %v1902_v44 = vpop.f32.mrf.mxu1  ;;  %v2317_v11 = vpop.f32.mrf.mxu3  ;;  %2573 = vmatmul.f32.gmra.mxu0 %v3295_v31 }
 0x41f   :  { %v2318_v22 = vadd.f32 %v2317_v11, %v2109_v20  ;;  %v1903_v54 = vadd.f32 %v1902_v44, %v4788_v58  ;;  %v3299_v20 = vld [vmem:[%s5725_s0 + $0x2c2] sm:$0xff] }
 0x421   :  { %v2527_v19 = vadd.f32 %v2526_v1, %v2318_v22  ;;  %1949 = vmatmul.f32.gmra.mxu1 %v3294_v49  ;;  %2158 = vmatmul.f32.gmra.mxu2 %v3168_v53 }
 0x423   :  { %v2655_v15 = vadd.f32 %v2654_v9, %v2527_v19  ;;  %v2725_v3 = vmul.f32 %v2527_v19, %v2527_v19  ;;  %2861 = vst [vmem:[#allocation2 + $0xf8] sm:$0xff] %v2527_v19  ;;  %2367 = vmatmul.f32.gmra.mxu3 %v3232_v34  ;;  %v2529_v21 = vpop.f32.mrf.mxu0  ;;  %v3235_v9 = vld [vmem:[%s5725_s0 + $0x2c1] sm:$0xff]  ;;  %v3172_v19 = vld [vmem:[%s5725_s0 + $0x2d0] sm:$0xff] }
 0x424   :  { %v2111_v10 = vpop.f32.mrf.mxu2 }
 0x425   :  { %v2788_v45 = vadd.f32 %v2787_v18, %v2725_v3  ;;  %v2112_v29 = vadd.f32 %v2111_v10, %v1903_v54  ;;  %v3236_v54 = vld [vmem:[%s5725_s0 + $0x2d1] sm:$0xff] }
 0x426   :  { %v1905_v8 = vpop.f32.mrf.mxu1  ;;  %v2320_v32 = vpop.f32.mrf.mxu3  ;;  %2576 = vmatmul.f32.gmra.mxu0 %v3296_v7 }
 0x427   :  { %v2321_v58 = vadd.f32 %v2320_v32, %v2112_v29  ;;  %v1906_v12 = vadd.f32 %v1905_v8, %v4804_v62 }
 0x429   :  { %v2530_v60 = vadd.f32 %v2529_v21, %v2321_v58  ;;  %1952 = vmatmul.f32.gmra.mxu1 %v3295_v31  ;;  %2161 = vmatmul.f32.gmra.mxu2 %v3169_v24 }
 0x42b   :  { %v2656_v27 = vadd.f32 %v2655_v15, %v2530_v60  ;;  %v2726_v38 = vmul.f32 %v2530_v60, %v2530_v60  ;;  %2862 = vst [vmem:[#allocation2 + $0x100] sm:$0xff] %v2530_v60  ;;  %2370 = vmatmul.f32.gmra.mxu3 %v3233_v50  ;;  %v2532_v63 = vpop.f32.mrf.mxu0  ;;  %v3173_v50 = vld [vmem:[%s5725_s0 + $0x2d8] sm:$0xff] }
 0x42c   :  { %v2114_v37 = vpop.f32.mrf.mxu2  ;;  %v3237_v60 = vld [vmem:[%s5725_s0 + $0x2d9] sm:$0xff] }
 0x42d   :  { %v2789_v56 = vadd.f32 %v2788_v45, %v2726_v38  ;;  %v2115_v47 = vadd.f32 %v2114_v37, %v1906_v12  ;;  %v3300_v45 = vld [vmem:[%s5725_s0 + $0x2d2] sm:$0xff]  ;;  %v3301_v37 = vld [vmem:[%s5725_s0 + $0x2da] sm:$0xff] }
 0x42e   :  { %v1908_v51 = vpop.f32.mrf.mxu1  ;;  %v2323_v28 = vpop.f32.mrf.mxu3  ;;  %2579 = vmatmul.f32.gmra.mxu0 %v3297_v13 }
 0x42f   :  { %v2324_v62 = vadd.f32 %v2323_v28, %v2115_v47  ;;  %v1909_v49 = vadd.f32 %v1908_v51, %v4817_v36 }
 0x431   :  { %v2533_v59 = vadd.f32 %v2532_v63, %v2324_v62  ;;  %1955 = vmatmul.f32.gmra.mxu1 %v3296_v7  ;;  %2164 = vmatmul.f32.gmra.mxu2 %v3170_v46  ;;  %v3174_v62 = vld [vmem:[%s5725_s0 + $0x2e8] sm:$0xff] }
 0x433   :  { %v2657_v41 = vadd.f32 %v2656_v27, %v2533_v59  ;;  %v2727_v5 = vmul.f32 %v2533_v59, %v2533_v59  ;;  %2863 = vst [vmem:[#allocation2 + $0x108] sm:$0xff] %v2533_v59  ;;  %2373 = vmatmul.f32.gmra.mxu3 %v3234_v55  ;;  %v2535_v42 = vpop.f32.mrf.mxu0  ;;  %v3238_v55 = vld [vmem:[%s5725_s0 + $0x2e9] sm:$0xff] }
 0x434   :  { %v2117_v35 = vpop.f32.mrf.mxu2 }
 0x435   :  { %v2790_v16 = vadd.f32 %v2789_v56, %v2727_v5  ;;  %v2118_v6 = vadd.f32 %v2117_v35, %v1909_v49 }
 0x436   :  { %v1911_v30 = vpop.f32.mrf.mxu1  ;;  %v2326_v23 = vpop.f32.mrf.mxu3  ;;  %2582 = vmatmul.f32.gmra.mxu0 %v3298_v57 }
 0x437   :  { %v2327_v36 = vadd.f32 %v2326_v23, %v2118_v6  ;;  %v1912_v1 = vadd.f32 %v1911_v30, %v4830_v43 }
 0x439   :  { %v2536_v39 = vadd.f32 %v2535_v42, %v2327_v36  ;;  %1958 = vmatmul.f32.gmra.mxu1 %v3297_v13  ;;  %2167 = vmatmul.f32.gmra.mxu2 %v3171_v0  ;;  %v3175_v0 = vld [vmem:[%s5725_s0 + $0x2f0] sm:$0xff] }
 0x43a   :  { %v3239_v36 = vld [vmem:[%s5725_s0 + $0x2f1] sm:$0xff] }
 0x43b   :  { %v2658_v31 = vadd.f32 %v2657_v41, %v2536_v39  ;;  %v2728_v52 = vmul.f32 %v2536_v39, %v2536_v39  ;;  %2864 = vst [vmem:[#allocation2 + $0x110] sm:$0xff] %v2536_v39  ;;  %2376 = vmatmul.f32.gmra.mxu3 %v3235_v9  ;;  %v2538_v18 = vpop.f32.mrf.mxu0 }
 0x43c   :  { %v2120_v44 = vpop.f32.mrf.mxu2 }
 0x43d   :  { %v2791_v11 = vadd.f32 %v2790_v16, %v2728_v52  ;;  %v2121_v53 = vadd.f32 %v2120_v44, %v1912_v1 }
 0x43e   :  { %v1914_v22 = vpop.f32.mrf.mxu1  ;;  %v2329_v34 = vpop.f32.mrf.mxu3  ;;  %2585 = vmatmul.f32.gmra.mxu0 %v3299_v20 }
 0x43f   :  { %v2330_v43 = vadd.f32 %v2329_v34, %v2121_v53  ;;  %v1915_v3 = vadd.f32 %v1914_v22, %v4852_v14  ;;  %v3176_v34 = vld [vmem:[%s5725_s0 + $0x300] sm:$0xff] }
 0x441   :  { %v2539_v15 = vadd.f32 %v2538_v18, %v2330_v43  ;;  %1961 = vmatmul.f32.gmra.mxu1 %v3298_v57  ;;  %2170 = vmatmul.f32.gmra.mxu2 %v3172_v19  ;;  %v3302_v57 = vld [vmem:[%s5725_s0 + $0x2ea] sm:$0xff]  ;;  %v3303_v18 = vld [vmem:[%s5725_s0 + $0x2f2] sm:$0xff]  ;;  %v3240_v19 = vld [vmem:[%s5725_s0 + $0x301] sm:$0xff] }
 0x443   :  { %v2659_v21 = vadd.f32 %v2658_v31, %v2539_v15  ;;  %v2729_v7 = vmul.f32 %v2539_v15, %v2539_v15  ;;  %2865 = vst [vmem:[#allocation2 + $0x118] sm:$0xff] %v2539_v15  ;;  %2379 = vmatmul.f32.gmra.mxu3 %v3236_v54  ;;  %v2541_v10 = vpop.f32.mrf.mxu0 }
 0x444   :  { %v2123_v29 = vpop.f32.mrf.mxu2 }
 0x445   :  { %v2792_v8 = vadd.f32 %v2791_v11, %v2729_v7  ;;  %v2124_v32 = vadd.f32 %v2123_v29, %v1915_v3  ;;  %v3304_v7 = vld [vmem:[%s5725_s0 + $0x302] sm:$0xff] }
 0x446   :  { %v1917_v24 = vpop.f32.mrf.mxu1  ;;  %v2332_v58 = vpop.f32.mrf.mxu3  ;;  %2588 = vmatmul.f32.gmra.mxu0 %v3300_v45 }
 0x447   :  { %v2333_v14 = vadd.f32 %v2332_v58, %v2124_v32  ;;  %v1918_v27 = vadd.f32 %v1917_v24, %v4868_v26  ;;  %v3177_v24 = vld [vmem:[%s5725_s0 + $0x308] sm:$0xff] }
 0x448   :  { %v3241_v58 = vld [vmem:[%s5725_s0 + $0x309] sm:$0xff] }
 0x449   :  { %v2542_v12 = vadd.f32 %v2541_v10, %v2333_v14  ;;  %1964 = vmatmul.f32.gmra.mxu1 %v3299_v20  ;;  %2173 = vmatmul.f32.gmra.mxu2 %v3173_v50 }
 0x44b   :  { %v2660_v38 = vadd.f32 %v2659_v21, %v2542_v12  ;;  %v2730_v63 = vmul.f32 %v2542_v12, %v2542_v12  ;;  %2866 = vst [vmem:[#allocation2 + $0x120] sm:$0xff] %v2542_v12  ;;  %2382 = vmatmul.f32.gmra.mxu3 %v3237_v60  ;;  %v2544_v13 = vpop.f32.mrf.mxu0 }
 0x44c   :  { %v2126_v56 = vpop.f32.mrf.mxu2 }
 0x44d   :  { %v2793_v47 = vadd.f32 %v2792_v8, %v2730_v63  ;;  %v2127_v51 = vadd.f32 %v2126_v56, %v1918_v27 }
 0x44e   :  { %v1920_v28 = vpop.f32.mrf.mxu1  ;;  %v2335_v46 = vpop.f32.mrf.mxu3  ;;  %2591 = vmatmul.f32.gmra.mxu0 %v3301_v37 }
 0x44f   :  { %v2336_v26 = vadd.f32 %v2335_v46, %v2127_v51  ;;  %v1921_v49 = vadd.f32 %v1920_v28, %v4881_v2  ;;  %v3178_v51 = vld [vmem:[%s5725_s0 + $0x318] sm:$0xff] }
 0x450   :  { %v3242_v28 = vld [vmem:[%s5725_s0 + $0x319] sm:$0xff] }
 0x451   :  { %v2545_v59 = vadd.f32 %v2544_v13, %v2336_v26  ;;  %1967 = vmatmul.f32.gmra.mxu1 %v3300_v45  ;;  %2176 = vmatmul.f32.gmra.mxu2 %v3174_v62 }
 0x453   :  { %v2661_v41 = vadd.f32 %v2660_v38, %v2545_v59  ;;  %v2731_v5 = vmul.f32 %v2545_v59, %v2545_v59  ;;  %2867 = vst [vmem:[#allocation2 + $0x128] sm:$0xff] %v2545_v59  ;;  %2385 = vmatmul.f32.gmra.mxu3 %v3238_v55  ;;  %v2547_v42 = vpop.f32.mrf.mxu0  ;;  %v3305_v38 = vld [vmem:[%s5725_s0 + $0x30a] sm:$0xff] }
 0x454   :  { %v2129_v35 = vpop.f32.mrf.mxu2 }
 0x455   :  { %v2794_v16 = vadd.f32 %v2793_v47, %v2731_v5  ;;  %v2130_v6 = vadd.f32 %v2129_v35, %v1921_v49  ;;  %v3306_v49 = vld [vmem:[%s5725_s0 + $0x31a] sm:$0xff] }
 0x456   :  { %v1923_v30 = vpop.f32.mrf.mxu1  ;;  %v2338_v23 = vpop.f32.mrf.mxu3  ;;  %2594 = vmatmul.f32.gmra.mxu0 %v3302_v57 }
 0x457   :  { %v2339_v2 = vadd.f32 %v2338_v23, %v2130_v6  ;;  %v1924_v39 = vadd.f32 %v1923_v30, %v4894_v61  ;;  %v3243_v6 = vld [vmem:[%s5725_s0 + $0x321] sm:$0xff] }
 0x459   :  { %v2548_v9 = vadd.f32 %v2547_v42, %v2339_v2  ;;  %1970 = vmatmul.f32.gmra.mxu1 %v3301_v37  ;;  %2179 = vmatmul.f32.gmra.mxu2 %v3175_v0 }
 0x45b   :  { %v2662_v1 = vadd.f32 %v2661_v41, %v2548_v9  ;;  %v2732_v31 = vmul.f32 %v2548_v9, %v2548_v9  ;;  %2868 = vst [vmem:[#allocation2 + $0x130] sm:$0xff] %v2548_v9  ;;  %2388 = vmatmul.f32.gmra.mxu3 %v3239_v36  ;;  %v2550_v52 = vpop.f32.mrf.mxu0  ;;  %v3307_v9 = vld [vmem:[%s5725_s0 + $0x322] sm:$0xff] }
 0x45c   :  { %v2132_v20 = vpop.f32.mrf.mxu2 }
 0x45d   :  { %v2795_v44 = vadd.f32 %v2794_v16, %v2732_v31  ;;  %v2133_v11 = vadd.f32 %v2132_v20, %v1924_v39  ;;  %v3179_v16 = vld [vmem:[%s5725_s0 + $0x320] sm:$0xff]  ;;  %v3180_v20 = vld [vmem:[%s5725_s0 + $0x330] sm:$0xff] }
 0x45e   :  { %v1926_v53 = vpop.f32.mrf.mxu1  ;;  %v2341_v22 = vpop.f32.mrf.mxu3  ;;  %2597 = vmatmul.f32.gmra.mxu0 %v3303_v18 }
 0x45f   :  { %v2342_v61 = vadd.f32 %v2341_v22, %v2133_v11  ;;  %v1927_v54 = vadd.f32 %v1926_v53, %v4916_v48 }
 0x461   :  { %v2551_v43 = vadd.f32 %v2550_v52, %v2342_v61  ;;  %1973 = vmatmul.f32.gmra.mxu1 %v3302_v57  ;;  %2182 = vmatmul.f32.gmra.mxu2 %v3176_v34 }
 0x463   :  { %v2663_v15 = vadd.f32 %v2662_v1, %v2551_v43  ;;  %v2733_v3 = vmul.f32 %v2551_v43, %v2551_v43  ;;  %2869 = vst [vmem:[#allocation2 + $0x138] sm:$0xff] %v2551_v43  ;;  %2391 = vmatmul.f32.gmra.mxu3 %v3240_v19  ;;  %v2553_v21 = vpop.f32.mrf.mxu0  ;;  %v3308_v19 = vld [vmem:[%s5725_s0 + $0x332] sm:$0xff] }
 0x464   :  { %v2135_v10 = vpop.f32.mrf.mxu2 }
 0x465   :  { %v2796_v45 = vadd.f32 %v2795_v44, %v2733_v3  ;;  %v2136_v29 = vadd.f32 %v2135_v10, %v1927_v54  ;;  %v3244_v44 = vld [vmem:[%s5725_s0 + $0x331] sm:$0xff]  ;;  %v3245_v10 = vld [vmem:[%s5725_s0 + $0x339] sm:$0xff] }
 0x466   :  { %v1929_v8 = vpop.f32.mrf.mxu1  ;;  %v2344_v32 = vpop.f32.mrf.mxu3  ;;  %2600 = vmatmul.f32.gmra.mxu0 %v3304_v7 }
 0x467   :  { %v2345_v48 = vadd.f32 %v2344_v32, %v2136_v29  ;;  %v1930_v14 = vadd.f32 %v1929_v8, %v4932_v17 }
 0x469   :  { %v2554_v50 = vadd.f32 %v2553_v21, %v2345_v48  ;;  %1976 = vmatmul.f32.gmra.mxu1 %v3303_v18  ;;  %2185 = vmatmul.f32.gmra.mxu2 %v3177_v24  ;;  %v3309_v48 = vld [vmem:[%s5725_s0 + $0x33a] sm:$0xff] }
 0x46b   :  { %v2664_v60 = vadd.f32 %v2663_v15, %v2554_v50  ;;  %v2734_v12 = vmul.f32 %v2554_v50, %v2554_v50  ;;  %2870 = vst [vmem:[#allocation2 + $0x140] sm:$0xff] %v2554_v50  ;;  %2394 = vmatmul.f32.gmra.mxu3 %v3241_v58  ;;  %v2556_v27 = vpop.f32.mrf.mxu0 }
 0x46c   :  { %v2138_v63 = vpop.f32.mrf.mxu2 }
 0x46d   :  { %v2797_v13 = vadd.f32 %v2796_v45, %v2734_v12  ;;  %v2139_v37 = vadd.f32 %v2138_v63, %v1930_v14 }
 0x46e   :  { %v1932_v56 = vpop.f32.mrf.mxu1  ;;  %v2347_v47 = vpop.f32.mrf.mxu3  ;;  %2603 = vmatmul.f32.gmra.mxu0 %v3305_v38 }
 0x46f   :  { %v2348_v17 = vadd.f32 %v2347_v47, %v2139_v37  ;;  %v1933_v62 = vadd.f32 %v1932_v56, %v4945_v40 }
 0x471   :  { %v2557_v46 = vadd.f32 %v2556_v27, %v2348_v17  ;;  %1979 = vmatmul.f32.gmra.mxu1 %v3304_v7  ;;  %2188 = vmatmul.f32.gmra.mxu2 %v3178_v51  ;;  %v3181_v7 = vld [vmem:[%s5725_s0 + $0x338] sm:$0xff]  ;;  %v3182_v27 = vld [vmem:[%s5725_s0 + $0x348] sm:$0xff] }
 0x472   :  { %v3310_v17 = vld [vmem:[%s5725_s0 + $0x34a] sm:$0xff] }
 0x473   :  { %v2665_v26 = vadd.f32 %v2664_v60, %v2557_v46  ;;  %v2735_v55 = vmul.f32 %v2557_v46, %v2557_v46  ;;  %2871 = vst [vmem:[#allocation2 + $0x148] sm:$0xff] %v2557_v46  ;;  %2397 = vmatmul.f32.gmra.mxu3 %v3242_v28  ;;  %v2559_v59 = vpop.f32.mrf.mxu0 }
 0x474   :  { %v2141_v41 = vpop.f32.mrf.mxu2 }
 0x475   :  { %v2798_v5 = vadd.f32 %v2797_v13, %v2735_v55  ;;  %v2142_v42 = vadd.f32 %v2141_v41, %v1933_v62  ;;  %v5782_v13 = vld [vmem:[#allocation25_spill] sm:$0xff] }
 0x476   :  { %v1935_v57 = vpop.f32.mrf.mxu1  ;;  %v2350_v35 = vpop.f32.mrf.mxu3  ;;  %2606 = vmatmul.f32.gmra.mxu0 %v3306_v49  ;;  %v3247_v41 = vld [vmem:[%s5725_s0 + $0x351] sm:$0xff] }
 0x477   :  { %v2351_v40 = vadd.f32 %v2350_v35, %v2142_v42  ;;  %v1936_v23 = vadd.f32 %v1935_v57, %v4958_v25  ;;  %v5783_v42 = vld [vmem:[#allocation8_spill] sm:$0xff] }
 0x479   :  { %v2560_v30 = vadd.f32 %v2559_v59, %v2351_v40  ;;  %1982 = vmatmul.f32.gmra.mxu1 %v3305_v38  ;;  %2191 = vmatmul.f32.gmra.mxu2 %v3179_v16  ;;  %v3246_v38 = vld [vmem:[%s5725_s0 + $0x349] sm:$0xff] }
 0x47a   :  { %v3183_v59 = vld [vmem:[%s5725_s0 + $0x350] sm:$0xff] }
 0x47b   :  { %v2666_v0 = vadd.f32 %v2665_v26, %v2560_v30  ;;  %v2736_v2 = vmul.f32 %v2560_v30, %v2560_v30  ;;  %2872 = vst [vmem:[#allocation2 + $0x150] sm:$0xff] %v2560_v30  ;;  %2400 = vmatmul.f32.gmra.mxu3 %v3243_v6  ;;  %v2562_v36 = vpop.f32.mrf.mxu0  ;;  %v3311_v6 = vld [vmem:[%s5725_s0 + $0x352] sm:$0xff]  ;;  %s3419_s0 = smov [#allocation2]  }
 0x47c   :  { %v2144_v39 = vpop.f32.mrf.mxu2  ;;  %s2898_s2 = sshll.u32 %s3419_s0, 4  ;;  %s2899_s2 = int_to_ptr.vmem [resolvable:$true] %s2898_s2 }
 0x47d   :  { %v2799_v1 = vadd.f32 %v2798_v5, %v2736_v2  ;;  %v2145_v31 = vadd.f32 %v2144_v39, %v1936_v23 }
 0x47e   :  { %v1938_v52 = vpop.f32.mrf.mxu1  ;;  %v2353_v18 = vpop.f32.mrf.mxu3  ;;  %2609 = vmatmul.f32.gmra.mxu0 %v3307_v9 }
 0x47f   :  { %v2354_v25 = vadd.f32 %v2353_v18, %v2145_v31  ;;  %v1939_v53 = vadd.f32 %v1938_v52, %v4971_v4 }
 0x481   :  { %v2563_v11 = vadd.f32 %v2562_v36, %v2354_v25  ;;  %1985 = vmatmul.f32.gmra.mxu1 %v3306_v49  ;;  %2194 = vmatmul.f32.gmra.mxu2 %v3180_v20 }
 0x483   :  { %v2667_v22 = vadd.f32 %v2666_v0, %v2563_v11  ;;  %v2737_v34 = vmul.f32 %v2563_v11, %v2563_v11  ;;  %2873 = vst [vmem:[#allocation2 + $0x158] sm:$0xff] %v2563_v11  ;;  %2403 = vmatmul.f32.gmra.mxu3 %v3244_v44  ;;  %v2565_v61 = vpop.f32.mrf.mxu0 }
 0x484   :  { %v2147_v43 = vpop.f32.mrf.mxu2 }
 0x485   :  { %v2800_v54 = vadd.f32 %v2799_v1, %v2737_v34  ;;  %v2148_v15 = vadd.f32 %v2147_v43, %v1939_v53  ;;  %v5784_v1 = vld [vmem:[#allocation9_spill] sm:$0xff] }
 0x486   :  { %v1941_v3 = vpop.f32.mrf.mxu1  ;;  %v2356_v21 = vpop.f32.mrf.mxu3  ;;  %2612 = vmatmul.f32.gmra.mxu0 %v3308_v19 }
 0x487   :  { %v2357_v4 = vadd.f32 %v2356_v21, %v2148_v15  ;;  %v1942_v29 = vadd.f32 %v1941_v3, %v4984_v33 }
 0x489   :  { %v2566_v45 = vadd.f32 %v2565_v61, %v2357_v4  ;;  %1988 = vmatmul.f32.gmra.mxu1 %v3307_v9  ;;  %2197 = vmatmul.f32.gmra.mxu2 %v3181_v7 }
 0x48b   :  { %v2668_v8 = vadd.f32 %v2667_v22, %v2566_v45  ;;  %v2738_v32 = vmul.f32 %v2566_v45, %v2566_v45  ;;  %2874 = vst [vmem:[#allocation2 + $0x160] sm:$0xff] %v2566_v45  ;;  %2406 = vmatmul.f32.gmra.mxu3 %v3245_v10  ;;  %v2568_v24 = vpop.f32.mrf.mxu0 }
 0x48c   :  { %v2150_v58 = vpop.f32.mrf.mxu2 }
 0x48d   :  { %v2801_v50 = vadd.f32 %v2800_v54, %v2738_v32  ;;  %v2151_v14 = vadd.f32 %v2150_v58, %v1942_v29  ;;  %v5786_v32 = vld [vmem:[#allocation11_spill] sm:$0xff] }
 0x48e   :  { %v1944_v60 = vpop.f32.mrf.mxu1  ;;  %v2359_v12 = vpop.f32.mrf.mxu3  ;;  %2615 = vmatmul.f32.gmra.mxu0 %v3309_v48 }
 0x48f   :  { %v2360_v33 = vadd.f32 %v2359_v12, %v2151_v14  ;;  %v1945_v37 = vadd.f32 %v1944_v60, %v5782_v13  ;;  %v5787_v13 = vld [vmem:[#allocation12_spill] sm:$0xff] }
 0x491   :  { %v2569_v63 = vadd.f32 %v2568_v24, %v2360_v33  ;;  %1991 = vmatmul.f32.gmra.mxu1 %v3308_v19  ;;  %2200 = vmatmul.f32.gmra.mxu2 %v3182_v27  ;;  %v5785_v19 = vld [vmem:[#allocation10_spill] sm:$0xff] }
 0x493   :  { %v2669_v56 = vadd.f32 %v2668_v8, %v2569_v63  ;;  %v2739_v47 = vmul.f32 %v2569_v63, %v2569_v63  ;;  %2875 = vst [vmem:[#allocation2 + $0x168] sm:$0xff] %v2569_v63  ;;  %2409 = vmatmul.f32.gmra.mxu3 %v3246_v38  ;;  %v2571_v51 = vpop.f32.mrf.mxu0 }
 0x494   :  { %v2153_v28 = vpop.f32.mrf.mxu2 }
 0x495   :  { %v2802_v46 = vadd.f32 %v2801_v50, %v2739_v47  ;;  %v2154_v62 = vadd.f32 %v2153_v28, %v1945_v37 }
 0x496   :  { %v1947_v26 = vpop.f32.mrf.mxu1  ;;  %v2362_v55 = vpop.f32.mrf.mxu3  ;;  %2618 = vmatmul.f32.gmra.mxu0 %v3310_v17 }
 0x497   :  { %v2363_v49 = vadd.f32 %v2362_v55, %v2154_v62  ;;  %v1948_v57 = vadd.f32 %v1947_v26, %v5783_v42 }
 0x499   :  { %v2572_v5 = vadd.f32 %v2571_v51, %v2363_v49  ;;  %1994 = vmatmul.f32.gmra.mxu1 %v3309_v48  ;;  %2203 = vmatmul.f32.gmra.mxu2 %v3183_v59  ;;  %v5788_v49 = vld [vmem:[#allocation13_spill] sm:$0xff] }
 0x49b   :  { %v2670_v35 = vadd.f32 %v2669_v56, %v2572_v5  ;;  %v2740_v16 = vmul.f32 %v2572_v5, %v2572_v5  ;;  %2876 = vst [vmem:[#allocation2 + $0x170] sm:$0xff] %v2572_v5  ;;  %2412 = vmatmul.f32.gmra.mxu3 %v3247_v41  ;;  %v2574_v40 = vpop.f32.mrf.mxu0 }
 0x49c   :  { %v2156_v30 = vpop.f32.mrf.mxu2 }
 0x49d   :  { %v2803_v23 = vadd.f32 %v2802_v46, %v2740_v16  ;;  %v2157_v0 = vadd.f32 %v2156_v30, %v1948_v57 }
 0x49e   :  { %v1950_v2 = vpop.f32.mrf.mxu1  ;;  %v2365_v36 = vpop.f32.mrf.mxu3  ;;  %2621 = vmatmul.f32.gmra.mxu0 %v3311_v6 }
 0x49f   :  { %v2366_v9 = vadd.f32 %v2365_v36, %v2157_v0  ;;  %v1951_v31 = vadd.f32 %v1950_v2, %v5784_v1  ;;  %v5789_v2 = vld [vmem:[#allocation14_spill] sm:$0xff] }
 0x4a1   :  { %v2575_v39 = vadd.f32 %v2574_v40, %v2366_v9 }
 0x4a3   :  { %v2671_v52 = vadd.f32 %v2670_v35, %v2575_v39  ;;  %v2741_v18 = vmul.f32 %v2575_v39, %v2575_v39  ;;  %2877 = vst [vmem:[#allocation2 + $0x178] sm:$0xff] %v2575_v39  ;;  %v2577_v20 = vpop.f32.mrf.mxu0 }
 0x4a4   :  { %v2159_v25 = vpop.f32.mrf.mxu2 }
 0x4a5   :  { %v2804_v44 = vadd.f32 %v2803_v23, %v2741_v18  ;;  %v2160_v11 = vadd.f32 %v2159_v25, %v1951_v31 }
 0x4a6   :  { %v1953_v53 = vpop.f32.mrf.mxu1  ;;  %v2368_v22 = vpop.f32.mrf.mxu3 }
 0x4a7   :  { %v2369_v34 = vadd.f32 %v2368_v22, %v2160_v11  ;;  %v1954_v43 = vadd.f32 %v1953_v53, %v5785_v19  ;;  %v5790_v53 = vld [vmem:[#allocation15_spill] sm:$0xff] }
 0x4a9   :  { %v2578_v61 = vadd.f32 %v2577_v20, %v2369_v34 }
 0x4ab   :  { %v2672_v54 = vadd.f32 %v2671_v52, %v2578_v61  ;;  %v2742_v15 = vmul.f32 %v2578_v61, %v2578_v61  ;;  %2878 = vst [vmem:[#allocation2 + $0x180] sm:$0xff] %v2578_v61  ;;  %v2580_v3 = vpop.f32.mrf.mxu0 }
 0x4ac   :  { %v2162_v21 = vpop.f32.mrf.mxu2 }
 0x4ad   :  { %v2805_v7 = vadd.f32 %v2804_v44, %v2742_v15  ;;  %v2163_v4 = vadd.f32 %v2162_v21, %v1954_v43 }
 0x4ae   :  { %v1956_v10 = vpop.f32.mrf.mxu1  ;;  %v2371_v45 = vpop.f32.mrf.mxu3 }
 0x4af   :  { %v2372_v29 = vadd.f32 %v2371_v45, %v2163_v4  ;;  %v1957_v24 = vadd.f32 %v1956_v10, %v5786_v32  ;;  %v5791_v10 = vld [vmem:[#allocation16_spill] sm:$0xff] }
 0x4b1   :  { %v2581_v8 = vadd.f32 %v2580_v3, %v2372_v29 }
 0x4b3   :  { %v2673_v48 = vadd.f32 %v2672_v54, %v2581_v8  ;;  %v2743_v58 = vmul.f32 %v2581_v8, %v2581_v8  ;;  %2879 = vst [vmem:[#allocation2 + $0x188] sm:$0xff] %v2581_v8  ;;  %v2583_v50 = vpop.f32.mrf.mxu0 }
 0x4b4   :  { %v2165_v14 = vpop.f32.mrf.mxu2 }
 0x4b5   :  { %v2806_v60 = vadd.f32 %v2805_v7, %v2743_v58  ;;  %v2166_v12 = vadd.f32 %v2165_v14, %v1957_v24 }
 0x4b6   :  { %v1959_v27 = vpop.f32.mrf.mxu1  ;;  %v2374_v33 = vpop.f32.mrf.mxu3 }
 0x4b7   :  { %v2375_v38 = vadd.f32 %v2374_v33, %v2166_v12  ;;  %v1960_v37 = vadd.f32 %v1959_v27, %v5787_v13  ;;  %v5792_v27 = vld [vmem:[#allocation17_spill] sm:$0xff] }
 0x4b9   :  { %v2584_v63 = vadd.f32 %v2583_v50, %v2375_v38 }
 0x4bb   :  { %v2674_v56 = vadd.f32 %v2673_v48, %v2584_v63  ;;  %v2744_v47 = vmul.f32 %v2584_v63, %v2584_v63  ;;  %2880 = vst [vmem:[#allocation2 + $0x190] sm:$0xff] %v2584_v63  ;;  %v2586_v51 = vpop.f32.mrf.mxu0 }
 0x4bc   :  { %v2168_v17 = vpop.f32.mrf.mxu2 }
 0x4bd   :  { %v2807_v28 = vadd.f32 %v2806_v60, %v2744_v47  ;;  %v2169_v46 = vadd.f32 %v2168_v17, %v1960_v37 }
 0x4be   :  { %v1962_v62 = vpop.f32.mrf.mxu1  ;;  %v2377_v26 = vpop.f32.mrf.mxu3 }
 0x4bf   :  { %v2378_v55 = vadd.f32 %v2377_v26, %v2169_v46  ;;  %v1963_v41 = vadd.f32 %v1962_v62, %v5788_v49  ;;  %v5793_v62 = vld [vmem:[#allocation18_spill] sm:$0xff] }
 0x4c1   :  { %v2587_v59 = vadd.f32 %v2586_v51, %v2378_v55 }
 0x4c3   :  { %v2675_v5 = vadd.f32 %v2674_v56, %v2587_v59  ;;  %v2745_v42 = vmul.f32 %v2587_v59, %v2587_v59  ;;  %2881 = vst [vmem:[#allocation2 + $0x198] sm:$0xff] %v2587_v59  ;;  %v2589_v57 = vpop.f32.mrf.mxu0 }
 0x4c4   :  { %v2171_v35 = vpop.f32.mrf.mxu2 }
 0x4c5   :  { %v2808_v16 = vadd.f32 %v2807_v28, %v2745_v42  ;;  %v2172_v40 = vadd.f32 %v2171_v35, %v1963_v41 }
 0x4c6   :  { %v1965_v6 = vpop.f32.mrf.mxu1  ;;  %v2380_v30 = vpop.f32.mrf.mxu3 }
 0x4c7   :  { %v2381_v23 = vadd.f32 %v2380_v30, %v2172_v40  ;;  %v1966_v36 = vadd.f32 %v1965_v6, %v5789_v2  ;;  %v5794_v6 = vld [vmem:[#allocation19_spill] sm:$0xff] }
 0x4c9   :  { %v2590_v0 = vadd.f32 %v2589_v57, %v2381_v23 }
 0x4cb   :  { %v2676_v9 = vadd.f32 %v2675_v5, %v2590_v0  ;;  %v2746_v39 = vmul.f32 %v2590_v0, %v2590_v0  ;;  %2882 = vst [vmem:[#allocation2 + $0x1a0] sm:$0xff] %v2590_v0  ;;  %v2592_v1 = vpop.f32.mrf.mxu0 }
 0x4cc   :  { %v2174_v31 = vpop.f32.mrf.mxu2 }
 0x4cd   :  { %v2809_v52 = vadd.f32 %v2808_v16, %v2746_v39  ;;  %v2175_v18 = vadd.f32 %v2174_v31, %v1966_v36 }
 0x4ce   :  { %v1968_v20 = vpop.f32.mrf.mxu1  ;;  %v2383_v25 = vpop.f32.mrf.mxu3 }
 0x4cf   :  { %v2384_v44 = vadd.f32 %v2383_v25, %v2175_v18  ;;  %v1969_v22 = vadd.f32 %v1968_v20, %v5790_v53  ;;  %v5795_v20 = vld [vmem:[#allocation20_spill] sm:$0xff] }
 0x4d1   :  { %v2593_v11 = vadd.f32 %v2592_v1, %v2384_v44 }
 0x4d3   :  { %v2677_v34 = vadd.f32 %v2676_v9, %v2593_v11  ;;  %v2747_v61 = vmul.f32 %v2593_v11, %v2593_v11  ;;  %2883 = vst [vmem:[#allocation2 + $0x1a8] sm:$0xff] %v2593_v11  ;;  %v2595_v19 = vpop.f32.mrf.mxu0 }
 0x4d4   :  { %v2177_v43 = vpop.f32.mrf.mxu2 }
 0x4d5   :  { %v2810_v54 = vadd.f32 %v2809_v52, %v2747_v61  ;;  %v2178_v15 = vadd.f32 %v2177_v43, %v1969_v22 }
 0x4d6   :  { %v1971_v3 = vpop.f32.mrf.mxu1  ;;  %v2386_v21 = vpop.f32.mrf.mxu3 }
 0x4d7   :  { %v2387_v7 = vadd.f32 %v2386_v21, %v2178_v15  ;;  %v1972_v45 = vadd.f32 %v1971_v3, %v5791_v10  ;;  %v5796_v3 = vld [vmem:[#allocation21_spill] sm:$0xff] }
 0x4d9   :  { %v2596_v4 = vadd.f32 %v2595_v19, %v2387_v7 }
 0x4db   :  { %v2678_v29 = vadd.f32 %v2677_v34, %v2596_v4  ;;  %v2748_v8 = vmul.f32 %v2596_v4, %v2596_v4  ;;  %2884 = vst [vmem:[#allocation2 + $0x1b0] sm:$0xff] %v2596_v4  ;;  %v2598_v32 = vpop.f32.mrf.mxu0 }
 0x4dc   :  { %v2180_v24 = vpop.f32.mrf.mxu2 }
 0x4dd   :  { %v2811_v48 = vadd.f32 %v2810_v54, %v2748_v8  ;;  %v2181_v58 = vadd.f32 %v2180_v24, %v1972_v45 }
 0x4de   :  { %v1974_v50 = vpop.f32.mrf.mxu1  ;;  %v2389_v14 = vpop.f32.mrf.mxu3 }
 0x4df   :  { %v2390_v60 = vadd.f32 %v2389_v14, %v2181_v58  ;;  %v1975_v33 = vadd.f32 %v1974_v50, %v5792_v27  ;;  %v5797_v50 = vld [vmem:[#allocation22_spill] sm:$0xff] }
 0x4e1   :  { %v2599_v12 = vadd.f32 %v2598_v32, %v2390_v60 }
 0x4e3   :  { %v2679_v38 = vadd.f32 %v2678_v29, %v2599_v12  ;;  %v2749_v63 = vmul.f32 %v2599_v12, %v2599_v12  ;;  %2885 = vst [vmem:[#allocation2 + $0x1b8] sm:$0xff] %v2599_v12  ;;  %v2601_v13 = vpop.f32.mrf.mxu0 }
 0x4e4   :  { %v2183_v37 = vpop.f32.mrf.mxu2 }
 0x4e5   :  { %v2812_v56 = vadd.f32 %v2811_v48, %v2749_v63  ;;  %v2184_v47 = vadd.f32 %v2183_v37, %v1975_v33 }
 0x4e6   :  { %v1977_v51 = vpop.f32.mrf.mxu1  ;;  %v2392_v17 = vpop.f32.mrf.mxu3 }
 0x4e7   :  { %v2393_v28 = vadd.f32 %v2392_v17, %v2184_v47  ;;  %v1978_v26 = vadd.f32 %v1977_v51, %v5793_v62  ;;  %v5798_v51 = vld [vmem:[#allocation23_spill] sm:$0xff] }
 0x4e9   :  { %v2602_v46 = vadd.f32 %v2601_v13, %v2393_v28 }
 0x4eb   :  { %v2680_v55 = vadd.f32 %v2679_v38, %v2602_v46  ;;  %v2750_v59 = vmul.f32 %v2602_v46, %v2602_v46  ;;  %2886 = vst [vmem:[#allocation2 + $0x1c0] sm:$0xff] %v2602_v46  ;;  %v2604_v49 = vpop.f32.mrf.mxu0 }
 0x4ec   :  { %v2186_v41 = vpop.f32.mrf.mxu2 }
 0x4ed   :  { %v2813_v5 = vadd.f32 %v2812_v56, %v2750_v59  ;;  %v2187_v42 = vadd.f32 %v2186_v41, %v1978_v26 }
 0x4ee   :  { %v1980_v57 = vpop.f32.mrf.mxu1  ;;  %v2395_v35 = vpop.f32.mrf.mxu3 }
 0x4ef   :  { %v2396_v16 = vadd.f32 %v2395_v35, %v2187_v42  ;;  %v1981_v30 = vadd.f32 %v1980_v57, %v5794_v6  ;;  %v5799_v57 = vld [vmem:[#allocation26_spill] sm:$0xff] }
 0x4f1   :  { %v2605_v40 = vadd.f32 %v2604_v49, %v2396_v16 }
 0x4f3   :  { %v2681_v23 = vadd.f32 %v2680_v55, %v2605_v40  ;;  %v2751_v0 = vmul.f32 %v2605_v40, %v2605_v40  ;;  %2887 = vst [vmem:[#allocation2 + $0x1c8] sm:$0xff] %v2605_v40  ;;  %v2607_v2 = vpop.f32.mrf.mxu0 }
 0x4f4   :  { %v2189_v36 = vpop.f32.mrf.mxu2 }
 0x4f5   :  { %v2814_v9 = vadd.f32 %v2813_v5, %v2751_v0  ;;  %v2190_v39 = vadd.f32 %v2189_v36, %v1981_v30 }
 0x4f6   :  { %v1983_v1 = vpop.f32.mrf.mxu1  ;;  %v2398_v31 = vpop.f32.mrf.mxu3 }
 0x4f7   :  { %v2399_v52 = vadd.f32 %v2398_v31, %v2190_v39  ;;  %v1984_v25 = vadd.f32 %v1983_v1, %v5795_v20 }
 0x4f9   :  { %v2608_v18 = vadd.f32 %v2607_v2, %v2399_v52 }
 0x4fb   :  { %v2682_v44 = vadd.f32 %v2681_v23, %v2608_v18  ;;  %v2752_v11 = vmul.f32 %v2608_v18, %v2608_v18  ;;  %2888 = vst [vmem:[#allocation2 + $0x1d0] sm:$0xff] %v2608_v18  ;;  %v2610_v53 = vpop.f32.mrf.mxu0 }
 0x4fc   :  { %v2192_v22 = vpop.f32.mrf.mxu2 }
 0x4fd   :  { %v2815_v34 = vadd.f32 %v2814_v9, %v2752_v11  ;;  %v2193_v61 = vadd.f32 %v2192_v22, %v1984_v25 }
 0x4fe   :  { %v1986_v19 = vpop.f32.mrf.mxu1  ;;  %v2401_v43 = vpop.f32.mrf.mxu3 }
 0x4ff   :  { %v2402_v54 = vadd.f32 %v2401_v43, %v2193_v61  ;;  %v1987_v21 = vadd.f32 %v1986_v19, %v5796_v3 }
 0x501   :  { %v2611_v15 = vadd.f32 %v2610_v53, %v2402_v54 }
 0x503   :  { %v2683_v7 = vadd.f32 %v2682_v44, %v2611_v15  ;;  %v2753_v4 = vmul.f32 %v2611_v15, %v2611_v15  ;;  %2889 = vst [vmem:[#allocation2 + $0x1d8] sm:$0xff] %v2611_v15  ;;  %v2613_v10 = vpop.f32.mrf.mxu0 }
 0x504   :  { %v2195_v45 = vpop.f32.mrf.mxu2 }
 0x505   :  { %v2816_v29 = vadd.f32 %v2815_v34, %v2753_v4  ;;  %v2196_v8 = vadd.f32 %v2195_v45, %v1987_v21 }
 0x506   :  { %v1989_v32 = vpop.f32.mrf.mxu1  ;;  %v2404_v24 = vpop.f32.mrf.mxu3 }
 0x507   :  { %v2405_v48 = vadd.f32 %v2404_v24, %v2196_v8  ;;  %v1990_v14 = vadd.f32 %v1989_v32, %v5797_v50 }
 0x509   :  { %v2614_v58 = vadd.f32 %v2613_v10, %v2405_v48 }
 0x50b   :  { %v2684_v60 = vadd.f32 %v2683_v7, %v2614_v58  ;;  %v2754_v12 = vmul.f32 %v2614_v58, %v2614_v58  ;;  %2890 = vst [vmem:[#allocation2 + $0x1e0] sm:$0xff] %v2614_v58  ;;  %v2616_v27 = vpop.f32.mrf.mxu0 }
 0x50c   :  { %v2198_v33 = vpop.f32.mrf.mxu2 }
 0x50d   :  { %v2817_v38 = vadd.f32 %v2816_v29, %v2754_v12  ;;  %v2199_v63 = vadd.f32 %v2198_v33, %v1990_v14 }
 0x50e   :  { %v1992_v13 = vpop.f32.mrf.mxu1  ;;  %v2407_v37 = vpop.f32.mrf.mxu3 }
 0x50f   :  { %v2408_v56 = vadd.f32 %v2407_v37, %v2199_v63  ;;  %v1993_v17 = vadd.f32 %v1992_v13, %v5798_v51 }
 0x511   :  { %v2617_v47 = vadd.f32 %v2616_v27, %v2408_v56 }
 0x513   :  { %v2685_v28 = vadd.f32 %v2684_v60, %v2617_v47  ;;  %v2755_v46 = vmul.f32 %v2617_v47, %v2617_v47  ;;  %2891 = vst [vmem:[#allocation2 + $0x1e8] sm:$0xff] %v2617_v47  ;;  %v2619_v26 = vpop.f32.mrf.mxu0 }
 0x514   :  { %v2201_v62 = vpop.f32.mrf.mxu2 }
 0x515   :  { %v2818_v55 = vadd.f32 %v2817_v38, %v2755_v46  ;;  %v2202_v59 = vadd.f32 %v2201_v62, %v1993_v17 }
 0x516   :  { %v2410_v49 = vpop.f32.mrf.mxu3  ;;  %v1995_v5 = vpop.f32.mrf.mxu1 }
 0x517   :  { %v2411_v41 = vadd.f32 %v2410_v49, %v2202_v59  ;;  %v1996_v35 = vadd.f32 %v1995_v5, %v5799_v57 }
 0x519   :  { %v2620_v42 = vadd.f32 %v2619_v26, %v2411_v41 }
 0x51b   :  { %v2686_v16 = vadd.f32 %v2685_v28, %v2620_v42  ;;  %v2756_v40 = vmul.f32 %v2620_v42, %v2620_v42  ;;  %2892 = vst [vmem:[#allocation2 + $0x1f0] sm:$0xff] %v2620_v42  ;;  %v2622_v2 = vpop.f32.mrf.mxu0 }
 0x51c   :  { %v2204_v6 = vpop.f32.mrf.mxu2 }
 0x51d   :  { %v2819_v30 = vadd.f32 %v2818_v55, %v2756_v40  ;;  %v2205_v23 = vadd.f32 %v2204_v6, %v1996_v35 }
 0x51e   :  { %v2413_v0 = vpop.f32.mrf.mxu3 }
 0x51f   :  { %v2414_v36 = vadd.f32 %v2413_v0, %v2205_v23 }
 0x521   :  { %v2623_v9 = vadd.f32 %v2622_v2, %v2414_v36 }
 0x523   :  { %v2687_v39 = vadd.f32 %v2686_v16, %v2623_v9  ;;  %v2757_v1 = vmul.f32 %v2623_v9, %v2623_v9  ;;  %2893 = vst [vmem:[#allocation2 + $0x1f8] sm:$0xff] %v2623_v9 }
 0x524   :  { %2906 = dma.vmem_to_hbm [thread:$0]  %s2899_s2, 8192, %s2901_s24, [#allocation3], %s3420_s25, %s3420_s25, %s3421_s26  }
 0x525   :  { %v2688_v31 = vrot.slane %v2687_v39, 4  ;;  %v2820_v52 = vadd.f32 %v2819_v30, %v2757_v1 }
 0x527   :  { %v2689_v18 = vadd.f32 %v2688_v31, %v2687_v39  ;;  %v2821_v20 = vrot.slane %v2820_v52, 4 }
 0x529   :  { %v2690_v25 = vrot.slane %v2689_v18, 2  ;;  %v2822_v44 = vadd.f32 %v2821_v20, %v2820_v52 }
 0x52b   :  { %v2691_v11 = vadd.f32 %v2690_v25, %v2689_v18  ;;  %v2823_v53 = vrot.slane %v2822_v44, 2 }
 0x52d   :  { %v2692_v22 = vrot.slane %v2691_v11, 1  ;;  %v2824_v34 = vadd.f32 %v2823_v53, %v2822_v44 }
 0x52f   :  { %v2825_v61 = vrot.slane %v2824_v34, 1  ;;  %v2693_v19 = vadd.f32 %v2692_v22, %v2691_v11 }
 0x531   :  { %v2826_v43 = vadd.f32 %v2825_v61, %v2824_v34 }
 0x533   :  { %v2828_v54 = vsel %vm2827_vm0, %v2693_v19, %v2826_v43 }
 0x534   :  { %2829 = vst [vmem:[#allocation4] sm:$0x3] %v2828_v54 }
 0x535   :  { %2917 = dma.vmem_to_hbm [thread:$0]  %s2913_s27, 32, %s2915_s30, [#allocation5]  }
 0x536   :  { %3415 = dma.done.wait [#allocation3], 8192  }
 0x537   :  { %3416 = vsyncadd [#allocation3], 4294959104 }
 0x538   :  { %3417 = dma.done.wait [#allocation5], 32  }
 0x539   :  { %3418 = vsyncadd [#allocation5], 4294967264 }
 0x53a   :  { %2926 = vsyncpa [#allocation3], 1 }
 0x53b   :  { %2927 = vsyncpa [#allocation5], 1 }

</bundles_post_ra>
